<compile_context>
chip_gen: v5e
topology: v5e:2x2
jax: 0.10.0
libtpu: 0.0.40
codegen_flags: <defaults>
</compile_context>

<pallas_src>
import jax
import jax.numpy as jnp
from jax import lax
from jax.experimental import pallas as pl
from jax.experimental.pallas import tpu as pltpu

EPS = 1e-5


def _round_up(x, m):
    return (x + m - 1) // m * m


def _layernorm_relu(h, gamma, beta):
    # One-pass LayerNorm: var = E[h^2] - E[h]^2 (saves one centered VPU pass
    # and one reduction setup per layer).
    mu = jnp.mean(h, axis=-1, keepdims=True)
    ms = jnp.mean(h * h, axis=-1, keepdims=True)
    var = jnp.maximum(ms - mu * mu, 0.0)
    hn = (h - mu) * lax.rsqrt(var + EPS)
    return jnp.maximum(hn * gamma + beta, 0.0)


def critic_kernel(s_ref, a_ref,
                  w1s_ref, w1a_ref, b1_ref, g1_ref, be1_ref,
                  w2_ref, b2_ref, g2_ref, be2_ref,
                  w3_ref, b3_ref, g3_ref, be3_ref,
                  wq_ref, bq_ref,
                  out_ref):
    # Layer 1: concat(state, action) @ W1 == state @ W1_s + action @ W1_a,
    # so no concatenated copy is ever materialized.
    h = (jnp.dot(s_ref[...], w1s_ref[...], preferred_element_type=jnp.float32)
         + jnp.dot(a_ref[...], w1a_ref[...], preferred_element_type=jnp.float32)
         + b1_ref[...])
    h = _layernorm_relu(h, g1_ref[...], be1_ref[...])

    # Layer 2 + LayerNorm + ReLU
    h = jnp.dot(h, w2_ref[...], preferred_element_type=jnp.float32) + b2_ref[...]
    h = _layernorm_relu(h, g2_ref[...], be2_ref[...])

    # Layer 3 + LayerNorm + ReLU
    h = jnp.dot(h, w3_ref[...], preferred_element_type=jnp.float32) + b3_ref[...]
    h = _layernorm_relu(h, g3_ref[...], be3_ref[...])

    # q head: a (tile,256)@(256,1) matmul would use one MXU column and force a
    # lane-sparse (tile,1) store.  VPU multiply + lane reduce instead, stored
    # as a lane-dense (1, tile) row (batch on lanes).
    q = jnp.sum(h * wq_ref[...], axis=-1).reshape(1, -1)        # (1, tile)
    out_ref[...] = (q + bq_ref[...]).astype(out_ref.dtype)


def critic_forward(state, action, params, *, batch_tile=512):
    """state: (B, Ds), action: (B, Da).  Returns (B, 1) q-values."""
    assert batch_tile % 128 == 0, "batch_tile must be a multiple of 128"
    state = state.astype(jnp.float32)
    action = action.astype(jnp.float32)
    B, Ds = state.shape
    Ba, Da = action.shape
    assert Ba == B

    # Effective tile: don't over-pad tiny batches; keep a multiple of 128 so
    # the (1, tile) output block is lane-dense.
    eff_tile = max(128, min(batch_tile, _round_up(B, 128)))
    Bp = _round_up(B, eff_tile)
    if Bp != B:
        # Padded rows are independent under LayerNorm; their q values are
        # sliced off below.
        state = jnp.pad(state, ((0, Bp - B), (0, 0)))
        action = jnp.pad(action, ((0, Bp - B), (0, 0)))
    grid = (Bp // eff_tile,)

    w1 = params["w1"]                      # (Ds+Da, H1), pre-transposed [in,out]
    H1 = w1.shape[1]
    H2 = params["w2"].shape[1]
    H3 = params["w3"].shape[1]
    assert w1.shape[0] == Ds + Da
    w1s, w1a = w1[:Ds, :], w1[Ds:, :]      # one-time tiny slices
    wq_row = params["wq"].reshape(1, H3)   # (1, H3) lane-dense weight row

    def rep(shape):                        # broadcast (grid-invariant) blocks
        return pl.BlockSpec(shape, lambda i: (0, 0))

    in_specs = [
        pl.BlockSpec((eff_tile, Ds), lambda i: (i, 0)),   # state
        pl.BlockSpec((eff_tile, Da), lambda i: (i, 0)),   # action
        rep((Ds, H1)), rep((Da, H1)),                     # W1 split
        rep((1, H1)), rep((1, H1)), rep((1, H1)),         # b1, gamma1, beta1
        rep((H1, H2)), rep((1, H2)), rep((1, H2)), rep((1, H2)),
        rep((H2, H3)), rep((1, H3)), rep((1, H3)), rep((1, H3)),
        rep((1, H3)), rep((1, 1)),                        # wq_row, bq
    ]
    # Lane-dense output: (1, Bp) with batch on the lane axis.
    out_spec = pl.BlockSpec((1, eff_tile), lambda i: (0, i))

    fn = pl.pallas_call(
        critic_kernel,
        out_shape=jax.ShapeDtypeStruct((1, Bp), jnp.float32),
        grid_spec=pltpu.PrefetchScalarGridSpec(
            num_scalar_prefetch=0,
            grid=grid,
            in_specs=in_specs,
            out_specs=out_spec,
        ),
        compiler_params=pltpu.CompilerParams(
            dimension_semantics=("parallel",)),   # shards grid across TCs (v7x)
    )

    out = fn(
        state, action,
        w1s, w1a, params["b1"], params["g1"], params["be1"],
        params["w2"], params["b2"], params["g2"], params["be2"],
        params["w3"], params["b3"], params["g3"], params["be3"],
        wq_row, params["bq"],
    )
    return out[0, :B].reshape(B, 1)


def init_params(key, input_dims, nn_dims=(256, 256, 256)):
    """Deterministic synthetic init mirroring the module's parameter shapes.
    Linear weights: kaiming-uniform-style bound; LayerNorm: gamma=1, beta=0."""
    dims = [input_dims, nn_dims[0], nn_dims[1], nn_dims[2]]
    params = {}
    keys = jax.random.split(key, 8)

    def kaiming_uniform(k, fan_in, shape):
        bound = jnp.sqrt(6.0 / fan_in)  # gain=sqrt(2), fan_in mode
        return jax.random.uniform(k, shape, jnp.float32, -bound, bound)

    for li, (din, dout) in enumerate(zip(dims[:-1], dims[1:]), start=1):
        # stored pre-transposed: [in, out]
        params[f"w{li}"] = kaiming_uniform(keys[2 * (li - 1)], din, (din, dout))
        bb = 1.0 / jnp.sqrt(float(din))
        params[f"b{li}"] = jax.random.uniform(
            keys[2 * (li - 1) + 1], (1, dout), jnp.float32, -bb, bb)
        params[f"g{li}"] = jnp.ones((1, dout), jnp.float32)    # LayerNorm gamma
        params[f"be{li}"] = jnp.zeros((1, dout), jnp.float32)  # LayerNorm beta

    dq = dims[-1]
    params["wq"] = kaiming_uniform(keys[6], dq, (dq, 1))
    bq = 1.0 / jnp.sqrt(float(dq))
    params["bq"] = jax.random.uniform(keys[7], (1, 1), jnp.float32, -bq, bq)
    return params


def critic_forward_ref(state, action, params):
    """Pure-JAX reference (PyTorch semantics) for validation."""
    x = jnp.concatenate([state, action], axis=1).astype(jnp.float32)

    def block(h, w, b, g, be):
        h = h @ w + b
        mu = jnp.mean(h, axis=-1, keepdims=True)
        var = jnp.mean(jnp.square(h - mu), axis=-1, keepdims=True)
        h = (h - mu) * lax.rsqrt(var + EPS) * g + be
        return jnp.maximum(h, 0.0)

    h = block(x, params["w1"], params["b1"], params["g1"], params["be1"])
    h = block(h, params["w2"], params["b2"], params["g2"], params["be2"])
    h = block(h, params["w3"], params["b3"], params["g3"], params["be3"])
    return h @ params["wq"] + params["bq"]


if __name__ == "__main__":
    key = jax.random.PRNGKey(0)
    k_state, k_action, k_params = jax.random.split(key, 3)

    B = 8          # small test batch (wrapper pads to the tile internally)
    Ds = 24        # state dim
    Da = 8         # action dim
    input_dims = Ds + Da  # 32 -> layer1 input

    state = jax.random.normal(k_state, (B, Ds), jnp.float32)
    action = jax.random.normal(k_action, (B, Da), jnp.float32)
    params = init_params(k_params, input_dims, nn_dims=(256, 256, 256))

    q = critic_forward(state, action, params)
    q = jax.block_until_ready(q)

    q_ref = critic_forward_ref(state, action, params)
    assert q.shape == (B, 1)
    assert jnp.allclose(q, q_ref, atol=1e-4, rtol=1e-4), (q, q_ref)

    print("KERNEL_OK")
</pallas_src>

<mosaic_0001>
module attributes {stable_mosaic.version = 11 : i64} {
  func.func @critic_kernel(%arg0: i32, %arg1: memref<128x24xf32, #tpu.memory_space<vmem>>, %arg2: memref<128x8xf32, #tpu.memory_space<vmem>>, %arg3: memref<24x256xf32, #tpu.memory_space<vmem>>, %arg4: memref<8x256xf32, #tpu.memory_space<vmem>>, %arg5: memref<1x256xf32, #tpu.memory_space<vmem>>, %arg6: memref<1x256xf32, #tpu.memory_space<vmem>>, %arg7: memref<1x256xf32, #tpu.memory_space<vmem>>, %arg8: memref<256x256xf32, #tpu.memory_space<vmem>>, %arg9: memref<1x256xf32, #tpu.memory_space<vmem>>, %arg10: memref<1x256xf32, #tpu.memory_space<vmem>>, %arg11: memref<1x256xf32, #tpu.memory_space<vmem>>, %arg12: memref<256x256xf32, #tpu.memory_space<vmem>>, %arg13: memref<1x256xf32, #tpu.memory_space<vmem>>, %arg14: memref<1x256xf32, #tpu.memory_space<vmem>>, %arg15: memref<1x256xf32, #tpu.memory_space<vmem>>, %arg16: memref<1x256xf32, #tpu.memory_space<vmem>>, %arg17: memref<1x1xf32, #tpu.memory_space<vmem>>, %arg18: memref<1x128xf32, #tpu.memory_space<vmem>>) attributes {dimension_semantics = [#tpu.dimension_semantics<parallel>], iteration_bounds = array<i64: 1>, scalar_prefetch = 0 : i64, scratch_operands = 0 : i64, tpu.core_type = #tpu.core_type<tc>, window_params = [{transform_indices = @transform_0, window_bounds = array<i64: 128, 24>}, {transform_indices = @transform_1, window_bounds = array<i64: 128, 8>}, {pipeline_mode = #tpu.pipeline_mode<synchronous>, transform_indices = @transform_2, window_bounds = array<i64: 24, 256>}, {pipeline_mode = #tpu.pipeline_mode<synchronous>, transform_indices = @transform_3, window_bounds = array<i64: 8, 256>}, {pipeline_mode = #tpu.pipeline_mode<synchronous>, transform_indices = @transform_4, window_bounds = array<i64: 1, 256>}, {pipeline_mode = #tpu.pipeline_mode<synchronous>, transform_indices = @transform_5, window_bounds = array<i64: 1, 256>}, {pipeline_mode = #tpu.pipeline_mode<synchronous>, transform_indices = @transform_6, window_bounds = array<i64: 1, 256>}, {pipeline_mode = #tpu.pipeline_mode<synchronous>, transform_indices = @transform_7, window_bounds = array<i64: 256, 256>}, {pipeline_mode = #tpu.pipeline_mode<synchronous>, transform_indices = @transform_8, window_bounds = array<i64: 1, 256>}, {pipeline_mode = #tpu.pipeline_mode<synchronous>, transform_indices = @transform_9, window_bounds = array<i64: 1, 256>}, {pipeline_mode = #tpu.pipeline_mode<synchronous>, transform_indices = @transform_10, window_bounds = array<i64: 1, 256>}, {pipeline_mode = #tpu.pipeline_mode<synchronous>, transform_indices = @transform_11, window_bounds = array<i64: 256, 256>}, {pipeline_mode = #tpu.pipeline_mode<synchronous>, transform_indices = @transform_12, window_bounds = array<i64: 1, 256>}, {pipeline_mode = #tpu.pipeline_mode<synchronous>, transform_indices = @transform_13, window_bounds = array<i64: 1, 256>}, {pipeline_mode = #tpu.pipeline_mode<synchronous>, transform_indices = @transform_14, window_bounds = array<i64: 1, 256>}, {pipeline_mode = #tpu.pipeline_mode<synchronous>, transform_indices = @transform_15, window_bounds = array<i64: 1, 256>}, {pipeline_mode = #tpu.pipeline_mode<synchronous>, transform_indices = @transform_16, window_bounds = array<i64: 1, 1>}, {transform_indices = @transform_17, window_bounds = array<i64: 1, 128>}]} {
    %c0 = arith.constant 0 : index
    %c0_0 = arith.constant 0 : index
    %0 = vector.load %arg1[%c0, %c0_0] : memref<128x24xf32, #tpu.memory_space<vmem>>, vector<128x24xf32>
    %c0_1 = arith.constant 0 : index
    %c0_2 = arith.constant 0 : index
    %1 = vector.load %arg3[%c0_1, %c0_2] : memref<24x256xf32, #tpu.memory_space<vmem>>, vector<24x256xf32>
    %cst = arith.constant dense<0.000000e+00> : vector<128x256xf32>
    %2 = tpu.matmul %0, %1, %cst {dimension_numbers = #tpu.dot_dimension_numbers<[1], [0], [0], [1], [0, 0, 1, 1], [], []>} : vector<128x24xf32>, vector<24x256xf32>, vector<128x256xf32> -> vector<128x256xf32>
    %c0_3 = arith.constant 0 : index
    %c0_4 = arith.constant 0 : index
    %3 = vector.load %arg2[%c0_3, %c0_4] : memref<128x8xf32, #tpu.memory_space<vmem>>, vector<128x8xf32>
    %c0_5 = arith.constant 0 : index
    %c0_6 = arith.constant 0 : index
    %4 = vector.load %arg4[%c0_5, %c0_6] : memref<8x256xf32, #tpu.memory_space<vmem>>, vector<8x256xf32>
    %cst_7 = arith.constant dense<0.000000e+00> : vector<128x256xf32>
    %5 = tpu.matmul %3, %4, %cst_7 {dimension_numbers = #tpu.dot_dimension_numbers<[1], [0], [0], [1], [0, 0, 1, 1], [], []>} : vector<128x8xf32>, vector<8x256xf32>, vector<128x256xf32> -> vector<128x256xf32>
    %6 = arith.addf %2, %5 : vector<128x256xf32>
    %c0_8 = arith.constant 0 : index
    %c0_9 = arith.constant 0 : index
    %7 = vector.load %arg5[%c0_8, %c0_9] : memref<1x256xf32, #tpu.memory_space<vmem>>, vector<1x256xf32>
    %8 = vector.broadcast %7 : vector<1x256xf32> to vector<128x256xf32>
    %9 = arith.addf %6, %8 : vector<128x256xf32>
    %c0_10 = arith.constant 0 : index
    %c0_11 = arith.constant 0 : index
    %10 = vector.load %arg6[%c0_10, %c0_11] : memref<1x256xf32, #tpu.memory_space<vmem>>, vector<1x256xf32>
    %c0_12 = arith.constant 0 : index
    %c0_13 = arith.constant 0 : index
    %11 = vector.load %arg7[%c0_12, %c0_13] : memref<1x256xf32, #tpu.memory_space<vmem>>, vector<1x256xf32>
    %cst_14 = arith.constant dense<0.000000e+00> : vector<128xf32>
    %12 = vector.multi_reduction <add>, %9, %cst_14 [1] : vector<128x256xf32> to vector<128xf32>
    %13 = vector.shape_cast %12 : vector<128xf32> to vector<128x1xf32>
    %cst_15 = arith.constant 2.560000e+02 : f32
    %14 = vector.broadcast %cst_15 : f32 to vector<128x1xf32>
    %15 = arith.divf %13, %14 : vector<128x1xf32>
    %16 = arith.mulf %9, %9 : vector<128x256xf32>
    %cst_16 = arith.constant dense<0.000000e+00> : vector<128xf32>
    %17 = vector.multi_reduction <add>, %16, %cst_16 [1] : vector<128x256xf32> to vector<128xf32>
    %18 = vector.shape_cast %17 : vector<128xf32> to vector<128x1xf32>
    %cst_17 = arith.constant 2.560000e+02 : f32
    %19 = vector.broadcast %cst_17 : f32 to vector<128x1xf32>
    %20 = arith.divf %18, %19 : vector<128x1xf32>
    %21 = arith.mulf %15, %15 : vector<128x1xf32>
    %22 = arith.subf %20, %21 : vector<128x1xf32>
    %cst_18 = arith.constant 0.000000e+00 : f32
    %23 = vector.broadcast %cst_18 : f32 to vector<128x1xf32>
    %24 = arith.maximumf %22, %23 : vector<128x1xf32>
    %25 = vector.broadcast %15 : vector<128x1xf32> to vector<128x256xf32>
    %26 = arith.subf %9, %25 : vector<128x256xf32>
    %cst_19 = arith.constant 9.99999974E-6 : f32
    %27 = vector.broadcast %cst_19 : f32 to vector<128x1xf32>
    %28 = arith.addf %24, %27 : vector<128x1xf32>
    %29 = math.rsqrt %28 : vector<128x1xf32>
    %30 = vector.broadcast %29 : vector<128x1xf32> to vector<128x256xf32>
    %31 = arith.mulf %26, %30 : vector<128x256xf32>
    %32 = vector.broadcast %10 : vector<1x256xf32> to vector<128x256xf32>
    %33 = arith.mulf %31, %32 : vector<128x256xf32>
    %34 = vector.broadcast %11 : vector<1x256xf32> to vector<128x256xf32>
    %35 = arith.addf %33, %34 : vector<128x256xf32>
    %cst_20 = arith.constant 0.000000e+00 : f32
    %36 = vector.broadcast %cst_20 : f32 to vector<128x256xf32>
    %37 = arith.maximumf %35, %36 : vector<128x256xf32>
    %c0_21 = arith.constant 0 : index
    %c0_22 = arith.constant 0 : index
    %38 = vector.load %arg8[%c0_21, %c0_22] : memref<256x256xf32, #tpu.memory_space<vmem>>, vector<256x256xf32>
    %cst_23 = arith.constant dense<0.000000e+00> : vector<128x256xf32>
    %39 = tpu.matmul %37, %38, %cst_23 {dimension_numbers = #tpu.dot_dimension_numbers<[1], [0], [0], [1], [0, 0, 1, 1], [], []>} : vector<128x256xf32>, vector<256x256xf32>, vector<128x256xf32> -> vector<128x256xf32>
    %c0_24 = arith.constant 0 : index
    %c0_25 = arith.constant 0 : index
    %40 = vector.load %arg9[%c0_24, %c0_25] : memref<1x256xf32, #tpu.memory_space<vmem>>, vector<1x256xf32>
    %41 = vector.broadcast %40 : vector<1x256xf32> to vector<128x256xf32>
    %42 = arith.addf %39, %41 : vector<128x256xf32>
    %c0_26 = arith.constant 0 : index
    %c0_27 = arith.constant 0 : index
    %43 = vector.load %arg10[%c0_26, %c0_27] : memref<1x256xf32, #tpu.memory_space<vmem>>, vector<1x256xf32>
    %c0_28 = arith.constant 0 : index
    %c0_29 = arith.constant 0 : index
    %44 = vector.load %arg11[%c0_28, %c0_29] : memref<1x256xf32, #tpu.memory_space<vmem>>, vector<1x256xf32>
    %cst_30 = arith.constant dense<0.000000e+00> : vector<128xf32>
    %45 = vector.multi_reduction <add>, %42, %cst_30 [1] : vector<128x256xf32> to vector<128xf32>
    %46 = vector.shape_cast %45 : vector<128xf32> to vector<128x1xf32>
    %cst_31 = arith.constant 2.560000e+02 : f32
    %47 = vector.broadcast %cst_31 : f32 to vector<128x1xf32>
    %48 = arith.divf %46, %47 : vector<128x1xf32>
    %49 = arith.mulf %42, %42 : vector<128x256xf32>
    %cst_32 = arith.constant dense<0.000000e+00> : vector<128xf32>
    %50 = vector.multi_reduction <add>, %49, %cst_32 [1] : vector<128x256xf32> to vector<128xf32>
    %51 = vector.shape_cast %50 : vector<128xf32> to vector<128x1xf32>
    %cst_33 = arith.constant 2.560000e+02 : f32
    %52 = vector.broadcast %cst_33 : f32 to vector<128x1xf32>
    %53 = arith.divf %51, %52 : vector<128x1xf32>
    %54 = arith.mulf %48, %48 : vector<128x1xf32>
    %55 = arith.subf %53, %54 : vector<128x1xf32>
    %cst_34 = arith.constant 0.000000e+00 : f32
    %56 = vector.broadcast %cst_34 : f32 to vector<128x1xf32>
    %57 = arith.maximumf %55, %56 : vector<128x1xf32>
    %58 = vector.broadcast %48 : vector<128x1xf32> to vector<128x256xf32>
    %59 = arith.subf %42, %58 : vector<128x256xf32>
    %cst_35 = arith.constant 9.99999974E-6 : f32
    %60 = vector.broadcast %cst_35 : f32 to vector<128x1xf32>
    %61 = arith.addf %57, %60 : vector<128x1xf32>
    %62 = math.rsqrt %61 : vector<128x1xf32>
    %63 = vector.broadcast %62 : vector<128x1xf32> to vector<128x256xf32>
    %64 = arith.mulf %59, %63 : vector<128x256xf32>
    %65 = vector.broadcast %43 : vector<1x256xf32> to vector<128x256xf32>
    %66 = arith.mulf %64, %65 : vector<128x256xf32>
    %67 = vector.broadcast %44 : vector<1x256xf32> to vector<128x256xf32>
    %68 = arith.addf %66, %67 : vector<128x256xf32>
    %cst_36 = arith.constant 0.000000e+00 : f32
    %69 = vector.broadcast %cst_36 : f32 to vector<128x256xf32>
    %70 = arith.maximumf %68, %69 : vector<128x256xf32>
    %c0_37 = arith.constant 0 : index
    %c0_38 = arith.constant 0 : index
    %71 = vector.load %arg12[%c0_37, %c0_38] : memref<256x256xf32, #tpu.memory_space<vmem>>, vector<256x256xf32>
    %cst_39 = arith.constant dense<0.000000e+00> : vector<128x256xf32>
    %72 = tpu.matmul %70, %71, %cst_39 {dimension_numbers = #tpu.dot_dimension_numbers<[1], [0], [0], [1], [0, 0, 1, 1], [], []>} : vector<128x256xf32>, vector<256x256xf32>, vector<128x256xf32> -> vector<128x256xf32>
    %c0_40 = arith.constant 0 : index
    %c0_41 = arith.constant 0 : index
    %73 = vector.load %arg13[%c0_40, %c0_41] : memref<1x256xf32, #tpu.memory_space<vmem>>, vector<1x256xf32>
    %74 = vector.broadcast %73 : vector<1x256xf32> to vector<128x256xf32>
    %75 = arith.addf %72, %74 : vector<128x256xf32>
    %c0_42 = arith.constant 0 : index
    %c0_43 = arith.constant 0 : index
    %76 = vector.load %arg14[%c0_42, %c0_43] : memref<1x256xf32, #tpu.memory_space<vmem>>, vector<1x256xf32>
    %c0_44 = arith.constant 0 : index
    %c0_45 = arith.constant 0 : index
    %77 = vector.load %arg15[%c0_44, %c0_45] : memref<1x256xf32, #tpu.memory_space<vmem>>, vector<1x256xf32>
    %cst_46 = arith.constant dense<0.000000e+00> : vector<128xf32>
    %78 = vector.multi_reduction <add>, %75, %cst_46 [1] : vector<128x256xf32> to vector<128xf32>
    %79 = vector.shape_cast %78 : vector<128xf32> to vector<128x1xf32>
    %cst_47 = arith.constant 2.560000e+02 : f32
    %80 = vector.broadcast %cst_47 : f32 to vector<128x1xf32>
    %81 = arith.divf %79, %80 : vector<128x1xf32>
    %82 = arith.mulf %75, %75 : vector<128x256xf32>
    %cst_48 = arith.constant dense<0.000000e+00> : vector<128xf32>
    %83 = vector.multi_reduction <add>, %82, %cst_48 [1] : vector<128x256xf32> to vector<128xf32>
    %84 = vector.shape_cast %83 : vector<128xf32> to vector<128x1xf32>
    %cst_49 = arith.constant 2.560000e+02 : f32
    %85 = vector.broadcast %cst_49 : f32 to vector<128x1xf32>
    %86 = arith.divf %84, %85 : vector<128x1xf32>
    %87 = arith.mulf %81, %81 : vector<128x1xf32>
    %88 = arith.subf %86, %87 : vector<128x1xf32>
    %cst_50 = arith.constant 0.000000e+00 : f32
    %89 = vector.broadcast %cst_50 : f32 to vector<128x1xf32>
    %90 = arith.maximumf %88, %89 : vector<128x1xf32>
    %91 = vector.broadcast %81 : vector<128x1xf32> to vector<128x256xf32>
    %92 = arith.subf %75, %91 : vector<128x256xf32>
    %cst_51 = arith.constant 9.99999974E-6 : f32
    %93 = vector.broadcast %cst_51 : f32 to vector<128x1xf32>
    %94 = arith.addf %90, %93 : vector<128x1xf32>
    %95 = math.rsqrt %94 : vector<128x1xf32>
    %96 = vector.broadcast %95 : vector<128x1xf32> to vector<128x256xf32>
    %97 = arith.mulf %92, %96 : vector<128x256xf32>
    %98 = vector.broadcast %76 : vector<1x256xf32> to vector<128x256xf32>
    %99 = arith.mulf %97, %98 : vector<128x256xf32>
    %100 = vector.broadcast %77 : vector<1x256xf32> to vector<128x256xf32>
    %101 = arith.addf %99, %100 : vector<128x256xf32>
    %cst_52 = arith.constant 0.000000e+00 : f32
    %102 = vector.broadcast %cst_52 : f32 to vector<128x256xf32>
    %103 = arith.maximumf %101, %102 : vector<128x256xf32>
    %c0_53 = arith.constant 0 : index
    %c0_54 = arith.constant 0 : index
    %104 = vector.load %arg16[%c0_53, %c0_54] : memref<1x256xf32, #tpu.memory_space<vmem>>, vector<1x256xf32>
    %105 = vector.broadcast %104 : vector<1x256xf32> to vector<128x256xf32>
    %106 = arith.mulf %103, %105 : vector<128x256xf32>
    %cst_55 = arith.constant dense<0.000000e+00> : vector<128xf32>
    %107 = vector.multi_reduction <add>, %106, %cst_55 [1] : vector<128x256xf32> to vector<128xf32>
    %108 = vector.shape_cast %107 : vector<128xf32> to vector<1x128xf32>
    %c0_56 = arith.constant 0 : index
    %c0_57 = arith.constant 0 : index
    %109 = vector.load %arg17[%c0_56, %c0_57] : memref<1x1xf32, #tpu.memory_space<vmem>>, vector<1x1xf32>
    %110 = vector.broadcast %109 : vector<1x1xf32> to vector<1x128xf32>
    %111 = arith.addf %108, %110 : vector<1x128xf32>
    %c0_58 = arith.constant 0 : index
    %c0_59 = arith.constant 0 : index
    %112 = vector.load %arg18[%c0_58, %c0_59] : memref<1x128xf32, #tpu.memory_space<vmem>>, vector<1x128xf32>
    tpu.vector_store %arg18[%c0_58, %c0_59], %111 {strides = array<i32>} : memref<1x128xf32, #tpu.memory_space<vmem>>, vector<1x128xf32>,
    return
  }
  func.func @transform_0(%arg0: i32) -> (i32, i32) {
    %c0_i32 = arith.constant 0 : i32
    %c0_i32_0 = arith.constant 0 : i32
    return %arg0, %c0_i32 : i32, i32
  }
  func.func @transform_1(%arg0: i32) -> (i32, i32) {
    %c0_i32 = arith.constant 0 : i32
    %c0_i32_0 = arith.constant 0 : i32
    return %arg0, %c0_i32 : i32, i32
  }
  func.func @transform_2(%arg0: i32) -> (i32, i32) {
    %c0_i32 = arith.constant 0 : i32
    %c0_i32_0 = arith.constant 0 : i32
    %c0_i32_1 = arith.constant 0 : i32
    return %c0_i32, %c0_i32_0 : i32, i32
  }
  func.func @transform_3(%arg0: i32) -> (i32, i32) {
    %c0_i32 = arith.constant 0 : i32
    %c0_i32_0 = arith.constant 0 : i32
    %c0_i32_1 = arith.constant 0 : i32
    return %c0_i32, %c0_i32_0 : i32, i32
  }
  func.func @transform_4(%arg0: i32) -> (i32, i32) {
    %c0_i32 = arith.constant 0 : i32
    %c0_i32_0 = arith.constant 0 : i32
    %c0_i32_1 = arith.constant 0 : i32
    return %c0_i32, %c0_i32_0 : i32, i32
  }
  func.func @transform_5(%arg0: i32) -> (i32, i32) {
    %c0_i32 = arith.constant 0 : i32
    %c0_i32_0 = arith.constant 0 : i32
    %c0_i32_1 = arith.constant 0 : i32
    return %c0_i32, %c0_i32_0 : i32, i32
  }
  func.func @transform_6(%arg0: i32) -> (i32, i32) {
    %c0_i32 = arith.constant 0 : i32
    %c0_i32_0 = arith.constant 0 : i32
    %c0_i32_1 = arith.constant 0 : i32
    return %c0_i32, %c0_i32_0 : i32, i32
  }
  func.func @transform_7(%arg0: i32) -> (i32, i32) {
    %c0_i32 = arith.constant 0 : i32
    %c0_i32_0 = arith.constant 0 : i32
    %c0_i32_1 = arith.constant 0 : i32
    return %c0_i32, %c0_i32_0 : i32, i32
  }
  func.func @transform_8(%arg0: i32) -> (i32, i32) {
    %c0_i32 = arith.constant 0 : i32
    %c0_i32_0 = arith.constant 0 : i32
    %c0_i32_1 = arith.constant 0 : i32
    return %c0_i32, %c0_i32_0 : i32, i32
  }
  func.func @transform_9(%arg0: i32) -> (i32, i32) {
    %c0_i32 = arith.constant 0 : i32
    %c0_i32_0 = arith.constant 0 : i32
    %c0_i32_1 = arith.constant 0 : i32
    return %c0_i32, %c0_i32_0 : i32, i32
  }
  func.func @transform_10(%arg0: i32) -> (i32, i32) {
    %c0_i32 = arith.constant 0 : i32
    %c0_i32_0 = arith.constant 0 : i32
    %c0_i32_1 = arith.constant 0 : i32
    return %c0_i32, %c0_i32_0 : i32, i32
  }
  func.func @transform_11(%arg0: i32) -> (i32, i32) {
    %c0_i32 = arith.constant 0 : i32
    %c0_i32_0 = arith.constant 0 : i32
    %c0_i32_1 = arith.constant 0 : i32
    return %c0_i32, %c0_i32_0 : i32, i32
  }
  func.func @transform_12(%arg0: i32) -> (i32, i32) {
    %c0_i32 = arith.constant 0 : i32
    %c0_i32_0 = arith.constant 0 : i32
    %c0_i32_1 = arith.constant 0 : i32
    return %c0_i32, %c0_i32_0 : i32, i32
  }
  func.func @transform_13(%arg0: i32) -> (i32, i32) {
    %c0_i32 = arith.constant 0 : i32
    %c0_i32_0 = arith.constant 0 : i32
    %c0_i32_1 = arith.constant 0 : i32
    return %c0_i32, %c0_i32_0 : i32, i32
  }
  func.func @transform_14(%arg0: i32) -> (i32, i32) {
    %c0_i32 = arith.constant 0 : i32
    %c0_i32_0 = arith.constant 0 : i32
    %c0_i32_1 = arith.constant 0 : i32
    return %c0_i32, %c0_i32_0 : i32, i32
  }
  func.func @transform_15(%arg0: i32) -> (i32, i32) {
    %c0_i32 = arith.constant 0 : i32
    %c0_i32_0 = arith.constant 0 : i32
    %c0_i32_1 = arith.constant 0 : i32
    return %c0_i32, %c0_i32_0 : i32, i32
  }
  func.func @transform_16(%arg0: i32) -> (i32, i32) {
    %c0_i32 = arith.constant 0 : i32
    %c0_i32_0 = arith.constant 0 : i32
    %c0_i32_1 = arith.constant 0 : i32
    return %c0_i32, %c0_i32_0 : i32, i32
  }
  func.func @transform_17(%arg0: i32) -> (i32, i32) {
    %c0_i32 = arith.constant 0 : i32
    %c0_i32_0 = arith.constant 0 : i32
    return %c0_i32, %arg0 : i32, i32
  }
}

</mosaic_0001>

<bundles_post_ra>
// kernel: tpu_custom_call.1
= control target key start
LH: loop header
LB: loop body
LE: loop exit
PB: predicated region body
PF: predicated region fallthrough
CT: control target
= control target key end

     0   :  { %s5210_s0 = inlined_call_operand.vmem [shape: f32[128,24], index: 0, kind: input, shape index: {}]   ;;  %s5211_s1 = inlined_call_operand.vmem [shape: f32[128,8], index: 1, kind: input, shape index: {}]   ;;  %s5212_s2 = inlined_call_operand.vmem [shape: f32[24,256], index: 2, kind: input, shape index: {}]   ;;  %s5213_s3 = inlined_call_operand.vmem [shape: f32[8,256], index: 3, kind: input, shape index: {}]   ;;  %s5214_s4 = inlined_call_operand.vmem [shape: f32[1,256], index: 4, kind: input, shape index: {}]   ;;  %s5215_s5 = inlined_call_operand.vmem [shape: f32[1,256], index: 5, kind: input, shape index: {}]   ;;  %s5216_s6 = inlined_call_operand.vmem [shape: f32[1,256], index: 6, kind: input, shape index: {}]   ;;  %s5217_s7 = inlined_call_operand.hbm [shape: f32[256,256], index: 7, kind: input, shape index: {}]   ;;  %s5218_s8 = inlined_call_operand.vmem [shape: f32[1,256], index: 8, kind: input, shape index: {}]   ;;  %s5219_s9 = inlined_call_operand.vmem [shape: f32[1,256], index: 9, kind: input, shape index: {}]   ;;  %s5220_s10 = inlined_call_operand.vmem [shape: f32[1,256], index: 10, kind: input, shape index: {}]   ;;  %s5221_s11 = inlined_call_operand.hbm [shape: f32[256,256], index: 11, kind: input, shape index: {}]   ;;  %s5222_s12 = inlined_call_operand.vmem [shape: f32[1,256], index: 12, kind: input, shape index: {}]   ;;  %s5223_s13 = inlined_call_operand.vmem [shape: f32[1,256], index: 13, kind: input, shape index: {}]   ;;  %s5224_s14 = inlined_call_operand.vmem [shape: f32[1,256], index: 14, kind: input, shape index: {}]   ;;  %s5225_s15 = inlined_call_operand.vmem [shape: f32[1,256], index: 15, kind: input, shape index: {}]   ;;  %s5226_s16 = inlined_call_operand.<no memory space> [shape: f32[1,1], index: 16, kind: input, shape index: {}]   ;;  %s5227_s17 = inlined_call_operand.hbm [shape: f32[1,128], index: 17, kind: output, shape index: {}]  }
   0x1   :  { %5230 = sst [smem:[#allocation12_spill]] %s5210_s0  ;;  %v22_v0 = vstv %s5226_s16 }
   0x2   :  { %5231 = sst [smem:[#allocation13_spill]] %s5211_s1  ;;  %23 = vst [vmem:[#allocation2] sm:$0x1] %v22_v0 }
   0x3   :  { %24 = vsyncpa [#allocation4], 0 }
   0x4   :  { %25 = vsyncpa [#allocation7], 0 }
   0x5   :  { %26 = vsyncpa [#allocation5], 0  ;;  %s45_s28 = sshll.u32 %s5217_s7, 4  ;;  %s3319_s29 = smov [#allocation3]   ;;  %s46_s28 = int_to_ptr.hbm [resolvable:$true] %s45_s28 }
   0x6   :  { %s47_s0 = sshll.u32 %s3319_s29, 4  ;;  %s64_s19 = sshll.u32 %s5221_s11, 4  ;;  %s48_s0 = int_to_ptr.vmem [resolvable:$true] %s47_s0  ;;  %s65_s19 = int_to_ptr.hbm [resolvable:$true] %s64_s19 }
   0x7   :  { %s3320_s1 = smov 256   ;;  %s3321_s20 = smov 16  }
   0x8   :  { %53 = dma.hbm_to_vmem [thread:$0]  %s46_s28, 8192, %s48_s0, [#allocation4], %s3320_s1, %s3320_s1, %s3321_s20  }
   0x9   :  { %s3322_s16 = smov [#allocation6]  }
   0xa   :  { %s66_s21 = sshll.u32 %s3322_s16, 4  ;;  %s67_s21 = int_to_ptr.vmem [resolvable:$true] %s66_s21 }
   0xb   :  { %72 = dma.hbm_to_vmem [thread:$0]  %s65_s19, 8192, %s67_s21, [#allocation7], %s3320_s1, %s3320_s1, %s3321_s20  }
   0xc   :  { %3313 = dma.done.wait [#allocation4], 8192  }
   0xd   :  { %3314 = vsyncadd [#allocation4], 4294959104 }
   0xe   :  { %3315 = dma.done.wait [#allocation7], 8192  }
   0xf   :  { %3316 = vsyncadd [#allocation7], 4294959104  ;;  %v111_v1 = vld [vmem:[%s5212_s2 + $0x20] sm:$0xff]  ;;  %v112_v2 = vld [vmem:[%s5212_s2 + $0x28] sm:$0xff]  ;;  %s5232_s7 = sld [smem:[#allocation12_spill]]  ;;  %vm310_vm0 = vcmask 195584  }
  0x10   :  { %v109_v3 = vld [vmem:[%s5212_s2 + $0x10] sm:$0xff]  ;;  %372 = vmatpush.msra.mxu2 %v111_v1  ;;  %437 = vmatpush.msra.mxu3 %v112_v2  ;;  %v110_v4 = vld [vmem:[%s5212_s2 + $0x18] sm:$0xff]  ;;  %v107_v5 = vld [vmem:[%s5212_s2] sm:$0xff]  ;;  %vm131_vm1 = vcmask 64512  }
  0x11   :  { %v108_v6 = vld [vmem:[%s5212_s2 + $0x8] sm:$0xff]  ;;  %v129_v7 = vld [vmem:[%s5213_s3] sm:$0xff]  ;;  %s5233_s2 = sld [smem:[#allocation13_spill]] }
  0x12   :  { %v130_v8 = vld [vmem:[%s5213_s3 + $0x8] sm:$0xff]  ;;  %373 = vmatpush.msra.mxu2 %v109_v3  ;;  %438 = vmatpush.msra.mxu3 %v110_v4  ;;  %v489_v43 = vld [vmem:[%s5214_s4] sm:$0x3]  ;;  %v1120_v3 = vld [vmem:[#allocation3 + $0xf0] sm:$0xff]  ;;  %s3059_s3 = sshll.u32 %s5227_s17, 4  ;;  %s3060_s3 = int_to_ptr.hbm [resolvable:$true] %s3059_s3 }
  0x13   :  { %195 = vmatpush.msra.mxu0 %v129_v7  ;;  %260 = vmatpush.msra.mxu1 %v130_v8  ;;  %v3612_v44 = vperm.slane %v489_v43, 0  ;;  %v3614_v45 = vperm.slane %v489_v43, 1  ;;  %v1121_v54 = vld [vmem:[#allocation3 + $0xf8] sm:$0xff]  ;;  %v1152_v4 = vld [vmem:[#allocation3 + $0x1f0] sm:$0xff] }
  0x14   :  { %374 = vmatpush.msra.mxu2 %v107_v5  ;;  %439 = vmatpush.msra.mxu3 %v108_v6  ;;  %v1153_v55 = vld [vmem:[#allocation3 + $0x1f8] sm:$0xff]  ;;  %v1119_v5 = vld [vmem:[#allocation3 + $0xe8] sm:$0xff] }
  0x15   :  { %v91_v9 = vld [vmem:[%s5232_s7] sm:$0xff]  ;;  %v92_v11 = vld [vmem:[%s5232_s7 + $0x8] sm:$0xff]  ;;  %v93_v13 = vld [vmem:[%s5232_s7 + $0x10] sm:$0xff]  ;;  %1160 = vmatpush.msrb.mxu0 %v1120_v3  ;;  %1225 = vmatpush.msrb.mxu1 %v1152_v4 }
  0x16   :  { %3102 = vmatmul.msk.f32.vlgmr.msra.gmra.mxu2 %vm310_vm0, %v91_v9  ;;  %3118 = vmatmul.msk.f32.vlgmr.msra.gmra.mxu3 %vm310_vm0, %v91_v9  ;;  %v94_v15 = vld [vmem:[%s5232_s7 + $0x18] sm:$0xff]  ;;  %v95_v17 = vld [vmem:[%s5232_s7 + $0x20] sm:$0xff]  ;;  %v96_v19 = vld [vmem:[%s5232_s7 + $0x28] sm:$0xff] }
  0x17   :  { %v113_v10 = vld [vmem:[%s5233_s2] sm:$0xff]  ;;  %v114_v12 = vld [vmem:[%s5233_s2 + $0x8] sm:$0xff]  ;;  %v115_v14 = vld [vmem:[%s5233_s2 + $0x10] sm:$0xff]  ;;  %1290 = vmatpush.msrb.mxu2 %v1121_v54  ;;  %1355 = vmatpush.msrb.mxu3 %v1153_v55 }
  0x18   :  { %3070 = vmatmul.msk.f32.vlgmr.msra.gmra.mxu0 %vm131_vm1, %v113_v10  ;;  %3086 = vmatmul.msk.f32.vlgmr.msra.gmra.mxu1 %vm131_vm1, %v113_v10  ;;  %v116_v16 = vld [vmem:[%s5233_s2 + $0x18] sm:$0xff]  ;;  %v117_v18 = vld [vmem:[%s5233_s2 + $0x20] sm:$0xff]  ;;  %v118_v20 = vld [vmem:[%s5233_s2 + $0x28] sm:$0xff] }
  0x19   :  { %v97_v21 = vld [vmem:[%s5232_s7 + $0x30] sm:$0xff]  ;;  %v98_v23 = vld [vmem:[%s5232_s7 + $0x38] sm:$0xff]  ;;  %v99_v25 = vld [vmem:[%s5232_s7 + $0x40] sm:$0xff]  ;;  %1291 = vmatpush.msrb.mxu2 %v1119_v5 }
  0x1a   :  { %v119_v22 = vld [vmem:[%s5233_s2 + $0x30] sm:$0xff]  ;;  %v120_v24 = vld [vmem:[%s5233_s2 + $0x38] sm:$0xff]  ;;  %v121_v26 = vld [vmem:[%s5233_s2 + $0x40] sm:$0xff] }
  0x1b   :  { %v100_v27 = vld [vmem:[%s5232_s7 + $0x48] sm:$0xff]  ;;  %v101_v29 = vld [vmem:[%s5232_s7 + $0x50] sm:$0xff]  ;;  %v102_v31 = vld [vmem:[%s5232_s7 + $0x58] sm:$0xff] }
  0x1c   :  { %v122_v28 = vld [vmem:[%s5233_s2 + $0x48] sm:$0xff]  ;;  %v123_v30 = vld [vmem:[%s5233_s2 + $0x50] sm:$0xff]  ;;  %v124_v32 = vld [vmem:[%s5233_s2 + $0x58] sm:$0xff] }
  0x1d   :  { %v103_v33 = vld [vmem:[%s5232_s7 + $0x60] sm:$0xff]  ;;  %v104_v35 = vld [vmem:[%s5232_s7 + $0x68] sm:$0xff]  ;;  %v105_v37 = vld [vmem:[%s5232_s7 + $0x70] sm:$0xff] }
  0x1e   :  { %3103 = vmatmul.msk.f32.gmra.mxu2 %vm310_vm0, %v92_v11  ;;  %3119 = vmatmul.msk.f32.gmra.mxu3 %vm310_vm0, %v92_v11  ;;  %v125_v34 = vld [vmem:[%s5233_s2 + $0x60] sm:$0xff]  ;;  %v126_v36 = vld [vmem:[%s5233_s2 + $0x68] sm:$0xff]  ;;  %v127_v38 = vld [vmem:[%s5233_s2 + $0x70] sm:$0xff] }
  0x1f   :  { %v106_v39 = vld [vmem:[%s5232_s7 + $0x78] sm:$0xff]  ;;  %v1151_v6 = vld [vmem:[#allocation3 + $0x1e8] sm:$0xff] }
  0x20   :  { %3071 = vmatmul.msk.f32.gmra.mxu0 %vm131_vm1, %v114_v12  ;;  %3087 = vmatmul.msk.f32.gmra.mxu1 %vm131_vm1, %v114_v12  ;;  %v128_v40 = vld [vmem:[%s5233_s2 + $0x78] sm:$0xff] }
  0x21   :  { %1356 = vmatpush.msrb.mxu3 %v1151_v6 }
  0x26   :  { %3104 = vmatmul.msk.f32.gmra.mxu2 %vm310_vm0, %v93_v13  ;;  %3120 = vmatmul.msk.f32.gmra.mxu3 %vm310_vm0, %v93_v13 }
  0x28   :  { %3072 = vmatmul.msk.f32.gmra.mxu0 %vm131_vm1, %v115_v14  ;;  %3088 = vmatmul.msk.f32.gmra.mxu1 %vm131_vm1, %v115_v14 }
  0x2e   :  { %3105 = vmatmul.msk.f32.gmra.mxu2 %vm310_vm0, %v94_v15  ;;  %3121 = vmatmul.msk.f32.gmra.mxu3 %vm310_vm0, %v94_v15 }
  0x30   :  { %3073 = vmatmul.msk.f32.gmra.mxu0 %vm131_vm1, %v116_v16  ;;  %3089 = vmatmul.msk.f32.gmra.mxu1 %vm131_vm1, %v116_v16 }
  0x36   :  { %3106 = vmatmul.msk.f32.gmra.mxu2 %vm310_vm0, %v95_v17  ;;  %3122 = vmatmul.msk.f32.gmra.mxu3 %vm310_vm0, %v95_v17 }
  0x38   :  { %3074 = vmatmul.msk.f32.gmra.mxu0 %vm131_vm1, %v117_v18  ;;  %3090 = vmatmul.msk.f32.gmra.mxu1 %vm131_vm1, %v117_v18 }
  0x3e   :  { %3107 = vmatmul.msk.f32.gmra.mxu2 %vm310_vm0, %v96_v19  ;;  %3123 = vmatmul.msk.f32.gmra.mxu3 %vm310_vm0, %v96_v19  ;;  %v1118_v19 = vld [vmem:[#allocation3 + $0xe0] sm:$0xff] }
  0x3f   :  { %1161 = vmatpush.msrb.mxu0 %v1118_v19 }
  0x40   :  { %3075 = vmatmul.msk.f32.gmra.mxu0 %vm131_vm1, %v118_v20  ;;  %3091 = vmatmul.msk.f32.gmra.mxu1 %vm131_vm1, %v118_v20  ;;  %v1150_v20 = vld [vmem:[#allocation3 + $0x1e0] sm:$0xff] }
  0x41   :  { %1226 = vmatpush.msrb.mxu1 %v1150_v20 }
  0x46   :  { %3108 = vmatmul.msk.f32.gmra.mxu2 %vm310_vm0, %v97_v21  ;;  %3124 = vmatmul.msk.f32.gmra.mxu3 %vm310_vm0, %v97_v21  ;;  %v1117_v21 = vld [vmem:[#allocation3 + $0xd8] sm:$0xff] }
  0x47   :  { %1292 = vmatpush.msrb.mxu2 %v1117_v21 }
  0x48   :  { %3076 = vmatmul.msk.f32.gmra.mxu0 %vm131_vm1, %v119_v22  ;;  %3092 = vmatmul.msk.f32.gmra.mxu1 %vm131_vm1, %v119_v22  ;;  %v1149_v22 = vld [vmem:[#allocation3 + $0x1d8] sm:$0xff] }
  0x49   :  { %1357 = vmatpush.msrb.mxu3 %v1149_v22 }
  0x4e   :  { %3109 = vmatmul.msk.f32.gmra.mxu2 %vm310_vm0, %v98_v23  ;;  %3125 = vmatmul.msk.f32.gmra.mxu3 %vm310_vm0, %v98_v23 }
  0x50   :  { %3077 = vmatmul.msk.f32.gmra.mxu0 %vm131_vm1, %v120_v24  ;;  %3093 = vmatmul.msk.f32.gmra.mxu1 %vm131_vm1, %v120_v24 }
  0x56   :  { %3110 = vmatmul.msk.f32.gmra.mxu2 %vm310_vm0, %v99_v25  ;;  %3126 = vmatmul.msk.f32.gmra.mxu3 %vm310_vm0, %v99_v25 }
  0x58   :  { %3078 = vmatmul.msk.f32.gmra.mxu0 %vm131_vm1, %v121_v26  ;;  %3094 = vmatmul.msk.f32.gmra.mxu1 %vm131_vm1, %v121_v26 }
  0x5e   :  { %3111 = vmatmul.msk.f32.gmra.mxu2 %vm310_vm0, %v100_v27  ;;  %3127 = vmatmul.msk.f32.gmra.mxu3 %vm310_vm0, %v100_v27 }
  0x60   :  { %3079 = vmatmul.msk.f32.gmra.mxu0 %vm131_vm1, %v122_v28  ;;  %3095 = vmatmul.msk.f32.gmra.mxu1 %vm131_vm1, %v122_v28 }
  0x66   :  { %3112 = vmatmul.msk.f32.gmra.mxu2 %vm310_vm0, %v101_v29  ;;  %3128 = vmatmul.msk.f32.gmra.mxu3 %vm310_vm0, %v101_v29 }
  0x68   :  { %3080 = vmatmul.msk.f32.gmra.mxu0 %vm131_vm1, %v123_v30  ;;  %3096 = vmatmul.msk.f32.gmra.mxu1 %vm131_vm1, %v123_v30 }
  0x6e   :  { %3113 = vmatmul.msk.f32.gmra.mxu2 %vm310_vm0, %v102_v31  ;;  %3129 = vmatmul.msk.f32.gmra.mxu3 %vm310_vm0, %v102_v31 }
  0x70   :  { %3081 = vmatmul.msk.f32.gmra.mxu0 %vm131_vm1, %v124_v32  ;;  %3097 = vmatmul.msk.f32.gmra.mxu1 %vm131_vm1, %v124_v32 }
  0x76   :  { %3114 = vmatmul.msk.f32.gmra.mxu2 %vm310_vm0, %v103_v33  ;;  %3130 = vmatmul.msk.f32.gmra.mxu3 %vm310_vm0, %v103_v33 }
  0x78   :  { %3082 = vmatmul.msk.f32.gmra.mxu0 %vm131_vm1, %v125_v34  ;;  %3098 = vmatmul.msk.f32.gmra.mxu1 %vm131_vm1, %v125_v34 }
  0x7e   :  { %3115 = vmatmul.msk.f32.gmra.mxu2 %vm310_vm0, %v104_v35  ;;  %3131 = vmatmul.msk.f32.gmra.mxu3 %vm310_vm0, %v104_v35  ;;  %v1116_v35 = vld [vmem:[#allocation3 + $0xd0] sm:$0xff] }
  0x7f   :  { %1162 = vmatpush.msrb.mxu0 %v1116_v35 }
  0x80   :  { %3083 = vmatmul.msk.f32.gmra.mxu0 %vm131_vm1, %v126_v36  ;;  %3099 = vmatmul.msk.f32.gmra.mxu1 %vm131_vm1, %v126_v36  ;;  %v1148_v36 = vld [vmem:[#allocation3 + $0x1d0] sm:$0xff] }
  0x81   :  { %1227 = vmatpush.msrb.mxu1 %v1148_v36 }
  0x86   :  { %3116 = vmatmul.msk.f32.gmra.mxu2 %vm310_vm0, %v105_v37  ;;  %3132 = vmatmul.msk.f32.gmra.mxu3 %vm310_vm0, %v105_v37  ;;  %v1115_v37 = vld [vmem:[#allocation3 + $0xc8] sm:$0xff] }
  0x87   :  { %1293 = vmatpush.msrb.mxu2 %v1115_v37 }
  0x88   :  { %3084 = vmatmul.msk.f32.gmra.mxu0 %vm131_vm1, %v127_v38  ;;  %3100 = vmatmul.msk.f32.gmra.mxu1 %vm131_vm1, %v127_v38 }
  0x8e   :  { %3117 = vmatmul.msk.f32.gmra.mxu2 %vm310_vm0, %v106_v39  ;;  %3133 = vmatmul.msk.f32.gmra.mxu3 %vm310_vm0, %v106_v39  ;;  %v1147_v39 = vld [vmem:[#allocation3 + $0x1c8] sm:$0xff] }
  0x8f   :  { %1358 = vmatpush.msrb.mxu3 %v1147_v39 }
  0x90   :  { %3085 = vmatmul.msk.f32.gmra.mxu0 %vm131_vm1, %v128_v40  ;;  %3101 = vmatmul.msk.f32.gmra.mxu1 %vm131_vm1, %v128_v40 }
  0x95   :  { %v197_v41 = vpop.f32.mrf.mxu0  ;;  %v262_v42 = vpop.f32.mrf.mxu1 }
  0x99   :  { %v376_v46 = vpop.f32.mrf.mxu2  ;;  %v441_v47 = vpop.f32.mrf.mxu3 }
  0x9a   :  { %v377_v48 = vadd.f32 %v376_v46, %v197_v41  ;;  %v442_v49 = vadd.f32 %v441_v47, %v262_v42 }
  0x9c   :  { %v3617_v50 = vadd.f32 %v3612_v44, %v377_v48  ;;  %v3620_v51 = vadd.f32 %v3614_v45, %v442_v49 }
  0x9d   :  { %v200_v52 = vpop.f32.mrf.mxu0  ;;  %v265_v53 = vpop.f32.mrf.mxu1 }
  0x9e   :  { %v529_v56 = vadd.f32 %v3620_v51, %v3617_v50  ;;  %v600_v61 = vmul.f32 %v3617_v50, %v3617_v50  ;;  %v601_v62 = vmul.f32 %v3620_v51, %v3620_v51 }
  0xa0   :  { %530 = vadd.xlane.f32.xlu0 %v529_v56  ;;  %v632_v8 = vadd.f32 %v601_v62, %v600_v61  ;;  %v1114_v56 = vld [vmem:[#allocation3 + $0xc0] sm:$0xff] }
  0xa1   :  { %v379_v57 = vpop.f32.mrf.mxu2  ;;  %v444_v58 = vpop.f32.mrf.mxu3  ;;  %1163 = vmatpush.msrb.mxu0 %v1114_v56 }
  0xa2   :  { %v380_v59 = vadd.f32 %v379_v57, %v200_v52  ;;  %v445_v60 = vadd.f32 %v444_v58, %v265_v53  ;;  %v1146_v57 = vld [vmem:[#allocation3 + $0x1c0] sm:$0xff]  ;;  %v1113_v58 = vld [vmem:[#allocation3 + $0xb8] sm:$0xff] }
  0xa3   :  { %1228 = vmatpush.msrb.mxu1 %v1146_v57  ;;  %1294 = vmatpush.msrb.mxu2 %v1113_v58 }
  0xa4   :  { %v3629_v63 = vadd.f32 %v3612_v44, %v380_v59  ;;  %v3632_v0 = vadd.f32 %v3614_v45, %v445_v60  ;;  %v1145_v59 = vld [vmem:[#allocation3 + $0x1b8] sm:$0xff] }
  0xa5   :  { %v203_v1 = vpop.f32.mrf.mxu0  ;;  %v268_v2 = vpop.f32.mrf.mxu1  ;;  %1359 = vmatpush.msrb.mxu3 %v1145_v59 }
  0xa6   :  { %v532_v7 = vadd.f32 %v3632_v0, %v3629_v63  ;;  %v602_v13 = vmul.f32 %v3629_v63, %v3629_v63  ;;  %v603_v14 = vmul.f32 %v3632_v0, %v3632_v0 }
  0xa8   :  { %533 = vadd.xlane.f32.xlu1 %v532_v7  ;;  %633 = vadd.xlane.f32.xlu0 %v632_v8  ;;  %v635_v24 = vadd.f32 %v603_v14, %v602_v13  ;;  %v1143_v13 = vld [vmem:[#allocation3 + $0x1a8] sm:$0xff] }
  0xa9   :  { %v382_v9 = vpop.f32.mrf.mxu2  ;;  %v447_v10 = vpop.f32.mrf.mxu3  ;;  %1360 = vmatpush.msrb.mxu3 %v1143_v13 }
  0xaa   :  { %v383_v11 = vadd.f32 %v382_v9, %v203_v1  ;;  %v448_v12 = vadd.f32 %v447_v10, %v268_v2  ;;  %v1112_v10 = vld [vmem:[#allocation3 + $0xb0] sm:$0xff] }
  0xab   :  { %1164 = vmatpush.msrb.mxu0 %v1112_v10  ;;  %v1105_v10 = vld [vmem:[#allocation3 + $0x78] sm:$0xff] }
  0xac   :  { %v3641_v15 = vadd.f32 %v3612_v44, %v383_v11  ;;  %v3644_v16 = vadd.f32 %v3614_v45, %v448_v12  ;;  %v1144_v11 = vld [vmem:[#allocation3 + $0x1b0] sm:$0xff]  ;;  %v1111_v12 = vld [vmem:[#allocation3 + $0xa8] sm:$0xff] }
  0xad   :  { %v206_v17 = vpop.f32.mrf.mxu0  ;;  %v271_v18 = vpop.f32.mrf.mxu1  ;;  %1229 = vmatpush.msrb.mxu1 %v1144_v11  ;;  %1295 = vmatpush.msrb.mxu2 %v1111_v12  ;;  %v1137_v11 = vld [vmem:[#allocation3 + $0x178] sm:$0xff] }
  0xae   :  { %v535_v23 = vadd.f32 %v3644_v16, %v3641_v15  ;;  %v604_v27 = vmul.f32 %v3641_v15, %v3641_v15  ;;  %v605_v28 = vmul.f32 %v3644_v16, %v3644_v16 }
  0xb0   :  { %536 = vadd.xlane.f32.xlu2 %v535_v23  ;;  %636 = vadd.xlane.f32.xlu1 %v635_v24  ;;  %v638_v38 = vadd.f32 %v605_v28, %v604_v27  ;;  %v1110_v28 = vld [vmem:[#allocation3 + $0xa0] sm:$0xff] }
  0xb1   :  { %v385_v25 = vpop.f32.mrf.mxu2  ;;  %v450_v26 = vpop.f32.mrf.mxu3  ;;  %1165 = vmatpush.msrb.mxu0 %v1110_v28  ;;  %v1104_v28 = vld [vmem:[#allocation3 + $0x70] sm:$0xff] }
  0xb2   :  { %v386_v29 = vadd.f32 %v385_v25, %v206_v17  ;;  %v451_v30 = vadd.f32 %v450_v26, %v271_v18 }
  0xb4   :  { %v3653_v31 = vadd.f32 %v3612_v44, %v386_v29  ;;  %v3656_v32 = vadd.f32 %v3614_v45, %v451_v30  ;;  %v1142_v29 = vld [vmem:[#allocation3 + $0x1a0] sm:$0xff]  ;;  %v1109_v30 = vld [vmem:[#allocation3 + $0x98] sm:$0xff] }
  0xb5   :  { %v209_v33 = vpop.f32.mrf.mxu0  ;;  %v274_v34 = vpop.f32.mrf.mxu1  ;;  %1230 = vmatpush.msrb.mxu1 %v1142_v29  ;;  %1296 = vmatpush.msrb.mxu2 %v1109_v30  ;;  %v1136_v29 = vld [vmem:[#allocation3 + $0x170] sm:$0xff]  ;;  %v1103_v30 = vld [vmem:[#allocation3 + $0x68] sm:$0xff] }
  0xb6   :  { %v538_v40 = vadd.f32 %v3656_v32, %v3653_v31  ;;  %v606_v41 = vmul.f32 %v3653_v31, %v3653_v31  ;;  %v607_v42 = vmul.f32 %v3656_v32, %v3656_v32 }
  0xb8   :  { %639 = vadd.xlane.f32.xlu2 %v638_v38  ;;  %539 = vadd.xlane.f32.xlu0 %v538_v40  ;;  %v641_v43 = vadd.f32 %v607_v42, %v606_v41 }
  0xb9   :  { %v388_v46 = vpop.f32.mrf.mxu2  ;;  %v453_v47 = vpop.f32.mrf.mxu3 }
  0xba   :  { %v389_v48 = vadd.f32 %v388_v46, %v209_v33  ;;  %v454_v49 = vadd.f32 %v453_v47, %v274_v34  ;;  %642 = vadd.xlane.f32.xlu1 %v641_v43  ;;  %v1141_v33 = vld [vmem:[#allocation3 + $0x198] sm:$0xff] }
  0xbb   :  { %1361 = vmatpush.msrb.mxu3 %v1141_v33  ;;  %v1135_v33 = vld [vmem:[#allocation3 + $0x168] sm:$0xff] }
  0xbc   :  { %v3665_v52 = vadd.f32 %v3612_v44, %v389_v48  ;;  %v3668_v53 = vadd.f32 %v3614_v45, %v454_v49  ;;  %v1108_v48 = vld [vmem:[#allocation3 + $0x90] sm:$0xff] }
  0xbd   :  { %v212_v54 = vpop.f32.mrf.mxu0  ;;  %v277_v55 = vpop.f32.mrf.mxu1  ;;  %v1140_v49 = vld [vmem:[#allocation3 + $0x190] sm:$0xff]  ;;  %1166 = vmatpush.msrb.mxu0 %v1108_v48 }
  0xbe   :  { %v541_v60 = vadd.f32 %v3668_v53, %v3665_v52  ;;  %v608_v61 = vmul.f32 %v3665_v52, %v3665_v52  ;;  %v609_v62 = vmul.f32 %v3668_v53, %v3668_v53  ;;  %1231 = vmatpush.msrb.mxu1 %v1140_v49 }
  0xc0   :  { %542 = vadd.xlane.f32.xlu2 %v541_v60  ;;  %v644_v1 = vadd.f32 %v609_v62, %v608_v61 }
  0xc1   :  { %v391_v2 = vpop.f32.mrf.mxu2  ;;  %v456_v3 = vpop.f32.mrf.mxu3 }
  0xc2   :  { %v392_v4 = vadd.f32 %v391_v2, %v212_v54  ;;  %v457_v5 = vadd.f32 %v456_v3, %v277_v55  ;;  %645 = vadd.xlane.f32.xlu0 %v644_v1  ;;  %v1107_v54 = vld [vmem:[#allocation3 + $0x88] sm:$0xff] }
  0xc3   :  { %v1139_v55 = vld [vmem:[#allocation3 + $0x188] sm:$0xff]  ;;  %1297 = vmatpush.msrb.mxu2 %v1107_v54  ;;  %v1102_v54 = vld [vmem:[#allocation3 + $0x60] sm:$0xff] }
  0xc4   :  { %v3677_v6 = vadd.f32 %v3612_v44, %v392_v4  ;;  %v3680_v7 = vadd.f32 %v3614_v45, %v457_v5  ;;  %1362 = vmatpush.msrb.mxu3 %v1139_v55  ;;  %v1134_v55 = vld [vmem:[#allocation3 + $0x160] sm:$0xff] }
  0xc5   :  { %v215_v8 = vpop.f32.mrf.mxu0  ;;  %v280_v9 = vpop.f32.mrf.mxu1  ;;  %1298 = vmatpush.msrb.mxu2 %v1105_v10 }
  0xc6   :  { %v544_v14 = vadd.f32 %v3680_v7, %v3677_v6  ;;  %v610_v17 = vmul.f32 %v3677_v6, %v3677_v6  ;;  %v611_v18 = vmul.f32 %v3680_v7, %v3680_v7  ;;  %1363 = vmatpush.msrb.mxu3 %v1137_v11 }
  0xc7   :  { %1299 = vmatpush.msrb.mxu2 %v1103_v30 }
  0xc8   :  { %545 = vadd.xlane.f32.xlu1 %v544_v14  ;;  %v647_v19 = vadd.f32 %v611_v18, %v610_v17  ;;  %1364 = vmatpush.msrb.mxu3 %v1135_v33 }
  0xc9   :  { %v394_v20 = vpop.f32.mrf.mxu2  ;;  %v459_v21 = vpop.f32.mrf.mxu3 }
  0xca   :  { %v395_v22 = vadd.f32 %v394_v20, %v215_v8  ;;  %v460_v23 = vadd.f32 %v459_v21, %v280_v9  ;;  %648 = vadd.xlane.f32.xlu2 %v647_v19  ;;  %v1106_v8 = vld [vmem:[#allocation3 + $0x80] sm:$0xff] }
  0xcb   :  { %v1138_v9 = vld [vmem:[#allocation3 + $0x180] sm:$0xff]  ;;  %1167 = vmatpush.msrb.mxu0 %v1106_v8 }
  0xcc   :  { %v3689_v24 = vadd.f32 %v3612_v44, %v395_v22  ;;  %v3692_v25 = vadd.f32 %v3614_v45, %v460_v23  ;;  %1232 = vmatpush.msrb.mxu1 %v1138_v9 }
  0xcd   :  { %v218_v26 = vpop.f32.mrf.mxu0  ;;  %v283_v27 = vpop.f32.mrf.mxu1  ;;  %1168 = vmatpush.msrb.mxu0 %v1104_v28 }
  0xce   :  { %v547_v34 = vadd.f32 %v3692_v25, %v3689_v24  ;;  %v612_v35 = vmul.f32 %v3689_v24, %v3689_v24  ;;  %v613_v36 = vmul.f32 %v3692_v25, %v3692_v25  ;;  %1233 = vmatpush.msrb.mxu1 %v1136_v29 }
  0xcf   :  { %1169 = vmatpush.msrb.mxu0 %v1102_v54 }
  0xd0   :  { %548 = vadd.xlane.f32.xlu0 %v547_v34  ;;  %v650_v37 = vadd.f32 %v613_v36, %v612_v35  ;;  %1234 = vmatpush.msrb.mxu1 %v1134_v55 }
  0xd1   :  { %v397_v38 = vpop.f32.mrf.mxu2  ;;  %v462_v39 = vpop.f32.mrf.mxu3 }
  0xd2   :  { %v398_v40 = vadd.f32 %v397_v38, %v218_v26  ;;  %v463_v41 = vadd.f32 %v462_v39, %v283_v27  ;;  %651 = vadd.xlane.f32.xlu1 %v650_v37 }
  0xd4   :  { %v3701_v42 = vadd.f32 %v3612_v44, %v398_v40  ;;  %v3704_v43 = vadd.f32 %v3614_v45, %v463_v41 }
  0xd5   :  { %v221_v46 = vpop.f32.mrf.mxu0  ;;  %v286_v47 = vpop.f32.mrf.mxu1 }
  0xd6   :  { %v550_v56 = vadd.f32 %v3704_v43, %v3701_v42  ;;  %v614_v57 = vmul.f32 %v3701_v42, %v3701_v42  ;;  %v615_v58 = vmul.f32 %v3704_v43, %v3704_v43 }
  0xd8   :  { %551 = vadd.xlane.f32.xlu2 %v550_v56  ;;  %v653_v59 = vadd.f32 %v615_v58, %v614_v57  ;;  %v1101_v56 = vld [vmem:[#allocation3 + $0x58] sm:$0xff] }
  0xd9   :  { %v400_v60 = vpop.f32.mrf.mxu2  ;;  %v465_v61 = vpop.f32.mrf.mxu3  ;;  %v1133_v57 = vld [vmem:[#allocation3 + $0x158] sm:$0xff]  ;;  %1300 = vmatpush.msrb.mxu2 %v1101_v56 }
  0xda   :  { %v401_v62 = vadd.f32 %v400_v60, %v221_v46  ;;  %v466_v1 = vadd.f32 %v465_v61, %v286_v47  ;;  %654 = vadd.xlane.f32.xlu0 %v653_v59  ;;  %1365 = vmatpush.msrb.mxu3 %v1133_v57 }
  0xdc   :  { %v3713_v2 = vadd.f32 %v3612_v44, %v401_v62  ;;  %v3716_v3 = vadd.f32 %v3614_v45, %v466_v1 }
  0xdd   :  { %v224_v4 = vpop.f32.mrf.mxu0  ;;  %v289_v5 = vpop.f32.mrf.mxu1 }
  0xde   :  { %v553_v12 = vadd.f32 %v3716_v3, %v3713_v2  ;;  %v616_v13 = vmul.f32 %v3713_v2, %v3713_v2  ;;  %v617_v14 = vmul.f32 %v3716_v3, %v3716_v3 }
  0xe0   :  { %554 = vadd.xlane.f32.xlu1 %v553_v12  ;;  %v656_v17 = vadd.f32 %v617_v14, %v616_v13 }
  0xe1   :  { %v403_v18 = vpop.f32.mrf.mxu2  ;;  %v468_v19 = vpop.f32.mrf.mxu3 }
  0xe2   :  { %v404_v20 = vadd.f32 %v403_v18, %v224_v4  ;;  %v469_v21 = vadd.f32 %v468_v19, %v289_v5  ;;  %657 = vadd.xlane.f32.xlu2 %v656_v17  ;;  %v1100_v17 = vld [vmem:[#allocation3 + $0x50] sm:$0xff]  ;;  %v1099_v19 = vld [vmem:[#allocation3 + $0x48] sm:$0xff] }
  0xe3   :  { %v1132_v18 = vld [vmem:[#allocation3 + $0x150] sm:$0xff]  ;;  %1170 = vmatpush.msrb.mxu0 %v1100_v17  ;;  %1301 = vmatpush.msrb.mxu2 %v1099_v19 }
  0xe4   :  { %v3725_v22 = vadd.f32 %v3612_v44, %v404_v20  ;;  %v3728_v23 = vadd.f32 %v3614_v45, %v469_v21  ;;  %1235 = vmatpush.msrb.mxu1 %v1132_v18  ;;  %v1131_v20 = vld [vmem:[#allocation3 + $0x148] sm:$0xff] }
  0xe5   :  { %v227_v26 = vpop.f32.mrf.mxu0  ;;  %v292_v27 = vpop.f32.mrf.mxu1  ;;  %1366 = vmatpush.msrb.mxu3 %v1131_v20 }
  0xe6   :  { %v556_v34 = vadd.f32 %v3728_v23, %v3725_v22  ;;  %v618_v35 = vmul.f32 %v3725_v22, %v3725_v22  ;;  %v619_v36 = vmul.f32 %v3728_v23, %v3728_v23 }
  0xe8   :  { %557 = vadd.xlane.f32.xlu0 %v556_v34  ;;  %v659_v37 = vadd.f32 %v619_v36, %v618_v35  ;;  %v3323_v36 = vmov 256.0  }
  0xe9   :  { %v406_v38 = vpop.f32.mrf.mxu2  ;;  %v471_v39 = vpop.f32.mrf.mxu3  ;;  %3143 = vrcp.f32 %v3323_v36 }
  0xea   :  { %v407_v40 = vadd.f32 %v406_v38, %v227_v26  ;;  %v472_v41 = vadd.f32 %v471_v39, %v292_v27  ;;  %660 = vadd.xlane.f32.xlu1 %v659_v37 }
  0xec   :  { %v3737_v46 = vadd.f32 %v3612_v44, %v407_v40  ;;  %v3740_v47 = vadd.f32 %v3614_v45, %v472_v41 }
  0xed   :  { %v230_v48 = vpop.f32.mrf.mxu0  ;;  %v295_v49 = vpop.f32.mrf.mxu1 }
  0xee   :  { %v559_v58 = vadd.f32 %v3740_v47, %v3737_v46  ;;  %v620_v59 = vmul.f32 %v3737_v46, %v3737_v46  ;;  %v621_v60 = vmul.f32 %v3740_v47, %v3740_v47 }
  0xf0   :  { %560 = vadd.xlane.f32.xlu2 %v559_v58  ;;  %v662_v61 = vadd.f32 %v621_v60, %v620_v59 }
  0xf1   :  { %v409_v62 = vpop.f32.mrf.mxu2  ;;  %v474_v1 = vpop.f32.mrf.mxu3 }
  0xf2   :  { %v410_v4 = vadd.f32 %v409_v62, %v230_v48  ;;  %v475_v5 = vadd.f32 %v474_v1, %v295_v49  ;;  %663 = vadd.xlane.f32.xlu0 %v662_v61  ;;  %v3144_v49 = vpop.eup %3143 }
  0xf3   :  { %v578_v60 = vmul.f32 256.0, %v3144_v49  ;;  %vm582_vm2 = vweird.f32 %v3144_v49 }
  0xf4   :  { %v3749_v8 = vadd.f32 %v3612_v44, %v410_v4  ;;  %v3752_v9 = vadd.f32 %v3614_v45, %v475_v5 }
  0xf5   :  { %v233_v10 = vpop.f32.mrf.mxu0  ;;  %v298_v11 = vpop.f32.mrf.mxu1 }
  0xf6   :  { %v562_v12 = vadd.f32 %v3752_v9, %v3749_v8  ;;  %v622_v13 = vmul.f32 %v3749_v8, %v3749_v8  ;;  %v623_v14 = vmul.f32 %v3752_v9, %v3752_v9 }
  0xf8   :  { %563 = vadd.xlane.f32.xlu1 %v562_v12  ;;  %v665_v21 = vadd.f32 %v623_v14, %v622_v13 }
  0xf9   :  { %v412_v26 = vpop.f32.mrf.mxu2  ;;  %v477_v27 = vpop.f32.mrf.mxu3 }
  0xfa   :  { %v413_v28 = vadd.f32 %v412_v26, %v233_v10  ;;  %v478_v29 = vadd.f32 %v477_v27, %v298_v11  ;;  %666 = vadd.xlane.f32.xlu2 %v665_v21  ;;  %v579_v11 = vsub.f32 1.0, %v578_v60 }
  0xfc   :  { %v3761_v30 = vadd.f32 %v3612_v44, %v413_v28  ;;  %v3764_v33 = vadd.f32 %v3614_v45, %v478_v29  ;;  %v580_v18 = vmul.f32 %v3144_v49, %v579_v11 }
  0xfd   :  { %v236_v34 = vpop.f32.mrf.mxu0  ;;  %v301_v35 = vpop.f32.mrf.mxu1 }
  0xfe   :  { %v565_v37 = vadd.f32 %v3764_v33, %v3761_v30  ;;  %v624_v38 = vmul.f32 %v3761_v30, %v3761_v30  ;;  %v625_v39 = vmul.f32 %v3764_v33, %v3764_v33 }
 0x100   :  { %566 = vadd.xlane.f32.xlu0 %v565_v37  ;;  %v668_v40 = vadd.f32 %v625_v39, %v624_v38  ;;  %v1098_v39 = vld [vmem:[#allocation3 + $0x40] sm:$0xff] }
 0x101   :  { %v415_v41 = vpop.f32.mrf.mxu2  ;;  %v480_v48 = vpop.f32.mrf.mxu3  ;;  %1171 = vmatpush.msrb.mxu0 %v1098_v39 }
 0x102   :  { %v416_v54 = vadd.f32 %v415_v41, %v236_v34  ;;  %v481_v55 = vadd.f32 %v480_v48, %v301_v35  ;;  %669 = vadd.xlane.f32.xlu1 %v668_v40  ;;  %v581_v35 = vadd.f32 %v3144_v49, %v580_v18  ;;  %v1130_v40 = vld [vmem:[#allocation3 + $0x140] sm:$0xff]  ;;  %v1097_v41 = vld [vmem:[#allocation3 + $0x38] sm:$0xff] }
 0x103   :  { %1236 = vmatpush.msrb.mxu1 %v1130_v40  ;;  %1302 = vmatpush.msrb.mxu2 %v1097_v41  ;;  %v1125_v18 = vld [vmem:[#allocation3 + $0x118] sm:$0xff] }
 0x104   :  { %v3773_v56 = vadd.f32 %v3612_v44, %v416_v54  ;;  %v3776_v57 = vadd.f32 %v3614_v45, %v481_v55  ;;  %v1129_v55 = vld [vmem:[#allocation3 + $0x138] sm:$0xff] }
 0x105   :  { %v239_v58 = vpop.f32.mrf.mxu0  ;;  %v304_v59 = vpop.f32.mrf.mxu1  ;;  %1367 = vmatpush.msrb.mxu3 %v1129_v55 }
 0x106   :  { %v568_v61 = vadd.f32 %v3776_v57, %v3773_v56  ;;  %v626_v62 = vmul.f32 %v3773_v56, %v3773_v56  ;;  %v627_v1 = vmul.f32 %v3776_v57, %v3776_v57 }
 0x108   :  { %569 = vadd.xlane.f32.xlu2 %v568_v61  ;;  %v671_v4 = vadd.f32 %v627_v1, %v626_v62  ;;  %v1096_v61 = vld [vmem:[#allocation3 + $0x30] sm:$0xff]  ;;  %v1095_v1 = vld [vmem:[#allocation3 + $0x28] sm:$0xff] }
 0x109   :  { %v418_v5 = vpop.f32.mrf.mxu2  ;;  %v483_v10 = vpop.f32.mrf.mxu3  ;;  %v1128_v62 = vld [vmem:[#allocation3 + $0x130] sm:$0xff]  ;;  %1172 = vmatpush.msrb.mxu0 %v1096_v61  ;;  %1303 = vmatpush.msrb.mxu2 %v1095_v1 }
 0x10a   :  { %v419_v12 = vadd.f32 %v418_v5, %v239_v58  ;;  %v484_v13 = vadd.f32 %v483_v10, %v304_v59  ;;  %672 = vadd.xlane.f32.xlu0 %v671_v4  ;;  %v3802_v58 = vsel %vm582_vm2, %v3144_v49, %v581_v35  ;;  %1237 = vmatpush.msrb.mxu1 %v1128_v62  ;;  %v1127_v4 = vld [vmem:[#allocation3 + $0x128] sm:$0xff]  ;;  %v1094_v5 = vld [vmem:[#allocation3 + $0x20] sm:$0xff] }
 0x10b   :  { %1368 = vmatpush.msrb.mxu3 %v1127_v4  ;;  %v1126_v10 = vld [vmem:[#allocation3 + $0x120] sm:$0xff]  ;;  %1173 = vmatpush.msrb.mxu0 %v1094_v5 }
 0x10c   :  { %v3785_v14 = vadd.f32 %v3612_v44, %v419_v12  ;;  %v3788_v17 = vadd.f32 %v3614_v45, %v484_v13  ;;  %v1093_v13 = vld [vmem:[#allocation3 + $0x18] sm:$0xff]  ;;  %1238 = vmatpush.msrb.mxu1 %v1126_v10  ;;  %v1122_v35 = vld [vmem:[#allocation3 + $0x100] sm:$0xff] }
 0x10d   :  { %v242_v26 = vpop.f32.mrf.mxu0  ;;  %v307_v27 = vpop.f32.mrf.mxu1  ;;  %1304 = vmatpush.msrb.mxu2 %v1093_v13  ;;  %1369 = vmatpush.msrb.mxu3 %v1125_v18 }
 0x10e   :  { %v571_v19 = vadd.f32 %v3788_v17, %v3785_v14  ;;  %v628_v20 = vmul.f32 %v3785_v14, %v3785_v14  ;;  %v629_v21 = vmul.f32 %v3788_v17, %v3788_v17 }
 0x110   :  { %572 = vadd.xlane.f32.xlu1 %v571_v19  ;;  %v674_v28 = vadd.f32 %v629_v21, %v628_v20  ;;  %v1092_v19 = vld [vmem:[#allocation3 + $0x10] sm:$0xff] }
 0x111   :  { %v421_v29 = vpop.f32.mrf.mxu2  ;;  %v486_v34 = vpop.f32.mrf.mxu3  ;;  %1174 = vmatpush.msrb.mxu0 %v1092_v19 }
 0x112   :  { %v422_v36 = vadd.f32 %v421_v29, %v242_v26  ;;  %v487_v37 = vadd.f32 %v486_v34, %v307_v27  ;;  %675 = vadd.xlane.f32.xlu2 %v674_v28  ;;  %v1124_v26 = vld [vmem:[#allocation3 + $0x110] sm:$0xff]  ;;  %v1091_v27 = vld [vmem:[#allocation3 + $0x8] sm:$0xff]  ;;  %v1090_v29 = vld [vmem:[#allocation3] sm:$0xff] }
 0x113   :  { %v531_v38 = vpop.xlane.xlu0 %530  ;;  %v1123_v28 = vld [vmem:[#allocation3 + $0x108] sm:$0xff]  ;;  %1239 = vmatpush.msrb.mxu1 %v1124_v26  ;;  %1305 = vmatpush.msrb.mxu2 %v1091_v27 }
 0x114   :  { %v3797_v48 = vadd.f32 %v3612_v44, %v422_v36  ;;  %v3800_v54 = vadd.f32 %v3614_v45, %v487_v37  ;;  %v3811_v45 = vmul.f32 %v3802_v58, %v531_v38  ;;  %1370 = vmatpush.msrb.mxu3 %v1123_v28  ;;  %1175 = vmatpush.msrb.mxu0 %v1090_v29 }
 0x115   :  { %1240 = vmatpush.msrb.mxu1 %v1122_v35  ;;  %v527_v35 = vld [vmem:[%s5215_s5] sm:$0x3] }
 0x116   :  { %v574_v59 = vadd.f32 %v3800_v54, %v3797_v48  ;;  %v630_v60 = vmul.f32 %v3797_v48, %v3797_v48  ;;  %v631_v44 = vmul.f32 %v3800_v54, %v3800_v54  ;;  %v696_v20 = vmul.f32 %v3811_v45, %v3811_v45 }
 0x118   :  { %575 = vadd.xlane.f32.xlu0 %v574_v59  ;;  %v677_v49 = vadd.f32 %v631_v44, %v630_v60 }
 0x11a   :  { %678 = vadd.xlane.f32.xlu1 %v677_v49 }
 0x11b   :  { %v534_v11 = vpop.xlane.xlu1 %533  ;;  %v634_v12 = vpop.xlane.xlu0 %633 }
 0x11c   :  { %v680_v21 = vmul.f32 %v634_v12, %v3802_v58  ;;  %v3817_v36 = vmul.f32 %v3802_v58, %v534_v11 }
 0x11e   :  { %v712_v34 = vsub.f32 %v680_v21, %v696_v20  ;;  %v697_v41 = vmul.f32 %v3817_v36, %v3817_v36 }
 0x120   :  { %v728_v37 = vmax.f32 %v712_v34, 0.0 }
 0x122   :  { %v776_v38 = vadd.f32 1e-05, %v728_v37 }
 0x123   :  { %v537_v39 = vpop.xlane.xlu2 %536  ;;  %v637_v40 = vpop.xlane.xlu1 %636 }
 0x124   :  { %3145 = vrsqrt.f32 %v776_v38  ;;  %v681_v55 = vmul.f32 %v637_v40, %v3802_v58  ;;  %v3823_v60 = vmul.f32 %v3802_v58, %v537_v39  ;;  %vm798_vm4 = vweird.f32 %v776_v38 }
 0x126   :  { %v713_v59 = vsub.f32 %v681_v55, %v697_v41  ;;  %v698_v5 = vmul.f32 %v3823_v60, %v3823_v60  ;;  %v744_v55 = vsub.f32 %v3617_v50, %v3811_v45  ;;  %v745_v50 = vsub.f32 %v3620_v51, %v3811_v45 }
 0x128   :  { %v729_v44 = vmax.f32 %v713_v59, 0.0 }
 0x12a   :  { %v3146_v61 = vpop.eup %3145  ;;  %v777_v62 = vadd.f32 1e-05, %v729_v44  ;;  %v528_v44 = vld [vmem:[%s5216_s6] sm:$0x3] }
 0x12b   :  { %v793_v49 = vmul.f32 %v3146_v61, %v776_v38  ;;  %v640_v1 = vpop.xlane.xlu2 %639  ;;  %v540_v4 = vpop.xlane.xlu0 %539  ;;  %vm799_vm3 = vweird.f32 %v3146_v61 }
 0x12c   :  { %3147 = vrsqrt.f32 %v777_v62  ;;  %v682_v10 = vmul.f32 %v640_v1, %v3802_v58  ;;  %v3829_v11 = vmul.f32 %v3802_v58, %v540_v4  ;;  %vm800_vm5 = vmor %vm798_vm4, %vm799_vm3  ;;  %vm808_vm7 = vweird.f32 %v777_v62 }
 0x12d   :  { %v794_v12 = vmul.f32 %v3146_v61, %v793_v49  ;;  %v643_v13 = vpop.xlane.xlu1 %642 }
 0x12e   :  { %v714_v18 = vsub.f32 %v682_v10, %v698_v5  ;;  %v683_v19 = vmul.f32 %v643_v13, %v3802_v58  ;;  %v699_v21 = vmul.f32 %v3829_v11, %v3829_v11  ;;  %v3850_v5 = vperm.slane %v527_v35, 0 }
 0x12f   :  { %v795_v20 = vmul.f32 0.5, %v794_v12  ;;  %v3857_v13 = vperm.slane %v527_v35, 1 }
 0x130   :  { %v730_v26 = vmax.f32 %v714_v18, 0.0  ;;  %v715_v28 = vsub.f32 %v683_v19, %v699_v21 }
 0x131   :  { %v796_v27 = vsub.f32 1.5, %v795_v20  ;;  %v3860_v20 = vperm.slane %v528_v44, 0 }
 0x132   :  { %v3148_v29 = vpop.eup %3147  ;;  %v3834_v34 = vadd.f32 1e-05, %v730_v26  ;;  %v731_v40 = vmax.f32 %v715_v28, 0.0  ;;  %v3862_v26 = vperm.slane %v528_v44, 1 }
 0x133   :  { %v797_v37 = vmul.f32 %v3146_v61, %v796_v27  ;;  %v803_v39 = vmul.f32 %v3148_v29, %v777_v62  ;;  %v543_v41 = vpop.xlane.xlu2 %542  ;;  %vm809_vm6 = vweird.f32 %v3148_v29 }
 0x134   :  { %3149 = vrsqrt.f32 %v3834_v34  ;;  %v3843_v59 = vmul.f32 %v3802_v58, %v543_v41  ;;  %v3848_v1 = vadd.f32 1e-05, %v731_v40  ;;  %vm810_vm8 = vmor %vm808_vm7, %vm809_vm6  ;;  %vm818_vm10 = vweird.f32 %v3834_v34 }
 0x135   :  { %v804_v49 = vmul.f32 %v3148_v29, %v803_v39  ;;  %v646_v38 = vpop.xlane.xlu0 %645  ;;  %v801_v4 = vsel %vm800_vm5, %v3146_v61, %v797_v37 }
 0x136   :  { %v700_v10 = vmul.f32 %v3843_v59, %v3843_v59  ;;  %v684_v12 = vmul.f32 %v646_v38, %v3802_v58  ;;  %3151 = vrsqrt.f32 %v3848_v1  ;;  %v952_v19 = vmul.f32 %v801_v4, %v744_v55 }
 0x137   :  { %v805_v18 = vmul.f32 0.5, %v804_v49  ;;  %v953_v61 = vmul.f32 %v801_v4, %v745_v50  ;;  %vm828_vm12 = vweird.f32 %v3848_v1 }
 0x138   :  { %v716_v21 = vsub.f32 %v684_v12, %v700_v10  ;;  %v989_v51 = vmul.f32 %v3850_v5, %v952_v19  ;;  %v746_v12 = vsub.f32 %v3629_v63, %v3817_v36  ;;  %v747_v19 = vsub.f32 %v3632_v0, %v3817_v36 }
 0x139   :  { %v806_v27 = vsub.f32 1.5, %v805_v18  ;;  %v990_v37 = vmul.f32 %v3857_v13, %v953_v61  ;;  %v748_v36 = vsub.f32 %v3641_v15, %v3823_v60 }
 0x13a   :  { %v3150_v45 = vpop.eup %3149  ;;  %v732_v28 = vmax.f32 %v716_v21, 0.0  ;;  %v1026_v40 = vadd.f32 %v3860_v20, %v989_v51 }
 0x13b   :  { %v813_v35 = vmul.f32 %v3150_v45, %v3834_v34  ;;  %v546_v39 = vpop.xlane.xlu1 %545  ;;  %v807_v41 = vmul.f32 %v3148_v29, %v806_v27  ;;  %v1027_v49 = vadd.f32 %v3862_v26, %v990_v37  ;;  %vm819_vm9 = vweird.f32 %v3150_v45 }
 0x13c   :  { %v3868_v55 = vadd.f32 1e-05, %v732_v28  ;;  %v3871_v44 = vmul.f32 %v3802_v58, %v546_v39  ;;  %v3874_v38 = vpop.eup %3151  ;;  %v1058_v10 = vmax.f32 %v1026_v40, 0.0  ;;  %vm820_vm11 = vmor %vm818_vm10, %vm819_vm9 }
 0x13d   :  { %v814_v4 = vmul.f32 %v3150_v45, %v813_v35  ;;  %v649_v50 = vpop.xlane.xlu2 %648  ;;  %v811_v62 = vsel %vm810_vm8, %v3148_v29, %v807_v41  ;;  %v823_v18 = vmul.f32 %v3874_v38, %v3848_v1  ;;  %v1059_v51 = vmax.f32 %v1027_v49, 0.0 }
 0x13e   :  { %3153 = vrsqrt.f32 %v3868_v55  ;;  %v685_v61 = vmul.f32 %v649_v50, %v3802_v58  ;;  %1176 = vmatmul.f32.vlgmr.msrb.gmra.mxu0 %v1058_v10  ;;  %1306 = vmatmul.f32.vlgmr.msrb.gmra.mxu2 %v1058_v10  ;;  %v701_v29 = vmul.f32 %v3871_v44, %v3871_v44  ;;  %v954_v63 = vmul.f32 %v811_v62, %v746_v12 }
 0x13f   :  { %v815_v21 = vmul.f32 0.5, %v814_v4  ;;  %v824_v27 = vmul.f32 %v3874_v38, %v823_v18  ;;  %v955_v37 = vmul.f32 %v811_v62, %v747_v19  ;;  %1241 = vmatmul.f32.vlgmr.msrb.gmra.mxu1 %v1059_v51  ;;  %1371 = vmatmul.f32.vlgmr.msrb.gmra.mxu3 %v1059_v51  ;;  %v749_v50 = vsub.f32 %v3644_v16, %v3823_v60 }
 0x140   :  { %v717_v39 = vsub.f32 %v685_v61, %v701_v29  ;;  %v991_v0 = vmul.f32 %v3850_v5, %v954_v63  ;;  %vm829_vm13 = vweird.f32 %v3874_v38  ;;  %vm838_vm15 = vweird.f32 %v3868_v55 }
 0x141   :  { %v816_v28 = vsub.f32 1.5, %v815_v21  ;;  %v825_v35 = vmul.f32 0.5, %v824_v27  ;;  %v992_v41 = vmul.f32 %v3857_v13, %v955_v37  ;;  %vm830_vm14 = vmor %vm828_vm12, %vm829_vm13 }
 0x142   :  { %v733_v10 = vmax.f32 %v717_v39, 0.0  ;;  %v1028_v12 = vadd.f32 %v3860_v20, %v991_v0  ;;  %v751_v0 = vsub.f32 %v3656_v32, %v3829_v11 }
 0x143   :  { %v549_v40 = vpop.xlane.xlu0 %548  ;;  %v817_v4 = vmul.f32 %v3150_v45, %v816_v28  ;;  %v826_v18 = vsub.f32 1.5, %v825_v35  ;;  %v1029_v34 = vadd.f32 %v3862_v26, %v992_v41 }
 0x144   :  { %v3154_v49 = vpop.eup %3153  ;;  %v3895_v62 = vmul.f32 %v3802_v58, %v549_v40  ;;  %v3902_v61 = vadd.f32 1e-05, %v733_v10  ;;  %v1060_v29 = vmax.f32 %v1028_v12, 0.0 }
 0x145   :  { %v833_v15 = vmul.f32 %v3154_v49, %v3868_v55  ;;  %v652_v19 = vpop.xlane.xlu1 %651  ;;  %v821_v21 = vsel %vm820_vm11, %v3150_v45, %v817_v4  ;;  %v1061_v51 = vmax.f32 %v1029_v34, 0.0  ;;  %v750_v45 = vsub.f32 %v3653_v31, %v3829_v11 }
 0x146   :  { %v686_v16 = vmul.f32 %v652_v19, %v3802_v58  ;;  %v702_v27 = vmul.f32 %v3895_v62, %v3895_v62  ;;  %3155 = vrsqrt.f32 %v3902_v61  ;;  %v956_v63 = vmul.f32 %v821_v21, %v748_v36  ;;  %1179 = vmatmul.f32.gmra.mxu0 %v1060_v29  ;;  %1309 = vmatmul.f32.gmra.mxu2 %v1060_v29 }
 0x147   :  { %v834_v60 = vmul.f32 %v3154_v49, %v833_v15  ;;  %v957_v28 = vmul.f32 %v821_v21, %v749_v50  ;;  %v827_v39 = vmul.f32 %v3874_v38, %v826_v18  ;;  %1244 = vmatmul.f32.gmra.mxu1 %v1061_v51  ;;  %1374 = vmatmul.f32.gmra.mxu3 %v1061_v51  ;;  %vm839_vm0 = vweird.f32 %v3154_v49 }
 0x148   :  { %v718_v35 = vsub.f32 %v686_v16, %v702_v27  ;;  %v993_v36 = vmul.f32 %v3850_v5, %v956_v63  ;;  %vm840_vm1 = vmor %vm838_vm15, %vm839_vm0  ;;  %v752_v63 = vsub.f32 %v3665_v52, %v3843_v59  ;;  %vm848_vm2 = vweird.f32 %v3902_v61 }
 0x149   :  { %v835_v37 = vmul.f32 0.5, %v834_v60  ;;  %v994_v31 = vmul.f32 %v3857_v13, %v957_v28  ;;  %v831_v50 = vsel %vm830_vm14, %v3874_v38, %v827_v39 }
 0x14a   :  { %v734_v41 = vmax.f32 %v718_v35, 0.0  ;;  %v1030_v11 = vadd.f32 %v3860_v20, %v993_v36  ;;  %v958_v10 = vmul.f32 %v831_v50, %v750_v45  ;;  %v959_v15 = vmul.f32 %v831_v50, %v751_v0 }
 0x14b   :  { %v836_v40 = vsub.f32 1.5, %v835_v37  ;;  %v552_v4 = vpop.xlane.xlu2 %551  ;;  %v1031_v1 = vadd.f32 %v3862_v26, %v994_v31  ;;  %v753_v35 = vsub.f32 %v3668_v53, %v3843_v59 }
 0x14c   :  { %v3922_v32 = vmul.f32 %v3802_v58, %v552_v4  ;;  %v3926_v12 = vadd.f32 1e-05, %v734_v41  ;;  %v3156_v34 = vpop.eup %3155  ;;  %v1062_v27 = vmax.f32 %v1030_v11, 0.0  ;;  %v995_v51 = vmul.f32 %v3850_v5, %v958_v10 }
 0x14d   :  { %v655_v18 = vpop.xlane.xlu0 %654  ;;  %v837_v19 = vmul.f32 %v3154_v49, %v836_v40  ;;  %v843_v16 = vmul.f32 %v3156_v34, %v3902_v61  ;;  %v1063_v29 = vmax.f32 %v1031_v1, 0.0  ;;  %v996_v45 = vmul.f32 %v3857_v13, %v959_v15 }
 0x14e   :  { %v703_v21 = vmul.f32 %v3922_v32, %v3922_v32  ;;  %v687_v38 = vmul.f32 %v655_v18, %v3802_v58  ;;  %3157 = vrsqrt.f32 %v3926_v12  ;;  %1182 = vmatmul.f32.gmra.mxu0 %v1062_v27  ;;  %1312 = vmatmul.f32.gmra.mxu2 %v1062_v27  ;;  %v1032_v36 = vadd.f32 %v3860_v20, %v995_v51 }
 0x14f   :  { %v844_v28 = vmul.f32 %v3156_v34, %v843_v16  ;;  %v841_v37 = vsel %vm840_vm1, %v3154_v49, %v837_v19  ;;  %1247 = vmatmul.f32.gmra.mxu1 %v1063_v29  ;;  %1377 = vmatmul.f32.gmra.mxu3 %v1063_v29  ;;  %v1033_v49 = vadd.f32 %v3862_v26, %v996_v45  ;;  %vm849_vm3 = vweird.f32 %v3156_v34 }
 0x150   :  { %v719_v60 = vsub.f32 %v687_v38, %v703_v21  ;;  %v960_v31 = vmul.f32 %v841_v37, %v752_v63  ;;  %v961_v41 = vmul.f32 %v841_v37, %v753_v35  ;;  %v1064_v10 = vmax.f32 %v1032_v36, 0.0  ;;  %vm850_vm4 = vmor %vm848_vm2, %vm849_vm3 }
 0x151   :  { %v845_v55 = vmul.f32 0.5, %v844_v28  ;;  %v1065_v19 = vmax.f32 %v1033_v49, 0.0  ;;  %v754_v61 = vsub.f32 %v3677_v6, %v3871_v44  ;;  %vm858_vm5 = vweird.f32 %v3926_v12 }
 0x152   :  { %v735_v39 = vmax.f32 %v719_v60, 0.0  ;;  %v997_v18 = vmul.f32 %v3850_v5, %v960_v31  ;;  %v998_v21 = vmul.f32 %v3857_v13, %v961_v41  ;;  %v755_v60 = vsub.f32 %v3680_v7, %v3871_v44 }
 0x153   :  { %v555_v0 = vpop.xlane.xlu1 %554  ;;  %v846_v53 = vsub.f32 1.5, %v845_v55 }
 0x154   :  { %v3942_v40 = vadd.f32 1e-05, %v735_v39  ;;  %v3945_v52 = vmul.f32 %v3802_v58, %v555_v0  ;;  %v3158_v4 = vpop.eup %3157  ;;  %v1034_v28 = vadd.f32 %v3860_v20, %v997_v18  ;;  %v1035_v39 = vadd.f32 %v3862_v26, %v998_v21 }
 0x155   :  { %v658_v59 = vpop.xlane.xlu2 %657  ;;  %v853_v50 = vmul.f32 %v3158_v4, %v3926_v12  ;;  %v847_v38 = vmul.f32 %v3156_v34, %v846_v53  ;;  %vm859_vm6 = vweird.f32 %v3158_v4  ;;  %v756_v12 = vsub.f32 %v3689_v24, %v3895_v62 }
 0x156   :  { %3159 = vrsqrt.f32 %v3942_v40  ;;  %v688_v11 = vmul.f32 %v658_v59, %v3802_v58  ;;  %v704_v1 = vmul.f32 %v3945_v52, %v3945_v52  ;;  %1185 = vmatmul.f32.gmra.mxu0 %v1064_v10  ;;  %1315 = vmatmul.f32.gmra.mxu2 %v1064_v10  ;;  %v1066_v49 = vmax.f32 %v1034_v28, 0.0  ;;  %vm860_vm7 = vmor %vm858_vm5, %vm859_vm6 }
 0x157   :  { %v854_v15 = vmul.f32 %v3158_v4, %v853_v50  ;;  %1250 = vmatmul.f32.gmra.mxu1 %v1065_v19  ;;  %v851_v29 = vsel %vm850_vm4, %v3156_v34, %v847_v38  ;;  %1380 = vmatmul.f32.gmra.mxu3 %v1065_v19  ;;  %v1067_v59 = vmax.f32 %v1035_v39, 0.0  ;;  %v757_v10 = vsub.f32 %v3692_v25, %v3895_v62 }
 0x158   :  { %v720_v16 = vsub.f32 %v688_v11, %v704_v1  ;;  %v962_v45 = vmul.f32 %v851_v29, %v754_v61  ;;  %v963_v55 = vmul.f32 %v851_v29, %v755_v60  ;;  %vm868_vm8 = vweird.f32 %v3942_v40 }
 0x159   :  { %v855_v27 = vmul.f32 0.5, %v854_v15 }
 0x15a   :  { %v736_v51 = vmax.f32 %v720_v16, 0.0  ;;  %v999_v41 = vmul.f32 %v3850_v5, %v962_v45  ;;  %v1000_v50 = vmul.f32 %v3857_v13, %v963_v55 }
 0x15b   :  { %v558_v63 = vpop.xlane.xlu0 %557  ;;  %v856_v35 = vsub.f32 1.5, %v855_v27 }
 0x15c   :  { %v3160_v37 = vpop.eup %3159  ;;  %v3962_v6 = vmul.f32 %v3802_v58, %v558_v63  ;;  %v3966_v44 = vadd.f32 1e-05, %v736_v51  ;;  %v1036_v38 = vadd.f32 %v3860_v20, %v999_v41  ;;  %v1037_v24 = vadd.f32 %v3862_v26, %v1000_v50 }
 0x15d   :  { %v863_v7 = vmul.f32 %v3160_v37, %v3942_v40  ;;  %v661_v34 = vpop.xlane.xlu1 %660  ;;  %v857_v11 = vmul.f32 %v3158_v4, %v856_v35  ;;  %vm869_vm9 = vweird.f32 %v3160_v37 }
 0x15e   :  { %v689_v0 = vmul.f32 %v661_v34, %v3802_v58  ;;  %v705_v36 = vmul.f32 %v3962_v6, %v3962_v6  ;;  %3161 = vrsqrt.f32 %v3966_v44  ;;  %1188 = vmatmul.f32.gmra.mxu0 %v1066_v49  ;;  %1318 = vmatmul.f32.gmra.mxu2 %v1066_v49  ;;  %vm870_vm10 = vmor %vm868_vm8, %vm869_vm9  ;;  %v1068_v45 = vmax.f32 %v1036_v38, 0.0 }
 0x15f   :  { %v864_v31 = vmul.f32 %v3160_v37, %v863_v7  ;;  %1253 = vmatmul.f32.gmra.mxu1 %v1067_v59  ;;  %v861_v15 = vsel %vm860_vm7, %v3158_v4, %v857_v11  ;;  %1383 = vmatmul.f32.gmra.mxu3 %v1067_v59  ;;  %v758_v4 = vsub.f32 %v3701_v42, %v3922_v32  ;;  %v1069_v35 = vmax.f32 %v1037_v24, 0.0 }
 0x160   :  { %v721_v53 = vsub.f32 %v689_v0, %v705_v36  ;;  %v964_v25 = vmul.f32 %v861_v15, %v756_v12  ;;  %v965_v62 = vmul.f32 %v861_v15, %v757_v10  ;;  %v759_v34 = vsub.f32 %v3704_v43, %v3922_v32 }
 0x161   :  { %v865_v1 = vmul.f32 0.5, %v864_v31  ;;  %vm878_vm11 = vweird.f32 %v3966_v44 }
 0x162   :  { %v737_v18 = vmax.f32 %v721_v53, 0.0  ;;  %v1001_v55 = vmul.f32 %v3850_v5, %v964_v25  ;;  %v1002_v42 = vmul.f32 %v3857_v13, %v965_v62 }
 0x163   :  { %v866_v19 = vsub.f32 1.5, %v865_v1  ;;  %v561_v21 = vpop.xlane.xlu2 %560 }
 0x164   :  { %v3982_v61 = vadd.f32 1e-05, %v737_v18  ;;  %v3985_v16 = vmul.f32 %v3802_v58, %v561_v21  ;;  %v3162_v60 = vpop.eup %3161  ;;  %v1039_v11 = vadd.f32 %v3862_v26, %v1002_v42 }
 0x165   :  { %v664_v27 = vpop.xlane.xlu0 %663  ;;  %v867_v29 = vmul.f32 %v3160_v37, %v866_v19  ;;  %v873_v51 = vmul.f32 %v3162_v60, %v3966_v44  ;;  %vm879_vm12 = vweird.f32 %v3162_v60 }
 0x166   :  { %3163 = vrsqrt.f32 %v3982_v61  ;;  %v706_v63 = vmul.f32 %v3985_v16, %v3985_v16  ;;  %v690_v28 = vmul.f32 %v664_v27, %v3802_v58  ;;  %1191 = vmatmul.f32.gmra.mxu0 %v1068_v45  ;;  %1321 = vmatmul.f32.gmra.mxu2 %v1068_v45  ;;  %vm880_vm13 = vmor %vm878_vm11, %vm879_vm12  ;;  %v1071_v38 = vmax.f32 %v1039_v11, 0.0 }
 0x167   :  { %v874_v39 = vmul.f32 %v3162_v60, %v873_v51  ;;  %v871_v7 = vsel %vm870_vm10, %v3160_v37, %v867_v29  ;;  %1256 = vmatmul.f32.gmra.mxu1 %v1069_v35  ;;  %1386 = vmatmul.f32.gmra.mxu3 %v1069_v35  ;;  %v1038_v37 = vadd.f32 %v3860_v20, %v1001_v55  ;;  %vm888_vm14 = vweird.f32 %v3982_v61 }
 0x168   :  { %v722_v0 = vsub.f32 %v690_v28, %v706_v63  ;;  %v966_v40 = vmul.f32 %v871_v7, %v758_v4  ;;  %v967_v41 = vmul.f32 %v871_v7, %v759_v34  ;;  %v760_v27 = vsub.f32 %v3713_v2, %v3945_v52 }
 0x169   :  { %v875_v36 = vmul.f32 0.5, %v874_v39  ;;  %v1070_v44 = vmax.f32 %v1038_v37, 0.0  ;;  %v761_v29 = vsub.f32 %v3716_v3, %v3945_v52 }
 0x16a   :  { %v738_v31 = vmax.f32 %v722_v0, 0.0  ;;  %v1003_v18 = vmul.f32 %v3850_v5, %v966_v40  ;;  %v1004_v21 = vmul.f32 %v3857_v13, %v967_v41 }
 0x16b   :  { %v564_v49 = vpop.xlane.xlu1 %563  ;;  %v876_v59 = vsub.f32 1.5, %v875_v36 }
 0x16c   :  { %v3164_v53 = vpop.eup %3163  ;;  %v4002_v50 = vmul.f32 %v3802_v58, %v564_v49  ;;  %v4008_v32 = vadd.f32 1e-05, %v738_v31  ;;  %v1040_v4 = vadd.f32 %v3860_v20, %v1003_v18  ;;  %v1041_v45 = vadd.f32 %v3862_v26, %v1004_v21 }
 0x16d   :  { %v883_v43 = vmul.f32 %v3164_v53, %v3982_v61  ;;  %v667_v12 = vpop.xlane.xlu2 %666  ;;  %v877_v1 = vmul.f32 %v3162_v60, %v876_v59  ;;  %vm889_vm15 = vweird.f32 %v3164_v53  ;;  %v762_v59 = vsub.f32 %v3725_v22, %v3962_v6 }
 0x16e   :  { %v691_v10 = vmul.f32 %v667_v12, %v3802_v58  ;;  %3165 = vrsqrt.f32 %v4008_v32  ;;  %v707_v19 = vmul.f32 %v4002_v50, %v4002_v50  ;;  %1194 = vmatmul.f32.gmra.mxu0 %v1070_v44  ;;  %1324 = vmatmul.f32.gmra.mxu2 %v1070_v44  ;;  %v1072_v7 = vmax.f32 %v1040_v4, 0.0  ;;  %vm890_vm0 = vmor %vm888_vm14, %vm889_vm15 }
 0x16f   :  { %v884_v15 = vmul.f32 %v3164_v53, %v883_v43  ;;  %v881_v62 = vsel %vm880_vm13, %v3162_v60, %v877_v1  ;;  %1259 = vmatmul.f32.gmra.mxu1 %v1071_v38  ;;  %1389 = vmatmul.f32.gmra.mxu3 %v1071_v38  ;;  %v1073_v36 = vmax.f32 %v1041_v45, 0.0  ;;  %v763_v61 = vsub.f32 %v3728_v23, %v3962_v6 }
 0x170   :  { %v723_v25 = vsub.f32 %v691_v10, %v707_v19  ;;  %v968_v2 = vmul.f32 %v881_v62, %v760_v27  ;;  %v969_v35 = vmul.f32 %v881_v62, %v761_v29  ;;  %vm898_vm1 = vweird.f32 %v4008_v32 }
 0x171   :  { %v885_v24 = vmul.f32 0.5, %v884_v15  ;;  %v764_v4 = vsub.f32 %v3737_v46, %v3985_v16 }
 0x172   :  { %v739_v63 = vmax.f32 %v723_v25, 0.0  ;;  %v1005_v31 = vmul.f32 %v3850_v5, %v968_v2  ;;  %v1006_v49 = vmul.f32 %v3857_v13, %v969_v35 }
 0x173   :  { %v886_v51 = vsub.f32 1.5, %v885_v24  ;;  %v567_v28 = vpop.xlane.xlu0 %566 }
 0x174   :  { %v4024_v60 = vmul.f32 %v3802_v58, %v567_v28  ;;  %v3166_v3 = vpop.eup %3165  ;;  %v4026_v39 = vadd.f32 1e-05, %v739_v63  ;;  %v1043_v22 = vadd.f32 %v3862_v26, %v1006_v49  ;;  %v765_v63 = vsub.f32 %v3740_v47, %v3985_v16 }
 0x175   :  { %v887_v52 = vmul.f32 %v3164_v53, %v886_v51  ;;  %v670_v55 = vpop.xlane.xlu1 %669  ;;  %v893_v42 = vmul.f32 %v3166_v3, %v4008_v32  ;;  %vm899_vm2 = vweird.f32 %v3166_v3 }
 0x176   :  { %3167 = vrsqrt.f32 %v4026_v39  ;;  %v692_v34 = vmul.f32 %v670_v55, %v3802_v58  ;;  %v708_v0 = vmul.f32 %v4024_v60, %v4024_v60  ;;  %1197 = vmatmul.f32.gmra.mxu0 %v1072_v7  ;;  %1327 = vmatmul.f32.gmra.mxu2 %v1072_v7  ;;  %vm900_vm3 = vmor %vm898_vm1, %vm899_vm2  ;;  %v1075_v29 = vmax.f32 %v1043_v22, 0.0 }
 0x177   :  { %v894_v40 = vmul.f32 %v3166_v3, %v893_v42  ;;  %v891_v41 = vsel %vm890_vm0, %v3164_v53, %v887_v52  ;;  %1262 = vmatmul.f32.gmra.mxu1 %v1073_v36  ;;  %1392 = vmatmul.f32.gmra.mxu3 %v1073_v36  ;;  %v1042_v53 = vadd.f32 %v3860_v20, %v1005_v31  ;;  %vm908_vm4 = vweird.f32 %v4026_v39 }
 0x178   :  { %v724_v37 = vsub.f32 %v692_v34, %v708_v0  ;;  %v970_v1 = vmul.f32 %v891_v41, %v762_v59  ;;  %v971_v10 = vmul.f32 %v891_v41, %v763_v61 }
 0x179   :  { %v895_v11 = vmul.f32 0.5, %v894_v40  ;;  %v1074_v27 = vmax.f32 %v1042_v53, 0.0 }
 0x17a   :  { %v740_v43 = vmax.f32 %v724_v37, 0.0  ;;  %v1007_v24 = vmul.f32 %v3850_v5, %v970_v1  ;;  %v1008_v25 = vmul.f32 %v3857_v13, %v971_v10  ;;  %v766_v37 = vsub.f32 %v3749_v8, %v4002_v50 }
 0x17b   :  { %v570_v12 = vpop.xlane.xlu2 %569  ;;  %v896_v18 = vsub.f32 1.5, %v895_v11 }
 0x17c   :  { %v4042_v15 = vmul.f32 %v3802_v58, %v570_v12  ;;  %v3168_v19 = vpop.eup %3167  ;;  %v4047_v23 = vadd.f32 1e-05, %v740_v43  ;;  %v1044_v35 = vadd.f32 %v3860_v20, %v1007_v24  ;;  %v1045_v52 = vadd.f32 %v3862_v26, %v1008_v25 }
 0x17d   :  { %v673_v6 = vpop.xlane.xlu0 %672  ;;  %v897_v21 = vmul.f32 %v3166_v3, %v896_v18  ;;  %v903_v44 = vmul.f32 %v3168_v19, %v4026_v39  ;;  %vm909_vm5 = vweird.f32 %v3168_v19  ;;  %v767_v12 = vsub.f32 %v3752_v9, %v4002_v50 }
 0x17e   :  { %3169 = vrsqrt.f32 %v4047_v23  ;;  %v709_v38 = vmul.f32 %v4042_v15, %v4042_v15  ;;  %v693_v32 = vmul.f32 %v673_v6, %v3802_v58  ;;  %1200 = vmatmul.f32.gmra.mxu0 %v1074_v27  ;;  %1330 = vmatmul.f32.gmra.mxu2 %v1074_v27  ;;  %v1076_v49 = vmax.f32 %v1044_v35, 0.0  ;;  %vm910_vm6 = vmor %vm908_vm4, %vm909_vm5 }
 0x17f   :  { %v904_v62 = vmul.f32 %v3168_v19, %v903_v44  ;;  %v901_v51 = vsel %vm900_vm3, %v3166_v3, %v897_v21  ;;  %1265 = vmatmul.f32.gmra.mxu1 %v1075_v29  ;;  %1395 = vmatmul.f32.gmra.mxu3 %v1075_v29  ;;  %v1077_v39 = vmax.f32 %v1045_v52, 0.0  ;;  %vm918_vm7 = vweird.f32 %v4047_v23 }
 0x180   :  { %v725_v45 = vsub.f32 %v693_v32, %v709_v38  ;;  %v972_v55 = vmul.f32 %v901_v51, %v764_v4  ;;  %v973_v3 = vmul.f32 %v901_v51, %v765_v63  ;;  %v768_v63 = vsub.f32 %v3761_v30, %v4024_v60 }
 0x181   :  { %v905_v28 = vmul.f32 0.5, %v904_v62 }
 0x182   :  { %v741_v7 = vmax.f32 %v725_v45, 0.0  ;;  %v1009_v41 = vmul.f32 %v3850_v5, %v972_v55  ;;  %v1010_v61 = vmul.f32 %v3857_v13, %v973_v3 }
 0x183   :  { %v573_v2 = vpop.xlane.xlu1 %572  ;;  %v906_v42 = vsub.f32 1.5, %v905_v28 }
 0x184   :  { %v4063_v46 = vmul.f32 %v3802_v58, %v573_v2  ;;  %v3170_v34 = vpop.eup %3169  ;;  %v4067_v36 = vadd.f32 1e-05, %v741_v7  ;;  %v1046_v53 = vadd.f32 %v3860_v20, %v1009_v41  ;;  %v770_v41 = vsub.f32 %v3773_v56, %v4042_v15 }
 0x185   :  { %v676_v47 = vpop.xlane.xlu2 %675  ;;  %v907_v16 = vmul.f32 %v3168_v19, %v906_v42  ;;  %v913_v0 = vmul.f32 %v3170_v34, %v4047_v23  ;;  %vm919_vm8 = vweird.f32 %v3170_v34  ;;  %v769_v23 = vsub.f32 %v3764_v33, %v4024_v60 }
 0x186   :  { %v694_v40 = vmul.f32 %v676_v47, %v3802_v58  ;;  %v710_v31 = vmul.f32 %v4063_v46, %v4063_v46  ;;  %3171 = vrsqrt.f32 %v4067_v36  ;;  %1203 = vmatmul.f32.gmra.mxu0 %v1076_v49  ;;  %1333 = vmatmul.f32.gmra.mxu2 %v1076_v49  ;;  %vm920_vm9 = vmor %vm918_vm7, %vm919_vm8  ;;  %v1078_v62 = vmax.f32 %v1046_v53, 0.0 }
 0x187   :  { %v914_v59 = vmul.f32 %v3170_v34, %v913_v0  ;;  %v911_v43 = vsel %vm910_vm6, %v3168_v19, %v907_v16  ;;  %1268 = vmatmul.f32.gmra.mxu1 %v1077_v39  ;;  %1398 = vmatmul.f32.gmra.mxu3 %v1077_v39  ;;  %v1047_v19 = vadd.f32 %v3862_v26, %v1010_v61  ;;  %vm928_vm10 = vweird.f32 %v4067_v36 }
 0x188   :  { %v726_v11 = vsub.f32 %v694_v40, %v710_v31  ;;  %v974_v22 = vmul.f32 %v911_v43, %v766_v37  ;;  %v975_v9 = vmul.f32 %v911_v43, %v767_v12 }
 0x189   :  { %v915_v1 = vmul.f32 0.5, %v914_v59  ;;  %v1079_v29 = vmax.f32 %v1047_v19, 0.0  ;;  %v773_v19 = vsub.f32 %v3788_v17, %v4063_v46 }
 0x18a   :  { %v742_v10 = vmax.f32 %v726_v11, 0.0  ;;  %v1011_v32 = vmul.f32 %v3850_v5, %v974_v22  ;;  %v1012_v4 = vmul.f32 %v3857_v13, %v975_v9 }
 0x18b   :  { %v576_v18 = vpop.xlane.xlu0 %575  ;;  %v916_v6 = vsub.f32 1.5, %v915_v1 }
 0x18c   :  { %v4082_v8 = vmul.f32 %v3802_v58, %v576_v18  ;;  %v790_v50 = vadd.f32 1e-05, %v742_v10  ;;  %v3172_v21 = vpop.eup %3171  ;;  %v1048_v35 = vadd.f32 %v3860_v20, %v1011_v32  ;;  %v1049_v42 = vadd.f32 %v3862_v26, %v1012_v4 }
 0x18d   :  { %v917_v44 = vmul.f32 %v3170_v34, %v916_v6  ;;  %v679_v38 = vpop.xlane.xlu1 %678  ;;  %v923_v25 = vmul.f32 %v3172_v21, %v4067_v36  ;;  %vm929_vm11 = vweird.f32 %v3172_v21  ;;  %v771_v36 = vsub.f32 %v3776_v57, %v4042_v15 }
 0x18e   :  { %v711_v24 = vmul.f32 %v4082_v8, %v4082_v8  ;;  %3173 = vrsqrt.f32 %v790_v50  ;;  %v695_v27 = vmul.f32 %v679_v38, %v3802_v58  ;;  %1206 = vmatmul.f32.gmra.mxu0 %v1078_v62  ;;  %1336 = vmatmul.f32.gmra.mxu2 %v1078_v62  ;;  %v1080_v47 = vmax.f32 %v1048_v35, 0.0  ;;  %vm930_vm12 = vmor %vm928_vm10, %vm929_vm11 }
 0x18f   :  { %v921_v51 = vsel %vm920_vm9, %v3170_v34, %v917_v44  ;;  %v924_v28 = vmul.f32 %v3172_v21, %v923_v25  ;;  %1271 = vmatmul.f32.gmra.mxu1 %v1079_v29  ;;  %1401 = vmatmul.f32.gmra.mxu3 %v1079_v29  ;;  %v1081_v40 = vmax.f32 %v1049_v42, 0.0  ;;  %vm938_vm13 = vweird.f32 %v790_v50 }
 0x190   :  { %v727_v45 = vsub.f32 %v695_v27, %v711_v24  ;;  %v976_v52 = vmul.f32 %v921_v51, %v768_v63  ;;  %v977_v7 = vmul.f32 %v921_v51, %v769_v23  ;;  %v772_v6 = vsub.f32 %v3785_v14, %v4063_v46 }
 0x191   :  { %v925_v2 = vmul.f32 0.5, %v924_v28  ;;  %v774_v27 = vsub.f32 %v3797_v48, %v4082_v8  ;;  %v775_v29 = vsub.f32 %v3800_v54, %v4082_v8 }
 0x192   :  { %v743_v55 = vmax.f32 %v727_v45, 0.0  ;;  %v1013_v16 = vmul.f32 %v3850_v5, %v976_v52  ;;  %v1014_v31 = vmul.f32 %v3857_v13, %v977_v7 }
 0x193   :  { %v926_v34 = vsub.f32 1.5, %v925_v2 }
 0x194   :  { %v3174_v3 = vpop.eup %3173  ;;  %v791_v33 = vadd.f32 1e-05, %v743_v55  ;;  %v1050_v39 = vadd.f32 %v3860_v20, %v1013_v16  ;;  %v1051_v37 = vadd.f32 %v3862_v26, %v1014_v31  ;;  %v1154_v55 = vld [vmem:[%s5218_s8] sm:$0x3] }
 0x195   :  { %v933_v30 = vmul.f32 %v3174_v3, %v790_v50  ;;  %v927_v60 = vmul.f32 %v3172_v21, %v926_v34  ;;  %vm939_vm14 = vweird.f32 %v3174_v3  ;;  %v4134_v7 = vperm.slane %v1154_v55, 1 }
 0x196   :  { %3175 = vrsqrt.f32 %v791_v33  ;;  %1209 = vmatmul.f32.gmra.mxu0 %v1080_v47  ;;  %1339 = vmatmul.f32.gmra.mxu2 %v1080_v47  ;;  %vm940_vm15 = vmor %vm938_vm13, %vm939_vm14  ;;  %v1082_v10 = vmax.f32 %v1050_v39, 0.0  ;;  %v1083_v57 = vmax.f32 %v1051_v37, 0.0  ;;  %vm948_vm0 = vweird.f32 %v791_v33  ;;  %v2038_v39 = vld [vmem:[#allocation6 + $0x1f0] sm:$0xff] }
 0x197   :  { %v934_v0 = vmul.f32 %v3174_v3, %v933_v30  ;;  %v931_v49 = vsel %vm930_vm12, %v3172_v21, %v927_v60  ;;  %1274 = vmatmul.f32.gmra.mxu1 %v1081_v40  ;;  %1404 = vmatmul.f32.gmra.mxu3 %v1081_v40 }
 0x198   :  { %v978_v11 = vmul.f32 %v931_v49, %v770_v41  ;;  %v979_v43 = vmul.f32 %v931_v49, %v771_v36  ;;  %v2039_v41 = vld [vmem:[#allocation6 + $0x1f8] sm:$0xff]  ;;  %2111 = vmatpush.msra.mxu1 %v2038_v39  ;;  %v1998_v39 = vld [vmem:[#allocation6 + $0xb0] sm:$0xff] }
 0x199   :  { %v935_v59 = vmul.f32 0.5, %v934_v0  ;;  %2241 = vmatpush.msra.mxu3 %v2039_v41 }
 0x19a   :  { %v1015_v15 = vmul.f32 %v3850_v5, %v978_v11  ;;  %v1016_v18 = vmul.f32 %v3857_v13, %v979_v43 }
 0x19b   :  { %v936_v61 = vsub.f32 1.5, %v935_v59  ;;  %v2006_v59 = vld [vmem:[#allocation6 + $0xf0] sm:$0xff] }
 0x19c   :  { %v3176_v12 = vpop.eup %3175  ;;  %v1052_v50 = vadd.f32 %v3860_v20, %v1015_v15  ;;  %v1053_v21 = vadd.f32 %v3862_v26, %v1016_v18  ;;  %2046 = vmatpush.msra.mxu0 %v2006_v59 }
 0x19d   :  { %v937_v1 = vmul.f32 %v3174_v3, %v936_v61  ;;  %v943_v56 = vmul.f32 %v3176_v12, %v791_v33  ;;  %vm949_vm1 = vweird.f32 %v3176_v12  ;;  %v2005_v61 = vld [vmem:[#allocation6 + $0xe8] sm:$0xff] }
 0x19e   :  { %1212 = vmatmul.f32.gmra.mxu0 %v1082_v10  ;;  %1342 = vmatmul.f32.gmra.mxu2 %v1082_v10  ;;  %vm950_vm2 = vmor %vm948_vm0, %vm949_vm1  ;;  %v1084_v14 = vmax.f32 %v1052_v50, 0.0  ;;  %v1085_v62 = vmax.f32 %v1053_v21, 0.0 }
 0x19f   :  { %v944_v53 = vmul.f32 %v3176_v12, %v943_v56  ;;  %v941_v22 = vsel %vm940_vm15, %v3174_v3, %v937_v1  ;;  %1277 = vmatmul.f32.gmra.mxu1 %v1083_v57  ;;  %1407 = vmatmul.f32.gmra.mxu3 %v1083_v57 }
 0x1a0   :  { %v980_v44 = vmul.f32 %v941_v22, %v772_v6  ;;  %v981_v38 = vmul.f32 %v941_v22, %v773_v19  ;;  %v2004_v6 = vld [vmem:[#allocation6 + $0xe0] sm:$0xff] }
 0x1a1   :  { %v945_v9 = vmul.f32 0.5, %v944_v53  ;;  %v2037_v53 = vld [vmem:[#allocation6 + $0x1e8] sm:$0xff]  ;;  %v2036_v19 = vld [vmem:[#allocation6 + $0x1e0] sm:$0xff]  ;;  %2047 = vmatpush.msra.mxu0 %v2004_v6 }
 0x1a2   :  { %v1017_v17 = vmul.f32 %v3850_v5, %v980_v44  ;;  %v1018_v46 = vmul.f32 %v3857_v13, %v981_v38  ;;  %2242 = vmatpush.msra.mxu3 %v2037_v53  ;;  %2112 = vmatpush.msra.mxu1 %v2036_v19 }
 0x1a3   :  { %v946_v24 = vsub.f32 1.5, %v945_v9  ;;  %v2003_v9 = vld [vmem:[#allocation6 + $0xd8] sm:$0xff] }
 0x1a4   :  { %v1054_v4 = vadd.f32 %v3860_v20, %v1017_v17  ;;  %v1055_v51 = vadd.f32 %v3862_v26, %v1018_v46  ;;  %v2035_v17 = vld [vmem:[#allocation6 + $0x1d8] sm:$0xff] }
 0x1a5   :  { %v947_v25 = vmul.f32 %v3176_v12, %v946_v24  ;;  %2243 = vmatpush.msra.mxu3 %v2035_v17 }
 0x1a6   :  { %1215 = vmatmul.f32.gmra.mxu0 %v1084_v14  ;;  %1345 = vmatmul.f32.gmra.mxu2 %v1084_v14  ;;  %v1086_v23 = vmax.f32 %v1054_v4, 0.0  ;;  %v1087_v45 = vmax.f32 %v1055_v51, 0.0 }
 0x1a7   :  { %v951_v32 = vsel %vm950_vm2, %v3176_v12, %v947_v25  ;;  %1280 = vmatmul.f32.gmra.mxu1 %v1085_v62  ;;  %1410 = vmatmul.f32.gmra.mxu3 %v1085_v62 }
 0x1a8   :  { %v982_v63 = vmul.f32 %v951_v32, %v774_v27  ;;  %v983_v28 = vmul.f32 %v951_v32, %v775_v29  ;;  %v2002_v32 = vld [vmem:[#allocation6 + $0xd0] sm:$0xff]  ;;  %v2001_v29 = vld [vmem:[#allocation6 + $0xc8] sm:$0xff] }
 0x1a9   :  { %v2034_v27 = vld [vmem:[#allocation6 + $0x1d0] sm:$0xff]  ;;  %2048 = vmatpush.msra.mxu0 %v2002_v32 }
 0x1aa   :  { %v1019_v2 = vmul.f32 %v3850_v5, %v982_v63  ;;  %v1020_v35 = vmul.f32 %v3857_v13, %v983_v28  ;;  %v4132_v5 = vperm.slane %v1154_v55, 0  ;;  %2113 = vmatpush.msra.mxu1 %v2034_v27 }
 0x1ac   :  { %v1056_v48 = vadd.f32 %v3860_v20, %v1019_v2  ;;  %v1057_v54 = vadd.f32 %v3862_v26, %v1020_v35  ;;  %v2007_v26 = vld [vmem:[#allocation6 + $0xf8] sm:$0xff] }
 0x1ad   :  { %2176 = vmatpush.msra.mxu2 %v2007_v26 }
 0x1ae   :  { %1218 = vmatmul.f32.gmra.mxu0 %v1086_v23  ;;  %1348 = vmatmul.f32.gmra.mxu2 %v1086_v23  ;;  %v1088_v8 = vmax.f32 %v1056_v48, 0.0  ;;  %v1089_v52 = vmax.f32 %v1057_v54, 0.0 }
 0x1af   :  { %1283 = vmatmul.f32.gmra.mxu1 %v1087_v45  ;;  %1413 = vmatmul.f32.gmra.mxu3 %v1087_v45 }
 0x1b0   :  { %2177 = vmatpush.msra.mxu2 %v2005_v61  ;;  %v2030_v61 = vld [vmem:[#allocation6 + $0x1b0] sm:$0xff] }
 0x1b2   :  { %2178 = vmatpush.msra.mxu2 %v2003_v9  ;;  %v2029_v9 = vld [vmem:[#allocation6 + $0x1a8] sm:$0xff] }
 0x1b4   :  { %2179 = vmatpush.msra.mxu2 %v2001_v29 }
 0x1b6   :  { %1221 = vmatmul.f32.gmra.mxu0 %v1088_v8  ;;  %1351 = vmatmul.f32.gmra.mxu2 %v1088_v8 }
 0x1b7   :  { %1286 = vmatmul.f32.gmra.mxu1 %v1089_v52  ;;  %1416 = vmatmul.f32.gmra.mxu3 %v1089_v52  ;;  %v2033_v52 = vld [vmem:[#allocation6 + $0x1c8] sm:$0xff] }
 0x1b8   :  { %2244 = vmatpush.msra.mxu3 %v2033_v52 }
 0x1bb   :  { %v1177_v13 = vpop.f32.mrf.mxu0 }
 0x1bc   :  { %v1242_v42 = vpop.f32.mrf.mxu1  ;;  %v1178_v20 = vadd.f32 %v1177_v13, %v4132_v5  ;;  %v2000_v13 = vld [vmem:[#allocation6 + $0xc0] sm:$0xff] }
 0x1bd   :  { %2049 = vmatpush.msra.mxu0 %v2000_v13 }
 0x1be   :  { %v4138_v30 = vadd.f32 %v1242_v42, %v1178_v20  ;;  %v2032_v42 = vld [vmem:[#allocation6 + $0x1c0] sm:$0xff]  ;;  %v1999_v20 = vld [vmem:[#allocation6 + $0xb8] sm:$0xff] }
 0x1bf   :  { %2114 = vmatpush.msra.mxu1 %v2032_v42  ;;  %2180 = vmatpush.msra.mxu2 %v1999_v20 }
 0x1c0   :  { %v1486_v40 = vmul.f32 %v4138_v30, %v4138_v30  ;;  %2050 = vmatpush.msra.mxu0 %v1998_v39 }
 0x1c1   :  { %v1307_v3 = vpop.f32.mrf.mxu2  ;;  %2115 = vmatpush.msra.mxu1 %v2030_v61 }
 0x1c2   :  { %v1308_v34 = vadd.f32 %v1307_v3, %v4134_v7  ;;  %v1372_v33 = vpop.f32.mrf.mxu3 }
 0x1c3   :  { %v1180_v47 = vpop.f32.mrf.mxu0 }
 0x1c4   :  { %v4140_v60 = vadd.f32 %v1372_v33, %v1308_v34  ;;  %v1245_v16 = vpop.f32.mrf.mxu1  ;;  %v1181_v49 = vadd.f32 %v1180_v47, %v4132_v5 }
 0x1c6   :  { %v1422_v0 = vadd.f32 %v4140_v60, %v4138_v30  ;;  %v1487_v31 = vmul.f32 %v4140_v60, %v4140_v60  ;;  %v4149_v11 = vadd.f32 %v1245_v16, %v1181_v49 }
 0x1c8   :  { %1423 = vadd.xlane.f32.xlu2 %v1422_v0  ;;  %v1518_v36 = vadd.f32 %v1487_v31, %v1486_v40  ;;  %v1488_v15 = vmul.f32 %v4149_v11, %v4149_v11 }
 0x1c9   :  { %v1310_v37 = vpop.f32.mrf.mxu2 }
 0x1ca   :  { %1519 = vadd.xlane.f32.xlu0 %v1518_v36  ;;  %v1311_v43 = vadd.f32 %v1310_v37, %v4134_v7  ;;  %v1375_v12 = vpop.f32.mrf.mxu3  ;;  %v2031_v36 = vld [vmem:[#allocation6 + $0x1b8] sm:$0xff]  ;;  %v1997_v37 = vld [vmem:[#allocation6 + $0xa8] sm:$0xff] }
 0x1cb   :  { %v1183_v56 = vpop.f32.mrf.mxu0  ;;  %2245 = vmatpush.msra.mxu3 %v2031_v36  ;;  %2181 = vmatpush.msra.mxu2 %v1997_v37  ;;  %v2024_v36 = vld [vmem:[#allocation6 + $0x180] sm:$0xff] }
 0x1cc   :  { %v4152_v1 = vadd.f32 %v1375_v12, %v1311_v43  ;;  %v1248_v10 = vpop.f32.mrf.mxu1  ;;  %v1184_v22 = vadd.f32 %v1183_v56, %v4132_v5 }
 0x1cd   :  { %2246 = vmatpush.msra.mxu3 %v2029_v9 }
 0x1ce   :  { %v1425_v57 = vadd.f32 %v4152_v1, %v4149_v11  ;;  %v1489_v18 = vmul.f32 %v4152_v1, %v4152_v1  ;;  %v4161_v21 = vadd.f32 %v1248_v10, %v1184_v22 }
 0x1d0   :  { %1426 = vadd.xlane.f32.xlu1 %v1425_v57  ;;  %v1521_v50 = vadd.f32 %v1489_v18, %v1488_v15  ;;  %v1490_v46 = vmul.f32 %v4161_v21, %v4161_v21 }
 0x1d1   :  { %v1313_v44 = vpop.f32.mrf.mxu2 }
 0x1d2   :  { %1522 = vadd.xlane.f32.xlu2 %v1521_v50  ;;  %v1378_v38 = vpop.f32.mrf.mxu3  ;;  %v1314_v24 = vadd.f32 %v1313_v44, %v4134_v7  ;;  %v1996_v44 = vld [vmem:[#allocation6 + $0xa0] sm:$0xff] }
 0x1d3   :  { %v1186_v25 = vpop.f32.mrf.mxu0  ;;  %2051 = vmatpush.msra.mxu0 %v1996_v44  ;;  %v2022_v44 = vld [vmem:[#allocation6 + $0x170] sm:$0xff] }
 0x1d4   :  { %v1251_v14 = vpop.f32.mrf.mxu1  ;;  %v4164_v62 = vadd.f32 %v1378_v38, %v1314_v24  ;;  %v1187_v4 = vadd.f32 %v1186_v25, %v4132_v5  ;;  %v2028_v38 = vld [vmem:[#allocation6 + $0x1a0] sm:$0xff]  ;;  %v1995_v24 = vld [vmem:[#allocation6 + $0x98] sm:$0xff] }
 0x1d5   :  { %2116 = vmatpush.msra.mxu1 %v2028_v38  ;;  %2182 = vmatpush.msra.mxu2 %v1995_v24  ;;  %v1989_v38 = vld [vmem:[#allocation6 + $0x68] sm:$0xff] }
 0x1d6   :  { %v1428_v51 = vadd.f32 %v4164_v62, %v4161_v21  ;;  %v1491_v63 = vmul.f32 %v4164_v62, %v4164_v62  ;;  %v4173_v2 = vadd.f32 %v1251_v14, %v1187_v4 }
 0x1d8   :  { %1429 = vadd.xlane.f32.xlu0 %v1428_v51  ;;  %v1524_v28 = vadd.f32 %v1491_v63, %v1490_v46  ;;  %v1492_v26 = vmul.f32 %v4173_v2, %v4173_v2 }
 0x1d9   :  { %v1316_v23 = vpop.f32.mrf.mxu2 }
 0x1da   :  { %v1381_v45 = vpop.f32.mrf.mxu3  ;;  %v1317_v35 = vadd.f32 %v1316_v23, %v4134_v7  ;;  %1525 = vadd.xlane.f32.xlu1 %v1524_v28  ;;  %v2027_v23 = vld [vmem:[#allocation6 + $0x198] sm:$0xff] }
 0x1db   :  { %v1189_v48 = vpop.f32.mrf.mxu0  ;;  %2247 = vmatpush.msra.mxu3 %v2027_v23 }
 0x1dc   :  { %v1254_v54 = vpop.f32.mrf.mxu1  ;;  %v4176_v8 = vadd.f32 %v1381_v45, %v1317_v35  ;;  %v1190_v55 = vadd.f32 %v1189_v48, %v4132_v5  ;;  %v1994_v35 = vld [vmem:[#allocation6 + $0x90] sm:$0xff] }
 0x1dd   :  { %v2026_v48 = vld [vmem:[#allocation6 + $0x190] sm:$0xff]  ;;  %2052 = vmatpush.msra.mxu0 %v1994_v35 }
 0x1de   :  { %v1431_v3 = vadd.f32 %v4176_v8, %v4173_v2  ;;  %v1493_v34 = vmul.f32 %v4176_v8, %v4176_v8  ;;  %v4185_v47 = vadd.f32 %v1254_v54, %v1190_v55  ;;  %v1993_v54 = vld [vmem:[#allocation6 + $0x88] sm:$0xff]  ;;  %2117 = vmatpush.msra.mxu1 %v2026_v48  ;;  %v1988_v48 = vld [vmem:[#allocation6 + $0x60] sm:$0xff] }
 0x1df   :  { %2183 = vmatpush.msra.mxu2 %v1993_v54  ;;  %v2020_v54 = vld [vmem:[#allocation6 + $0x160] sm:$0xff] }
 0x1e0   :  { %1432 = vadd.xlane.f32.xlu2 %v1431_v3  ;;  %v1527_v33 = vadd.f32 %v1493_v34, %v1492_v26  ;;  %v1494_v59 = vmul.f32 %v4185_v47, %v4185_v47  ;;  %2118 = vmatpush.msra.mxu1 %v2024_v36  ;;  %v2019_v36 = vld [vmem:[#allocation6 + $0x158] sm:$0xff] }
 0x1e1   :  { %v1319_v16 = vpop.f32.mrf.mxu2 }
 0x1e2   :  { %v1384_v0 = vpop.f32.mrf.mxu3  ;;  %v1320_v40 = vadd.f32 %v1319_v16, %v4134_v7  ;;  %1528 = vadd.xlane.f32.xlu0 %v1527_v33  ;;  %2119 = vmatpush.msra.mxu1 %v2022_v44 }
 0x1e3   :  { %v1192_v31 = vpop.f32.mrf.mxu0 }
 0x1e4   :  { %v1257_v49 = vpop.f32.mrf.mxu1  ;;  %v4188_v41 = vadd.f32 %v1384_v0, %v1320_v40  ;;  %v1193_v43 = vadd.f32 %v1192_v31, %v4132_v5  ;;  %v2025_v40 = vld [vmem:[#allocation6 + $0x188] sm:$0xff]  ;;  %2120 = vmatpush.msra.mxu1 %v2020_v54 }
 0x1e5   :  { %2248 = vmatpush.msra.mxu3 %v2025_v40 }
 0x1e6   :  { %v1434_v12 = vadd.f32 %v4188_v41, %v4185_v47  ;;  %v1495_v56 = vmul.f32 %v4188_v41, %v4188_v41  ;;  %v4197_v18 = vadd.f32 %v1257_v49, %v1193_v43  ;;  %v1992_v49 = vld [vmem:[#allocation6 + $0x80] sm:$0xff] }
 0x1e7   :  { %2053 = vmatpush.msra.mxu0 %v1992_v49 }
 0x1e8   :  { %1435 = vadd.xlane.f32.xlu1 %v1434_v12  ;;  %v1530_v10 = vadd.f32 %v1495_v56, %v1494_v59  ;;  %v1496_v14 = vmul.f32 %v4197_v18, %v4197_v18  ;;  %v1991_v59 = vld [vmem:[#allocation6 + $0x78] sm:$0xff] }
 0x1e9   :  { %v1322_v57 = vpop.f32.mrf.mxu2  ;;  %2184 = vmatpush.msra.mxu2 %v1991_v59 }
 0x1ea   :  { %v1387_v15 = vpop.f32.mrf.mxu3  ;;  %v1323_v53 = vadd.f32 %v1322_v57, %v4134_v7  ;;  %1531 = vadd.xlane.f32.xlu2 %v1530_v10 }
 0x1eb   :  { %v1195_v22 = vpop.f32.mrf.mxu0  ;;  %2185 = vmatpush.msra.mxu2 %v1989_v38 }
 0x1ec   :  { %v1260_v6 = vpop.f32.mrf.mxu1  ;;  %v4200_v19 = vadd.f32 %v1387_v15, %v1323_v53  ;;  %v1196_v50 = vadd.f32 %v1195_v22, %v4132_v5 }
 0x1ee   :  { %v1437_v25 = vadd.f32 %v4200_v19, %v4197_v18  ;;  %v1497_v17 = vmul.f32 %v4200_v19, %v4200_v19  ;;  %v4209_v32 = vadd.f32 %v1260_v6, %v1196_v50  ;;  %v2023_v6 = vld [vmem:[#allocation6 + $0x178] sm:$0xff]  ;;  %v1990_v50 = vld [vmem:[#allocation6 + $0x70] sm:$0xff] }
 0x1ef   :  { %2249 = vmatpush.msra.mxu3 %v2023_v6  ;;  %2054 = vmatpush.msra.mxu0 %v1990_v50 }
 0x1f0   :  { %1438 = vadd.xlane.f32.xlu0 %v1437_v25  ;;  %v1533_v46 = vadd.f32 %v1497_v17, %v1496_v14  ;;  %v1498_v45 = vmul.f32 %v4209_v32, %v4209_v32 }
 0x1f1   :  { %v1325_v27 = vpop.f32.mrf.mxu2  ;;  %2055 = vmatpush.msra.mxu0 %v1988_v48 }
 0x1f2   :  { %v1390_v29 = vpop.f32.mrf.mxu3  ;;  %v1326_v4 = vadd.f32 %v1325_v27, %v4134_v7  ;;  %1534 = vadd.xlane.f32.xlu1 %v1533_v46 }
 0x1f3   :  { %v1198_v51 = vpop.f32.mrf.mxu0 }
 0x1f4   :  { %v1263_v63 = vpop.f32.mrf.mxu1  ;;  %v4212_v28 = vadd.f32 %v1390_v29, %v1326_v4  ;;  %v1199_v52 = vadd.f32 %v1198_v51, %v4132_v5 }
 0x1f6   :  { %v1440_v55 = vadd.f32 %v4212_v28, %v4209_v32  ;;  %v1499_v13 = vmul.f32 %v4212_v28, %v4212_v28  ;;  %v4221_v26 = vadd.f32 %v1263_v63, %v1199_v52  ;;  %v1987_v52 = vld [vmem:[#allocation6 + $0x58] sm:$0xff] }
 0x1f7   :  { %2186 = vmatpush.msra.mxu2 %v1987_v52 }
 0x1f8   :  { %1441 = vadd.xlane.f32.xlu2 %v1440_v55  ;;  %v1536_v42 = vadd.f32 %v1499_v13, %v1498_v45  ;;  %v1500_v61 = vmul.f32 %v4221_v26, %v4221_v26  ;;  %v2021_v45 = vld [vmem:[#allocation6 + $0x168] sm:$0xff] }
 0x1f9   :  { %v1328_v20 = vpop.f32.mrf.mxu2  ;;  %2250 = vmatpush.msra.mxu3 %v2021_v45 }
 0x1fa   :  { %v1393_v3 = vpop.f32.mrf.mxu3  ;;  %v1329_v34 = vadd.f32 %v1328_v20, %v4134_v7  ;;  %1537 = vadd.xlane.f32.xlu0 %v1536_v42 }
 0x1fb   :  { %v1201_v33 = vpop.f32.mrf.mxu0  ;;  %2251 = vmatpush.msra.mxu3 %v2019_v36 }
 0x1fc   :  { %v1266_v16 = vpop.f32.mrf.mxu1  ;;  %v4224_v0 = vadd.f32 %v1393_v3, %v1329_v34  ;;  %v1202_v31 = vadd.f32 %v1201_v33, %v4132_v5 }
 0x1fe   :  { %v1443_v39 = vadd.f32 %v4224_v0, %v4221_v26  ;;  %v1501_v37 = vmul.f32 %v4224_v0, %v4224_v0  ;;  %v4233_v12 = vadd.f32 %v1266_v16, %v1202_v31 }
 0x200   :  { %1444 = vadd.xlane.f32.xlu1 %v1443_v39  ;;  %v1539_v43 = vadd.f32 %v1501_v37, %v1500_v61  ;;  %v1502_v9 = vmul.f32 %v4233_v12, %v4233_v12  ;;  %v1986_v39 = vld [vmem:[#allocation6 + $0x50] sm:$0xff]  ;;  %v1985_v37 = vld [vmem:[#allocation6 + $0x48] sm:$0xff] }
 0x201   :  { %v1331_v56 = vpop.f32.mrf.mxu2  ;;  %v2018_v61 = vld [vmem:[#allocation6 + $0x150] sm:$0xff]  ;;  %2056 = vmatpush.msra.mxu0 %v1986_v39  ;;  %2187 = vmatpush.msra.mxu2 %v1985_v37 }
 0x202   :  { %v1396_v10 = vpop.f32.mrf.mxu3  ;;  %v1332_v57 = vadd.f32 %v1331_v56, %v4134_v7  ;;  %1540 = vadd.xlane.f32.xlu2 %v1539_v43  ;;  %2121 = vmatpush.msra.mxu1 %v2018_v61 }
 0x203   :  { %v1204_v15 = vpop.f32.mrf.mxu0 }
 0x204   :  { %v1269_v53 = vpop.f32.mrf.mxu1  ;;  %v4236_v22 = vadd.f32 %v1396_v10, %v1332_v57  ;;  %v1205_v24 = vadd.f32 %v1204_v15, %v4132_v5 }
 0x206   :  { %v1446_v25 = vadd.f32 %v4236_v22, %v4233_v12  ;;  %v1503_v14 = vmul.f32 %v4236_v22, %v4236_v22  ;;  %v4245_v29 = vadd.f32 %v1269_v53, %v1205_v24  ;;  %v2017_v24 = vld [vmem:[#allocation6 + $0x148] sm:$0xff] }
 0x207   :  { %2252 = vmatpush.msra.mxu3 %v2017_v24 }
 0x208   :  { %1447 = vadd.xlane.f32.xlu0 %v1446_v25  ;;  %v1542_v17 = vadd.f32 %v1503_v14, %v1502_v9  ;;  %v1504_v13 = vmul.f32 %v4245_v29, %v4245_v29 }
 0x209   :  { %v1334_v46 = vpop.f32.mrf.mxu2 }
 0x20a   :  { %v1399_v27 = vpop.f32.mrf.mxu3  ;;  %v1335_v4 = vadd.f32 %v1334_v46, %v4134_v7  ;;  %1543 = vadd.xlane.f32.xlu1 %v1542_v17 }
 0x20b   :  { %v1207_v51 = vpop.f32.mrf.mxu0 }
 0x20c   :  { %v1272_v63 = vpop.f32.mrf.mxu1  ;;  %v4248_v23 = vadd.f32 %v1399_v27, %v1335_v4  ;;  %v1208_v35 = vadd.f32 %v1207_v51, %v4132_v5 }
 0x20e   :  { %v1449_v55 = vadd.f32 %v4248_v23, %v4245_v29  ;;  %v1505_v42 = vmul.f32 %v4248_v23, %v4248_v23  ;;  %v4257_v3 = vadd.f32 %v1272_v63, %v1208_v35 }
 0x210   :  { %1450 = vadd.xlane.f32.xlu2 %v1449_v55  ;;  %v1545_v20 = vadd.f32 %v1505_v42, %v1504_v13  ;;  %v1506_v59 = vmul.f32 %v4257_v3, %v4257_v3 }
 0x211   :  { %v1337_v34 = vpop.f32.mrf.mxu2 }
 0x212   :  { %v1402_v33 = vpop.f32.mrf.mxu3  ;;  %v1338_v16 = vadd.f32 %v1337_v34, %v4134_v7  ;;  %1546 = vadd.xlane.f32.xlu0 %v1545_v20 }
 0x213   :  { %v1210_v40 = vpop.f32.mrf.mxu0 }
 0x214   :  { %v1275_v31 = vpop.f32.mrf.mxu1  ;;  %v4260_v49 = vadd.f32 %v1402_v33, %v1338_v16  ;;  %v1211_v43 = vadd.f32 %v1210_v40, %v4132_v5 }
 0x216   :  { %v1452_v56 = vadd.f32 %v4260_v49, %v4257_v3  ;;  %v1507_v10 = vmul.f32 %v4260_v49, %v4260_v49  ;;  %v4269_v6 = vadd.f32 %v1275_v31, %v1211_v43 }
 0x218   :  { %1453 = vadd.xlane.f32.xlu1 %v1452_v56  ;;  %v1548_v57 = vadd.f32 %v1507_v10, %v1506_v59  ;;  %v1508_v17 = vmul.f32 %v4269_v6, %v4269_v6 }
 0x219   :  { %v1340_v15 = vpop.f32.mrf.mxu2 }
 0x21a   :  { %v1405_v53 = vpop.f32.mrf.mxu3  ;;  %v1341_v9 = vadd.f32 %v1340_v15, %v4134_v7  ;;  %1549 = vadd.xlane.f32.xlu2 %v1548_v57 }
 0x21b   :  { %v1213_v50 = vpop.f32.mrf.mxu0 }
 0x21c   :  { %v1278_v44 = vpop.f32.mrf.mxu1  ;;  %v4272_v38 = vadd.f32 %v1405_v53, %v1341_v9  ;;  %v1214_v25 = vadd.f32 %v1213_v50, %v4132_v5 }
 0x21e   :  { %v1455_v14 = vadd.f32 %v4272_v38, %v4269_v6  ;;  %v1509_v46 = vmul.f32 %v4272_v38, %v4272_v38  ;;  %v4281_v63 = vadd.f32 %v1278_v44, %v1214_v25 }
 0x220   :  { %1456 = vadd.xlane.f32.xlu0 %v1455_v14  ;;  %v1551_v27 = vadd.f32 %v1509_v46, %v1508_v17  ;;  %v1510_v13 = vmul.f32 %v4281_v63, %v4281_v63  ;;  %v1984_v17 = vld [vmem:[#allocation6 + $0x40] sm:$0xff] }
 0x221   :  { %v1343_v4 = vpop.f32.mrf.mxu2  ;;  %v2016_v46 = vld [vmem:[#allocation6 + $0x140] sm:$0xff]  ;;  %2057 = vmatpush.msra.mxu0 %v1984_v17  ;;  %v2009_v17 = vld [vmem:[#allocation6 + $0x108] sm:$0xff] }
 0x222   :  { %v1408_v51 = vpop.f32.mrf.mxu3  ;;  %v1344_v45 = vadd.f32 %v1343_v4, %v4134_v7  ;;  %1552 = vadd.xlane.f32.xlu1 %v1551_v27  ;;  %v1983_v27 = vld [vmem:[#allocation6 + $0x38] sm:$0xff]  ;;  %2122 = vmatpush.msra.mxu1 %v2016_v46  ;;  %v1976_v46 = vld [vmem:[#allocation6] sm:$0xff] }
 0x223   :  { %v1216_v35 = vpop.f32.mrf.mxu0  ;;  %2188 = vmatpush.msra.mxu2 %v1983_v27 }
 0x224   :  { %v4284_v48 = vadd.f32 %v1408_v51, %v1344_v45  ;;  %v1281_v54 = vpop.f32.mrf.mxu1  ;;  %v1217_v52 = vadd.f32 %v1216_v35, %v4132_v5  ;;  %v2015_v45 = vld [vmem:[#allocation6 + $0x138] sm:$0xff] }
 0x225   :  { %2253 = vmatpush.msra.mxu3 %v2015_v45 }
 0x226   :  { %v1458_v55 = vadd.f32 %v4284_v48, %v4281_v63  ;;  %v1511_v42 = vmul.f32 %v4284_v48, %v4284_v48  ;;  %v4293_v16 = vadd.f32 %v1281_v54, %v1217_v52 }
 0x228   :  { %1459 = vadd.xlane.f32.xlu2 %v1458_v55  ;;  %v1554_v20 = vadd.f32 %v1511_v42, %v1510_v13  ;;  %v1512_v61 = vmul.f32 %v4293_v16, %v4293_v16  ;;  %v1982_v42 = vld [vmem:[#allocation6 + $0x30] sm:$0xff] }
 0x229   :  { %v1346_v34 = vpop.f32.mrf.mxu2  ;;  %2058 = vmatpush.msra.mxu0 %v1982_v42 }
 0x22a   :  { %v1411_v33 = vpop.f32.mrf.mxu3  ;;  %v1347_v40 = vadd.f32 %v1346_v34, %v4134_v7  ;;  %1555 = vadd.xlane.f32.xlu0 %v1554_v20  ;;  %v2014_v20 = vld [vmem:[#allocation6 + $0x130] sm:$0xff] }
 0x22b   :  { %v1219_v31 = vpop.f32.mrf.mxu0  ;;  %2123 = vmatpush.msra.mxu1 %v2014_v20 }
 0x22c   :  { %v4296_v36 = vadd.f32 %v1411_v33, %v1347_v40  ;;  %v1220_v59 = vadd.f32 %v1219_v31, %v4132_v5  ;;  %v1284_v43 = vpop.f32.mrf.mxu1  ;;  %v1981_v31 = vld [vmem:[#allocation6 + $0x28] sm:$0xff] }
 0x22d   :  { %2189 = vmatpush.msra.mxu2 %v1981_v31 }
 0x22e   :  { %v1461_v39 = vadd.f32 %v4296_v36, %v4293_v16  ;;  %v1513_v37 = vmul.f32 %v4296_v36, %v4296_v36  ;;  %v4305_v15 = vadd.f32 %v1284_v43, %v1220_v59  ;;  %v2013_v59 = vld [vmem:[#allocation6 + $0x128] sm:$0xff] }
 0x22f   :  { %2254 = vmatpush.msra.mxu3 %v2013_v59 }
 0x230   :  { %1462 = vadd.xlane.f32.xlu1 %v1461_v39  ;;  %v1557_v56 = vadd.f32 %v1513_v37, %v1512_v61  ;;  %v1514_v25 = vmul.f32 %v4305_v15, %v4305_v15  ;;  %v1980_v61 = vld [vmem:[#allocation6 + $0x20] sm:$0xff] }
 0x231   :  { %v1349_v10 = vpop.f32.mrf.mxu2  ;;  %2059 = vmatpush.msra.mxu0 %v1980_v61 }
 0x232   :  { %v1414_v57 = vpop.f32.mrf.mxu3  ;;  %v1350_v53 = vadd.f32 %v1349_v10, %v4134_v7  ;;  %1558 = vadd.xlane.f32.xlu2 %v1557_v56 }
 0x233   :  { %v1222_v9 = vpop.f32.mrf.mxu0 }
 0x234   :  { %v4308_v50 = vadd.f32 %v1414_v57, %v1350_v53  ;;  %v1223_v44 = vadd.f32 %v1222_v9, %v4132_v5  ;;  %v1287_v35 = vpop.f32.mrf.mxu1  ;;  %v1979_v57 = vld [vmem:[#allocation6 + $0x18] sm:$0xff]  ;;  %v1978_v9 = vld [vmem:[#allocation6 + $0x10] sm:$0xff] }
 0x235   :  { %v2011_v53 = vld [vmem:[#allocation6 + $0x118] sm:$0xff]  ;;  %2190 = vmatpush.msra.mxu2 %v1979_v57  ;;  %2060 = vmatpush.msra.mxu0 %v1978_v9 }
 0x236   :  { %v1464_v24 = vadd.f32 %v4308_v50, %v4305_v15  ;;  %v1515_v14 = vmul.f32 %v4308_v50, %v4308_v50  ;;  %v4320_v52 = vadd.f32 %v1287_v35, %v1223_v44  ;;  %2255 = vmatpush.msra.mxu3 %v2011_v53  ;;  %v1421_v53 = vld [vmem:[%s5220_s10] sm:$0x3] }
 0x237   :  { %2061 = vmatpush.msra.mxu0 %v1976_v46 }
 0x238   :  { %1465 = vadd.xlane.f32.xlu0 %v1464_v24  ;;  %v1560_v4 = vadd.f32 %v1515_v14, %v1514_v25  ;;  %v1516_v56 = vmul.f32 %v4320_v52, %v4320_v52  ;;  %v2010_v24 = vld [vmem:[#allocation6 + $0x110] sm:$0xff]  ;;  %v1977_v14 = vld [vmem:[#allocation6 + $0x8] sm:$0xff]  ;;  %2256 = vmatpush.msra.mxu3 %v2009_v17 }
 0x239   :  { %v1352_v54 = vpop.f32.mrf.mxu2  ;;  %2191 = vmatpush.msra.mxu2 %v1977_v14 }
 0x23a   :  { %v1353_v55 = vadd.f32 %v1352_v54, %v4134_v7  ;;  %1561 = vadd.xlane.f32.xlu1 %v1560_v4  ;;  %v1417_v34 = vpop.f32.mrf.mxu3  ;;  %v2012_v7 = vld [vmem:[#allocation6 + $0x120] sm:$0xff] }
 0x23b   :  { %v1424_v51 = vpop.xlane.xlu2 %1423  ;;  %2124 = vmatpush.msra.mxu1 %v2012_v7 }
 0x23c   :  { %v4318_v5 = vmul.f32 %v1424_v51, %v3802_v58  ;;  %v4326_v39 = vadd.f32 %v1417_v34, %v1353_v55  ;;  %v2008_v51 = vld [vmem:[#allocation6 + $0x100] sm:$0xff] }
 0x23d   :  { %v1520_v13 = vpop.xlane.xlu0 %1519  ;;  %2125 = vmatpush.msra.mxu1 %v2010_v24 }
 0x23e   :  { %v1582_v33 = vmul.f32 %v4318_v5, %v4318_v5  ;;  %v1566_v40 = vmul.f32 %v1520_v13, %v3802_v58  ;;  %v1467_v43 = vadd.f32 %v4326_v39, %v4320_v52  ;;  %v1517_v10 = vmul.f32 %v4326_v39, %v4326_v39 }
 0x23f   :  { %2126 = vmatpush.msra.mxu1 %v2008_v51  ;;  %v1630_v14 = vsub.f32 %v4138_v30, %v4318_v5  ;;  %v1631_v17 = vsub.f32 %v4140_v60, %v4318_v5 }
 0x240   :  { %v1598_v37 = vsub.f32 %v1566_v40, %v1582_v33  ;;  %1468 = vadd.xlane.f32.xlu2 %v1467_v43  ;;  %v1563_v25 = vadd.f32 %v1517_v10, %v1516_v56  ;;  %v1420_v43 = vld [vmem:[%s5219_s9] sm:$0x3] }
 0x241   :  { %v4354_v24 = vperm.slane %v1420_v43, 1 }
 0x242   :  { %v1614_v44 = vmax.f32 %v1598_v37, 0.0  ;;  %1564 = vadd.xlane.f32.xlu0 %v1563_v25 }
 0x243   :  { %v1427_v4 = vpop.xlane.xlu1 %1426 }
 0x244   :  { %v1662_v27 = vadd.f32 1e-05, %v1614_v44  ;;  %v4335_v45 = vmul.f32 %v1427_v4, %v3802_v58  ;;  %v4352_v44 = vperm.slane %v1420_v43, 0 }
 0x245   :  { %v1523_v35 = vpop.xlane.xlu2 %1522 }
 0x246   :  { %3177 = vrsqrt.f32 %v1662_v27  ;;  %v1583_v54 = vmul.f32 %v4335_v45, %v4335_v45  ;;  %v1567_v55 = vmul.f32 %v1523_v35, %v3802_v58  ;;  %vm1684_vm4 = vweird.f32 %v1662_v27 }
 0x248   :  { %v1599_v13 = vsub.f32 %v1567_v55, %v1583_v54  ;;  %v4363_v55 = vperm.slane %v1421_v53, 0 }
 0x24a   :  { %v1615_v42 = vmax.f32 %v1599_v13, 0.0  ;;  %v4365_v13 = vperm.slane %v1421_v53, 1 }
 0x24b   :  { %v1430_v40 = vpop.xlane.xlu0 %1429 }
 0x24c   :  { %v3178_v20 = vpop.eup %3177  ;;  %v1663_v33 = vadd.f32 1e-05, %v1615_v42  ;;  %v4341_v59 = vmul.f32 %v1430_v40, %v3802_v58 }
 0x24d   :  { %v1679_v34 = vmul.f32 %v3178_v20, %v1662_v27  ;;  %v1526_v61 = vpop.xlane.xlu1 %1525  ;;  %vm1685_vm3 = vweird.f32 %v3178_v20 }
 0x24e   :  { %3179 = vrsqrt.f32 %v1663_v33  ;;  %v1568_v37 = vmul.f32 %v1526_v61, %v3802_v58  ;;  %v1584_v56 = vmul.f32 %v4341_v59, %v4341_v59  ;;  %vm1686_vm5 = vmor %vm1684_vm4, %vm1685_vm3  ;;  %vm1694_vm7 = vweird.f32 %v1663_v33 }
 0x24f   :  { %v1680_v31 = vmul.f32 %v3178_v20, %v1679_v34 }
 0x250   :  { %v1600_v57 = vsub.f32 %v1568_v37, %v1584_v56 }
 0x251   :  { %v1681_v7 = vmul.f32 0.5, %v1680_v31 }
 0x252   :  { %v1616_v4 = vmax.f32 %v1600_v57, 0.0 }
 0x253   :  { %v1682_v10 = vsub.f32 1.5, %v1681_v7  ;;  %v1433_v51 = vpop.xlane.xlu2 %1432 }
 0x254   :  { %v3180_v9 = vpop.eup %3179  ;;  %v4361_v54 = vmul.f32 %v1433_v51, %v3802_v58  ;;  %v1664_v40 = vadd.f32 1e-05, %v1616_v4 }
 0x255   :  { %v1683_v25 = vmul.f32 %v3178_v20, %v1682_v10  ;;  %v1689_v46 = vmul.f32 %v3180_v9, %v1663_v33  ;;  %v1529_v30 = vpop.xlane.xlu0 %1528  ;;  %vm1695_vm6 = vweird.f32 %v3180_v9  ;;  %v1633_v33 = vsub.f32 %v4152_v1, %v4335_v45 }
 0x256   :  { %v1585_v60 = vmul.f32 %v4361_v54, %v4361_v54  ;;  %v1569_v5 = vmul.f32 %v1529_v30, %v3802_v58  ;;  %3181 = vrsqrt.f32 %v1664_v40  ;;  %vm1696_vm8 = vmor %vm1694_vm7, %vm1695_vm6  ;;  %vm1704_vm10 = vweird.f32 %v1664_v40 }
 0x257   :  { %v1687_v35 = vsel %vm1686_vm5, %v3178_v20, %v1683_v25  ;;  %v1690_v34 = vmul.f32 %v3180_v9, %v1689_v46 }
 0x258   :  { %v1838_v42 = vmul.f32 %v1687_v35, %v1630_v14  ;;  %v1839_v27 = vmul.f32 %v1687_v35, %v1631_v17  ;;  %v1601_v7 = vsub.f32 %v1569_v5, %v1585_v60 }
 0x259   :  { %v1691_v61 = vmul.f32 0.5, %v1690_v34 }
 0x25a   :  { %v1875_v31 = vmul.f32 %v4352_v44, %v1838_v42  ;;  %v1876_v20 = vmul.f32 %v4354_v24, %v1839_v27  ;;  %v1617_v10 = vmax.f32 %v1601_v7, 0.0  ;;  %v1632_v42 = vsub.f32 %v4149_v11, %v4335_v45 }
 0x25b   :  { %v1692_v37 = vsub.f32 1.5, %v1691_v61  ;;  %v1436_v53 = vpop.xlane.xlu1 %1435 }
 0x25c   :  { %v1912_v43 = vadd.f32 %v4363_v55, %v1875_v31  ;;  %v1913_v56 = vadd.f32 %v4365_v13, %v1876_v20  ;;  %v4374_v17 = vadd.f32 1e-05, %v1617_v10  ;;  %v4377_v46 = vmul.f32 %v1436_v53, %v3802_v58  ;;  %v3182_v4 = vpop.eup %3181 }
 0x25d   :  { %v1693_v57 = vmul.f32 %v3180_v9, %v1692_v37  ;;  %v1532_v51 = vpop.xlane.xlu2 %1531  ;;  %v1699_v27 = vmul.f32 %v3182_v4, %v1664_v40  ;;  %vm1705_vm9 = vweird.f32 %v3182_v4 }
 0x25e   :  { %v1944_v25 = vmax.f32 %v1912_v43, 0.0  ;;  %v1945_v14 = vmax.f32 %v1913_v56, 0.0  ;;  %3183 = vrsqrt.f32 %v4374_v17  ;;  %v1570_v34 = vmul.f32 %v1532_v51, %v3802_v58  ;;  %vm1706_vm11 = vmor %vm1704_vm10, %vm1705_vm9 }
 0x25f   :  { %v1697_v35 = vsel %vm1696_vm8, %v3180_v9, %v1693_v57  ;;  %v1586_v30 = vmul.f32 %v4377_v46, %v4377_v46  ;;  %v1700_v60 = vmul.f32 %v3182_v4, %v1699_v27  ;;  %vm1714_vm13 = vweird.f32 %v4374_v17 }
 0x260   :  { %2062 = vmatmul.f32.vlgmr.msra.gmra.mxu0 %v1944_v25  ;;  %2127 = vmatmul.f32.vlgmr.msra.gmra.mxu1 %v1945_v14  ;;  %v1840_v5 = vmul.f32 %v1697_v35, %v1632_v42  ;;  %v1841_v31 = vmul.f32 %v1697_v35, %v1633_v33  ;;  %v1635_v42 = vsub.f32 %v4164_v62, %v4341_v59 }
 0x261   :  { %2192 = vmatmul.f32.vlgmr.msra.gmra.mxu2 %v1944_v25  ;;  %2257 = vmatmul.f32.vlgmr.msra.gmra.mxu3 %v1945_v14  ;;  %v1602_v9 = vsub.f32 %v1570_v34, %v1586_v30  ;;  %v1701_v20 = vmul.f32 0.5, %v1700_v60  ;;  %v1634_v14 = vsub.f32 %v4161_v21, %v4341_v59 }
 0x262   :  { %v1877_v11 = vmul.f32 %v4352_v44, %v1840_v5  ;;  %v1878_v61 = vmul.f32 %v4354_v24, %v1841_v31 }
 0x263   :  { %v1618_v1 = vmax.f32 %v1602_v9, 0.0  ;;  %v1439_v45 = vpop.xlane.xlu0 %1438  ;;  %v1702_v37 = vsub.f32 1.5, %v1701_v20 }
 0x264   :  { %v3184_v7 = vpop.eup %3183  ;;  %v4390_v43 = vmul.f32 %v1439_v45, %v3802_v58  ;;  %v1914_v56 = vadd.f32 %v4363_v55, %v1877_v11  ;;  %v1915_v10 = vadd.f32 %v4365_v13, %v1878_v61 }
 0x265   :  { %v1709_v57 = vmul.f32 %v3184_v7, %v4374_v17  ;;  %v4395_v53 = vadd.f32 1e-05, %v1618_v1  ;;  %v1535_v25 = vpop.xlane.xlu1 %1534  ;;  %v1703_v51 = vmul.f32 %v3182_v4, %v1702_v37  ;;  %vm1715_vm12 = vweird.f32 %v3184_v7 }
 0x266   :  { %v1571_v35 = vmul.f32 %v1535_v25, %v3802_v58  ;;  %v1587_v27 = vmul.f32 %v4390_v43, %v4390_v43  ;;  %v1946_v34 = vmax.f32 %v1914_v56, 0.0  ;;  %v1947_v30 = vmax.f32 %v1915_v10, 0.0  ;;  %vm1716_vm14 = vmor %vm1714_vm13, %vm1715_vm12 }
 0x267   :  { %v1710_v33 = vmul.f32 %v3184_v7, %v1709_v57  ;;  %3185 = vrsqrt.f32 %v4395_v53  ;;  %v1707_v60 = vsel %vm1706_vm11, %v3182_v4, %v1703_v51  ;;  %v1636_v57 = vsub.f32 %v4173_v2, %v4361_v54 }
 0x268   :  { %v1603_v21 = vsub.f32 %v1571_v35, %v1587_v27  ;;  %v1842_v31 = vmul.f32 %v1707_v60, %v1634_v14  ;;  %v1843_v40 = vmul.f32 %v1707_v60, %v1635_v42  ;;  %2065 = vmatmul.f32.gmra.mxu0 %v1946_v34  ;;  %2130 = vmatmul.f32.gmra.mxu1 %v1947_v30  ;;  %vm1724_vm0 = vweird.f32 %v4395_v53 }
 0x269   :  { %v1711_v5 = vmul.f32 0.5, %v1710_v33  ;;  %2195 = vmatmul.f32.gmra.mxu2 %v1946_v34  ;;  %2260 = vmatmul.f32.gmra.mxu3 %v1947_v30  ;;  %v1637_v14 = vsub.f32 %v4176_v8, %v4361_v54 }
 0x26a   :  { %v1619_v20 = vmax.f32 %v1603_v21, 0.0  ;;  %v1879_v59 = vmul.f32 %v4352_v44, %v1842_v31  ;;  %v1880_v11 = vmul.f32 %v4354_v24, %v1843_v40 }
 0x26b   :  { %v1712_v9 = vsub.f32 1.5, %v1711_v5  ;;  %v1442_v62 = vpop.xlane.xlu2 %1441 }
 0x26c   :  { %v4409_v61 = vmul.f32 %v1442_v62, %v3802_v58  ;;  %v4411_v45 = vadd.f32 1e-05, %v1619_v20  ;;  %v1916_v56 = vadd.f32 %v4363_v55, %v1879_v59  ;;  %v1917_v10 = vadd.f32 %v4365_v13, %v1880_v11 }
 0x26d   :  { %v3186_v4 = vpop.eup %3185  ;;  %v1713_v1 = vmul.f32 %v3184_v7, %v1712_v9  ;;  %v1538_v37 = vpop.xlane.xlu0 %1537  ;;  %v1638_v11 = vsub.f32 %v4185_v47, %v4377_v46 }
 0x26e   :  { %v1719_v25 = vmul.f32 %v3186_v4, %v4395_v53  ;;  %3187 = vrsqrt.f32 %v4411_v45  ;;  %v1588_v51 = vmul.f32 %v4409_v61, %v4409_v61  ;;  %v1572_v35 = vmul.f32 %v1538_v37, %v3802_v58 }
 0x26f   :  { %v1948_v33 = vmax.f32 %v1916_v56, 0.0  ;;  %v1949_v27 = vmax.f32 %v1917_v10, 0.0  ;;  %v1717_v34 = vsel %vm1716_vm14, %v3184_v7, %v1713_v1  ;;  %vm1725_vm15 = vweird.f32 %v3186_v4 }
 0x270   :  { %v1720_v42 = vmul.f32 %v3186_v4, %v1719_v25  ;;  %v1604_v2 = vsub.f32 %v1572_v35, %v1588_v51  ;;  %v1844_v30 = vmul.f32 %v1717_v34, %v1636_v57  ;;  %v1845_v17 = vmul.f32 %v1717_v34, %v1637_v14  ;;  %vm1726_vm1 = vmor %vm1724_vm0, %vm1725_vm15 }
 0x271   :  { %2068 = vmatmul.f32.gmra.mxu0 %v1948_v33  ;;  %2133 = vmatmul.f32.gmra.mxu1 %v1949_v27  ;;  %v1639_v56 = vsub.f32 %v4188_v41, %v4377_v46  ;;  %vm1734_vm3 = vweird.f32 %v4411_v45 }
 0x272   :  { %v1721_v60 = vmul.f32 0.5, %v1720_v42  ;;  %v1620_v5 = vmax.f32 %v1604_v2, 0.0  ;;  %2198 = vmatmul.f32.gmra.mxu2 %v1948_v33  ;;  %2263 = vmatmul.f32.gmra.mxu3 %v1949_v27  ;;  %v1881_v54 = vmul.f32 %v4352_v44, %v1844_v30  ;;  %v1882_v21 = vmul.f32 %v4354_v24, %v1845_v17 }
 0x273   :  { %v1445_v8 = vpop.xlane.xlu1 %1444 }
 0x274   :  { %v1722_v31 = vsub.f32 1.5, %v1721_v60  ;;  %v4428_v40 = vmul.f32 %v1445_v8, %v3802_v58  ;;  %v3188_v9 = vpop.eup %3187  ;;  %v4430_v7 = vadd.f32 1e-05, %v1620_v5  ;;  %v1918_v62 = vadd.f32 %v4363_v55, %v1881_v54 }
 0x275   :  { %v1541_v20 = vpop.xlane.xlu2 %1540  ;;  %v1919_v59 = vadd.f32 %v4365_v13, %v1882_v21  ;;  %v1729_v37 = vmul.f32 %v3188_v9, %v4411_v45  ;;  %vm1735_vm2 = vweird.f32 %v3188_v9  ;;  %v1640_v54 = vsub.f32 %v4197_v18, %v4390_v43 }
 0x276   :  { %v1723_v1 = vmul.f32 %v3186_v4, %v1722_v31  ;;  %3189 = vrsqrt.f32 %v4430_v7  ;;  %v1573_v10 = vmul.f32 %v1541_v20, %v3802_v58  ;;  %v1589_v25 = vmul.f32 %v4428_v40, %v4428_v40  ;;  %vm1736_vm4 = vmor %vm1734_vm3, %vm1735_vm2 }
 0x277   :  { %v1730_v57 = vmul.f32 %v3188_v9, %v1729_v37  ;;  %v1950_v14 = vmax.f32 %v1918_v62, 0.0  ;;  %v1951_v51 = vmax.f32 %v1919_v59, 0.0  ;;  %v1641_v20 = vsub.f32 %v4200_v19, %v4390_v43 }
 0x278   :  { %v1727_v47 = vsel %vm1726_vm1, %v3186_v4, %v1723_v1  ;;  %v1605_v42 = vsub.f32 %v1573_v10, %v1589_v25  ;;  %vm1744_vm6 = vweird.f32 %v4430_v7 }
 0x279   :  { %v1731_v35 = vmul.f32 0.5, %v1730_v57  ;;  %2071 = vmatmul.f32.gmra.mxu0 %v1950_v14  ;;  %2136 = vmatmul.f32.gmra.mxu1 %v1951_v51  ;;  %v1846_v33 = vmul.f32 %v1727_v47, %v1638_v11  ;;  %v1847_v41 = vmul.f32 %v1727_v47, %v1639_v56 }
 0x27a   :  { %2201 = vmatmul.f32.gmra.mxu2 %v1950_v14  ;;  %2266 = vmatmul.f32.gmra.mxu3 %v1951_v51  ;;  %v1621_v27 = vmax.f32 %v1605_v42, 0.0 }
 0x27b   :  { %v1448_v46 = vpop.xlane.xlu0 %1447  ;;  %v1732_v53 = vsub.f32 1.5, %v1731_v35  ;;  %v1883_v2 = vmul.f32 %v4352_v44, %v1846_v33  ;;  %v1884_v4 = vmul.f32 %v4354_v24, %v1847_v41 }
 0x27c   :  { %v4445_v34 = vmul.f32 %v1448_v46, %v3802_v58  ;;  %v3190_v30 = vpop.eup %3189  ;;  %v4450_v8 = vadd.f32 1e-05, %v1621_v27  ;;  %v1642_v46 = vsub.f32 %v4209_v32, %v4409_v61 }
 0x27d   :  { %v1544_v17 = vpop.xlane.xlu1 %1543  ;;  %v1733_v60 = vmul.f32 %v3188_v9, %v1732_v53  ;;  %v1739_v5 = vmul.f32 %v3190_v30, %v4430_v7  ;;  %v1920_v59 = vadd.f32 %v4363_v55, %v1883_v2  ;;  %v1921_v1 = vadd.f32 %v4365_v13, %v1884_v4 }
 0x27e   :  { %v1574_v21 = vmul.f32 %v1544_v17, %v3802_v58  ;;  %v1590_v31 = vmul.f32 %v4445_v34, %v4445_v34  ;;  %3191 = vrsqrt.f32 %v4450_v8  ;;  %vm1745_vm5 = vweird.f32 %v3190_v30 }
 0x27f   :  { %v1740_v62 = vmul.f32 %v3190_v30, %v1739_v5  ;;  %v1737_v18 = vsel %vm1736_vm4, %v3188_v9, %v1733_v60  ;;  %v1952_v45 = vmax.f32 %v1920_v59, 0.0  ;;  %v1953_v25 = vmax.f32 %v1921_v1, 0.0  ;;  %vm1746_vm7 = vmor %vm1744_vm6, %vm1745_vm5 }
 0x280   :  { %v1606_v11 = vsub.f32 %v1574_v21, %v1590_v31  ;;  %v1848_v56 = vmul.f32 %v1737_v18, %v1640_v54  ;;  %v1849_v10 = vmul.f32 %v1737_v18, %v1641_v20  ;;  %v1643_v53 = vsub.f32 %v4212_v28, %v4409_v61 }
 0x281   :  { %v1741_v37 = vmul.f32 0.5, %v1740_v62  ;;  %2074 = vmatmul.f32.gmra.mxu0 %v1952_v45  ;;  %2139 = vmatmul.f32.gmra.mxu1 %v1953_v25  ;;  %vm1754_vm9 = vweird.f32 %v4450_v8 }
 0x282   :  { %v1622_v57 = vmax.f32 %v1606_v11, 0.0  ;;  %2204 = vmatmul.f32.gmra.mxu2 %v1952_v45  ;;  %v1885_v43 = vmul.f32 %v4352_v44, %v1848_v56  ;;  %v1886_v47 = vmul.f32 %v4354_v24, %v1849_v10  ;;  %2269 = vmatmul.f32.gmra.mxu3 %v1953_v25  ;;  %v1644_v56 = vsub.f32 %v4221_v26, %v4428_v40 }
 0x283   :  { %v1451_v14 = vpop.xlane.xlu2 %1450  ;;  %v1742_v51 = vsub.f32 1.5, %v1741_v37 }
 0x284   :  { %v4464_v19 = vmul.f32 %v1451_v14, %v3802_v58  ;;  %v4468_v35 = vadd.f32 1e-05, %v1622_v57  ;;  %v3192_v42 = vpop.eup %3191  ;;  %v1922_v17 = vadd.f32 %v4363_v55, %v1885_v43  ;;  %v1923_v7 = vadd.f32 %v4365_v13, %v1886_v47 }
 0x285   :  { %v1547_v9 = vpop.xlane.xlu0 %1546  ;;  %v1743_v33 = vmul.f32 %v3190_v30, %v1742_v51  ;;  %v1749_v27 = vmul.f32 %v3192_v42, %v4450_v8  ;;  %vm1755_vm8 = vweird.f32 %v3192_v42  ;;  %v1645_v43 = vsub.f32 %v4224_v0, %v4428_v40 }
 0x286   :  { %v1591_v41 = vmul.f32 %v4464_v19, %v4464_v19  ;;  %3193 = vrsqrt.f32 %v4468_v35  ;;  %v1575_v2 = vmul.f32 %v1547_v9, %v3802_v58  ;;  %v1954_v21 = vmax.f32 %v1922_v17, 0.0  ;;  %vm1756_vm10 = vmor %vm1754_vm9, %vm1755_vm8 }
 0x287   :  { %v1747_v4 = vsel %vm1746_vm7, %v3190_v30, %v1743_v33  ;;  %v1750_v60 = vmul.f32 %v3192_v42, %v1749_v27  ;;  %v1955_v31 = vmax.f32 %v1923_v7, 0.0  ;;  %vm1764_vm12 = vweird.f32 %v4468_v35 }
 0x288   :  { %v1850_v5 = vmul.f32 %v1747_v4, %v1642_v46  ;;  %v1851_v54 = vmul.f32 %v1747_v4, %v1643_v53  ;;  %v1607_v32 = vsub.f32 %v1575_v2, %v1591_v41 }
 0x289   :  { %v1751_v28 = vmul.f32 0.5, %v1750_v60  ;;  %2077 = vmatmul.f32.gmra.mxu0 %v1954_v21  ;;  %2142 = vmatmul.f32.gmra.mxu1 %v1955_v31 }
 0x28a   :  { %v1887_v20 = vmul.f32 %v4352_v44, %v1850_v5  ;;  %v1888_v62 = vmul.f32 %v4354_v24, %v1851_v54  ;;  %v1623_v59 = vmax.f32 %v1607_v32, 0.0  ;;  %2207 = vmatmul.f32.gmra.mxu2 %v1954_v21  ;;  %2272 = vmatmul.f32.gmra.mxu3 %v1955_v31  ;;  %v1646_v32 = vsub.f32 %v4233_v12, %v4445_v34 }
 0x28b   :  { %v1454_v61 = vpop.xlane.xlu1 %1453  ;;  %v1752_v30 = vsub.f32 1.5, %v1751_v28  ;;  %v1647_v21 = vsub.f32 %v4236_v22, %v4445_v34 }
 0x28c   :  { %v4486_v11 = vmul.f32 %v1454_v61, %v3802_v58  ;;  %v3194_v1 = vpop.eup %3193  ;;  %v1924_v37 = vadd.f32 %v4363_v55, %v1887_v20  ;;  %v1925_v45 = vadd.f32 %v4365_v13, %v1888_v62  ;;  %v4493_v57 = vadd.f32 1e-05, %v1623_v59 }
 0x28d   :  { %v1550_v18 = vpop.xlane.xlu2 %1549  ;;  %v1759_v10 = vmul.f32 %v3194_v1, %v4468_v35  ;;  %v1753_v25 = vmul.f32 %v3192_v42, %v1752_v30  ;;  %vm1765_vm11 = vweird.f32 %v3194_v1 }
 0x28e   :  { %v1576_v14 = vmul.f32 %v1550_v18, %v3802_v58  ;;  %v1592_v51 = vmul.f32 %v4486_v11, %v4486_v11  ;;  %3195 = vrsqrt.f32 %v4493_v57  ;;  %v1956_v26 = vmax.f32 %v1924_v37, 0.0  ;;  %vm1766_vm13 = vmor %vm1764_vm12, %vm1765_vm11 }
 0x28f   :  { %v1760_v47 = vmul.f32 %v3194_v1, %v1759_v10  ;;  %v1957_v33 = vmax.f32 %v1925_v45, 0.0  ;;  %v1757_v41 = vsel %vm1756_vm10, %v3192_v42, %v1753_v25  ;;  %vm1774_vm15 = vweird.f32 %v4493_v57 }
 0x290   :  { %v1608_v9 = vsub.f32 %v1576_v14, %v1592_v51  ;;  %v1852_v53 = vmul.f32 %v1757_v41, %v1644_v56  ;;  %v1853_v27 = vmul.f32 %v1757_v41, %v1645_v43 }
 0x291   :  { %v1761_v46 = vmul.f32 0.5, %v1760_v47  ;;  %2080 = vmatmul.f32.gmra.mxu0 %v1956_v26  ;;  %2145 = vmatmul.f32.gmra.mxu1 %v1957_v33 }
 0x292   :  { %v1624_v8 = vmax.f32 %v1608_v9, 0.0  ;;  %2210 = vmatmul.f32.gmra.mxu2 %v1956_v26  ;;  %v1889_v0 = vmul.f32 %v4352_v44, %v1852_v53  ;;  %v1890_v40 = vmul.f32 %v4354_v24, %v1853_v27  ;;  %2275 = vmatmul.f32.gmra.mxu3 %v1957_v33  ;;  %v1648_v26 = vsub.f32 %v4245_v29, %v4464_v19 }
 0x293   :  { %v1457_v2 = vpop.xlane.xlu0 %1456  ;;  %v1762_v17 = vsub.f32 1.5, %v1761_v46  ;;  %v1649_v27 = vsub.f32 %v4248_v23, %v4464_v19 }
 0x294   :  { %v4503_v7 = vmul.f32 %v1457_v2, %v3802_v58  ;;  %v4507_v4 = vadd.f32 1e-05, %v1624_v8  ;;  %v3196_v60 = vpop.eup %3195  ;;  %v1926_v61 = vadd.f32 %v4363_v55, %v1889_v0  ;;  %v1927_v35 = vadd.f32 %v4365_v13, %v1890_v40 }
 0x295   :  { %v1553_v42 = vpop.xlane.xlu1 %1552  ;;  %v1763_v5 = vmul.f32 %v3194_v1, %v1762_v17  ;;  %v1769_v31 = vmul.f32 %v3196_v60, %v4493_v57  ;;  %vm1775_vm14 = vweird.f32 %v3196_v60 }
 0x296   :  { %v1577_v54 = vmul.f32 %v1553_v42, %v3802_v58  ;;  %3197 = vrsqrt.f32 %v4507_v4  ;;  %v1593_v28 = vmul.f32 %v4503_v7, %v4503_v7  ;;  %v1958_v18 = vmax.f32 %v1926_v61, 0.0  ;;  %vm1776_vm0 = vmor %vm1774_vm15, %vm1775_vm14 }
 0x297   :  { %v1767_v20 = vsel %vm1766_vm13, %v3194_v1, %v1763_v5  ;;  %v1770_v62 = vmul.f32 %v3196_v60, %v1769_v31  ;;  %v1959_v22 = vmax.f32 %v1927_v35, 0.0  ;;  %vm1784_vm2 = vweird.f32 %v4507_v4 }
 0x298   :  { %v1854_v59 = vmul.f32 %v1767_v20, %v1646_v32  ;;  %v1855_v12 = vmul.f32 %v1767_v20, %v1647_v21  ;;  %v1609_v30 = vsub.f32 %v1577_v54, %v1593_v28  ;;  %v1650_v20 = vsub.f32 %v4257_v3, %v4486_v11 }
 0x299   :  { %v1771_v34 = vmul.f32 0.5, %v1770_v62  ;;  %2083 = vmatmul.f32.gmra.mxu0 %v1958_v18  ;;  %2148 = vmatmul.f32.gmra.mxu1 %v1959_v22  ;;  %v1651_v62 = vsub.f32 %v4260_v49, %v4486_v11 }
 0x29a   :  { %v1891_v45 = vmul.f32 %v4352_v44, %v1854_v59  ;;  %v1892_v56 = vmul.f32 %v4354_v24, %v1855_v12  ;;  %v1625_v10 = vmax.f32 %v1609_v30, 0.0  ;;  %2213 = vmatmul.f32.gmra.mxu2 %v1958_v18  ;;  %2278 = vmatmul.f32.gmra.mxu3 %v1959_v22 }
 0x29b   :  { %v1460_v37 = vpop.xlane.xlu2 %1459  ;;  %v1772_v1 = vsub.f32 1.5, %v1771_v34 }
 0x29c   :  { %v4525_v25 = vmul.f32 %v1460_v37, %v3802_v58  ;;  %v3198_v14 = vpop.eup %3197  ;;  %v1928_v43 = vadd.f32 %v4363_v55, %v1891_v45  ;;  %v1929_v47 = vadd.f32 %v4365_v13, %v1892_v56  ;;  %v4532_v33 = vadd.f32 1e-05, %v1625_v10 }
 0x29d   :  { %v1556_v51 = vpop.xlane.xlu0 %1555  ;;  %v1779_v9 = vmul.f32 %v3198_v14, %v4507_v4  ;;  %v1773_v41 = vmul.f32 %v3196_v60, %v1772_v1  ;;  %vm1785_vm1 = vweird.f32 %v3198_v14 }
 0x29e   :  { %v1594_v46 = vmul.f32 %v4525_v25, %v4525_v25  ;;  %v1578_v53 = vmul.f32 %v1556_v51, %v3802_v58  ;;  %3199 = vrsqrt.f32 %v4532_v33  ;;  %v1960_v29 = vmax.f32 %v1928_v43, 0.0  ;;  %vm1786_vm3 = vmor %vm1784_vm2, %vm1785_vm1 }
 0x29f   :  { %v1780_v8 = vmul.f32 %v3198_v14, %v1779_v9  ;;  %v1961_v17 = vmax.f32 %v1929_v47, 0.0  ;;  %v1777_v0 = vsel %vm1776_vm0, %v3196_v60, %v1773_v41  ;;  %vm1794_vm5 = vweird.f32 %v4532_v33 }
 0x2a0   :  { %v1610_v2 = vsub.f32 %v1578_v53, %v1594_v46  ;;  %v1856_v42 = vmul.f32 %v1777_v0, %v1648_v26  ;;  %v1857_v5 = vmul.f32 %v1777_v0, %v1649_v27  ;;  %v1652_v46 = vsub.f32 %v4269_v6, %v4503_v7 }
 0x2a1   :  { %v1781_v40 = vmul.f32 0.5, %v1780_v8  ;;  %2086 = vmatmul.f32.gmra.mxu0 %v1960_v29  ;;  %2151 = vmatmul.f32.gmra.mxu1 %v1961_v17 }
 0x2a2   :  { %v1626_v57 = vmax.f32 %v1610_v2, 0.0  ;;  %2216 = vmatmul.f32.gmra.mxu2 %v1960_v29  ;;  %v1893_v23 = vmul.f32 %v4352_v44, %v1856_v42  ;;  %v1894_v19 = vmul.f32 %v4354_v24, %v1857_v5  ;;  %2281 = vmatmul.f32.gmra.mxu3 %v1961_v17  ;;  %v1653_v17 = vsub.f32 %v4272_v38, %v4503_v7 }
 0x2a3   :  { %v1463_v54 = vpop.xlane.xlu1 %1462  ;;  %v1782_v32 = vsub.f32 1.5, %v1781_v40 }
 0x2a4   :  { %v4542_v21 = vmul.f32 %v1463_v54, %v3802_v58  ;;  %v4546_v31 = vadd.f32 1e-05, %v1626_v57  ;;  %v3200_v28 = vpop.eup %3199  ;;  %v1930_v30 = vadd.f32 %v4363_v55, %v1893_v23  ;;  %v1931_v4 = vadd.f32 %v4365_v13, %v1894_v19 }
 0x2a5   :  { %v1559_v60 = vpop.xlane.xlu2 %1558  ;;  %v1783_v61 = vmul.f32 %v3198_v14, %v1782_v32  ;;  %v1789_v59 = vmul.f32 %v3200_v28, %v4532_v33  ;;  %vm1795_vm4 = vweird.f32 %v3200_v28 }
 0x2a6   :  { %v1579_v35 = vmul.f32 %v1559_v60, %v3802_v58  ;;  %3201 = vrsqrt.f32 %v4546_v31  ;;  %v1595_v12 = vmul.f32 %v4542_v21, %v4542_v21  ;;  %v1962_v45 = vmax.f32 %v1930_v30, 0.0  ;;  %vm1796_vm6 = vmor %vm1794_vm5, %vm1795_vm4 }
 0x2a7   :  { %v1787_v18 = vsel %vm1786_vm3, %v3198_v14, %v1783_v61  ;;  %v1790_v22 = vmul.f32 %v3200_v28, %v1789_v59  ;;  %v1963_v49 = vmax.f32 %v1931_v4, 0.0  ;;  %vm1804_vm8 = vweird.f32 %v4546_v31 }
 0x2a8   :  { %v1858_v34 = vmul.f32 %v1787_v18, %v1650_v20  ;;  %v1859_v3 = vmul.f32 %v1787_v18, %v1651_v62  ;;  %v1611_v37 = vsub.f32 %v1579_v35, %v1595_v12  ;;  %v1654_v59 = vsub.f32 %v4281_v63, %v4525_v25 }
 0x2a9   :  { %v1791_v11 = vmul.f32 0.5, %v1790_v22  ;;  %2089 = vmatmul.f32.gmra.mxu0 %v1962_v45  ;;  %2154 = vmatmul.f32.gmra.mxu1 %v1963_v49  ;;  %v1655_v12 = vsub.f32 %v4284_v48, %v4525_v25 }
 0x2aa   :  { %v1895_v10 = vmul.f32 %v4352_v44, %v1858_v34  ;;  %v1896_v1 = vmul.f32 %v4354_v24, %v1859_v3  ;;  %v1627_v51 = vmax.f32 %v1611_v37, 0.0  ;;  %2219 = vmatmul.f32.gmra.mxu2 %v1962_v45  ;;  %2284 = vmatmul.f32.gmra.mxu3 %v1963_v49 }
 0x2ab   :  { %v1466_v56 = vpop.xlane.xlu0 %1465  ;;  %v1792_v14 = vsub.f32 1.5, %v1791_v11 }
 0x2ac   :  { %v4564_v43 = vmul.f32 %v1466_v56, %v3802_v58  ;;  %v3202_v47 = vpop.eup %3201  ;;  %v1932_v9 = vadd.f32 %v4363_v55, %v1895_v10  ;;  %v1933_v41 = vadd.f32 %v4365_v13, %v1896_v1  ;;  %v4571_v27 = vadd.f32 1e-05, %v1627_v51 }
 0x2ad   :  { %v1562_v26 = vpop.xlane.xlu1 %1561  ;;  %v1799_v53 = vmul.f32 %v3202_v47, %v4546_v31  ;;  %v1793_v8 = vmul.f32 %v3200_v28, %v1792_v14  ;;  %vm1805_vm7 = vweird.f32 %v3202_v47 }
 0x2ae   :  { %v1580_v29 = vmul.f32 %v1562_v26, %v3802_v58  ;;  %v1596_v2 = vmul.f32 %v4564_v43, %v4564_v43  ;;  %3203 = vrsqrt.f32 %v4571_v27  ;;  %v1964_v6 = vmax.f32 %v1932_v9, 0.0  ;;  %vm1806_vm9 = vmor %vm1804_vm8, %vm1805_vm7 }
 0x2af   :  { %v1800_v0 = vmul.f32 %v3202_v47, %v1799_v53  ;;  %v1965_v42 = vmax.f32 %v1933_v41, 0.0  ;;  %v1797_v5 = vsel %vm1796_vm6, %v3200_v28, %v1793_v8  ;;  %v1656_v9 = vsub.f32 %v4293_v16, %v4542_v21 }
 0x2b0   :  { %v1612_v40 = vsub.f32 %v1580_v29, %v1596_v2  ;;  %v1860_v54 = vmul.f32 %v1797_v5, %v1652_v46  ;;  %v1861_v32 = vmul.f32 %v1797_v5, %v1653_v17  ;;  %vm1814_vm11 = vweird.f32 %v4571_v27 }
 0x2b1   :  { %v1801_v57 = vmul.f32 0.5, %v1800_v0  ;;  %2092 = vmatmul.f32.gmra.mxu0 %v1964_v6  ;;  %2157 = vmatmul.f32.gmra.mxu1 %v1965_v42  ;;  %v1657_v46 = vsub.f32 %v4296_v36, %v4542_v21 }
 0x2b2   :  { %v1628_v33 = vmax.f32 %v1612_v40, 0.0  ;;  %2222 = vmatmul.f32.gmra.mxu2 %v1964_v6  ;;  %v1897_v38 = vmul.f32 %v4352_v44, %v1860_v54  ;;  %v1898_v7 = vmul.f32 %v4354_v24, %v1861_v32  ;;  %2287 = vmatmul.f32.gmra.mxu3 %v1965_v42  ;;  %v1659_v54 = vsub.f32 %v4308_v50, %v4564_v43 }
 0x2b3   :  { %v1469_v23 = vpop.xlane.xlu2 %1468  ;;  %v1802_v19 = vsub.f32 1.5, %v1801_v57  ;;  %v1658_v57 = vsub.f32 %v4305_v15, %v4564_v43 }
 0x2b4   :  { %v4581_v60 = vmul.f32 %v1469_v23, %v3802_v58  ;;  %v4585_v61 = vadd.f32 1e-05, %v1628_v33  ;;  %v3204_v35 = vpop.eup %3203  ;;  %v1934_v18 = vadd.f32 %v4363_v55, %v1897_v38  ;;  %v1935_v31 = vadd.f32 %v4365_v13, %v1898_v7 }
 0x2b5   :  { %v1565_v28 = vpop.xlane.xlu0 %1564  ;;  %v1803_v20 = vmul.f32 %v3202_v47, %v1802_v19  ;;  %v1809_v30 = vmul.f32 %v3204_v35, %v4571_v27  ;;  %vm1815_vm10 = vweird.f32 %v3204_v35 }
 0x2b6   :  { %v1597_v62 = vmul.f32 %v4581_v60, %v4581_v60  ;;  %3205 = vrsqrt.f32 %v4585_v61  ;;  %v1581_v4 = vmul.f32 %v1565_v28, %v3802_v58  ;;  %v1966_v45 = vmax.f32 %v1934_v18, 0.0  ;;  %vm1816_vm12 = vmor %vm1814_vm11, %vm1815_vm10 }
 0x2b7   :  { %v1807_v22 = vsel %vm1806_vm9, %v3202_v47, %v1803_v20  ;;  %v1810_v34 = vmul.f32 %v3204_v35, %v1809_v30  ;;  %v1967_v49 = vmax.f32 %v1935_v31, 0.0  ;;  %vm1824_vm14 = vweird.f32 %v4585_v61 }
 0x2b8   :  { %v1862_v3 = vmul.f32 %v1807_v22, %v1654_v59  ;;  %v1863_v37 = vmul.f32 %v1807_v22, %v1655_v12  ;;  %v1613_v63 = vsub.f32 %v1581_v4, %v1597_v62  ;;  %v1660_v59 = vsub.f32 %v4320_v52, %v4581_v60 }
 0x2b9   :  { %v1811_v48 = vmul.f32 0.5, %v1810_v34  ;;  %2095 = vmatmul.f32.gmra.mxu0 %v1966_v45  ;;  %2160 = vmatmul.f32.gmra.mxu1 %v1967_v49  ;;  %v1661_v12 = vsub.f32 %v4326_v39, %v4581_v60  ;;  %v2040_v39 = vld [vmem:[%s5222_s12] sm:$0x3] }
 0x2ba   :  { %v1899_v25 = vmul.f32 %v4352_v44, %v1862_v3  ;;  %v1900_v11 = vmul.f32 %v4354_v24, %v1863_v37  ;;  %v1629_v56 = vmax.f32 %v1613_v63, 0.0  ;;  %2225 = vmatmul.f32.gmra.mxu2 %v1966_v45  ;;  %2290 = vmatmul.f32.gmra.mxu3 %v1967_v49  ;;  %v4634_v45 = vperm.slane %v2040_v39, 0 }
 0x2bb   :  { %v1812_v1 = vsub.f32 1.5, %v1811_v48  ;;  %v4637_v48 = vperm.slane %v2040_v39, 1 }
 0x2bc   :  { %v3206_v10 = vpop.eup %3205  ;;  %v1936_v51 = vadd.f32 %v4363_v55, %v1899_v25  ;;  %v1937_v47 = vadd.f32 %v4365_v13, %v1900_v11  ;;  %v1677_v26 = vadd.f32 1e-05, %v1629_v56 }
 0x2bd   :  { %v1819_v14 = vmul.f32 %v3206_v10, %v4585_v61  ;;  %v1813_v41 = vmul.f32 %v3204_v35, %v1812_v1  ;;  %vm1825_vm13 = vweird.f32 %v3206_v10 }
 0x2be   :  { %3207 = vrsqrt.f32 %v1677_v26  ;;  %v1968_v8 = vmax.f32 %v1936_v51, 0.0  ;;  %v1969_v29 = vmax.f32 %v1937_v47, 0.0  ;;  %vm1826_vm15 = vmor %vm1824_vm14, %vm1825_vm13  ;;  %vm1834_vm1 = vweird.f32 %v1677_v26 }
 0x2bf   :  { %v1820_v53 = vmul.f32 %v3206_v10, %v1819_v14  ;;  %v1817_v2 = vsel %vm1816_vm12, %v3204_v35, %v1813_v41 }
 0x2c0   :  { %v1864_v0 = vmul.f32 %v1817_v2, %v1656_v9  ;;  %v1865_v6 = vmul.f32 %v1817_v2, %v1657_v46 }
 0x2c1   :  { %v1821_v17 = vmul.f32 0.5, %v1820_v53  ;;  %2098 = vmatmul.f32.gmra.mxu0 %v1968_v8  ;;  %2163 = vmatmul.f32.gmra.mxu1 %v1969_v29 }
 0x2c2   :  { %2228 = vmatmul.f32.gmra.mxu2 %v1968_v8  ;;  %v1901_v16 = vmul.f32 %v4352_v44, %v1864_v0  ;;  %v1902_v27 = vmul.f32 %v4354_v24, %v1865_v6  ;;  %2293 = vmatmul.f32.gmra.mxu3 %v1969_v29 }
 0x2c3   :  { %v1822_v40 = vsub.f32 1.5, %v1821_v17 }
 0x2c4   :  { %v3208_v36 = vpop.eup %3207  ;;  %v1938_v42 = vadd.f32 %v4363_v55, %v1901_v16  ;;  %v1939_v5 = vadd.f32 %v4365_v13, %v1902_v27 }
 0x2c5   :  { %v1823_v21 = vmul.f32 %v3206_v10, %v1822_v40  ;;  %v1829_v32 = vmul.f32 %v3208_v36, %v1677_v26  ;;  %vm1835_vm0 = vweird.f32 %v3208_v36 }
 0x2c6   :  { %v1970_v33 = vmax.f32 %v1938_v42, 0.0  ;;  %v1971_v38 = vmax.f32 %v1939_v5, 0.0  ;;  %vm1836_vm2 = vmor %vm1834_vm1, %vm1835_vm0 }
 0x2c7   :  { %v1827_v23 = vsel %vm1826_vm15, %v3206_v10, %v1823_v21  ;;  %v1830_v19 = vmul.f32 %v3208_v36, %v1829_v32 }
 0x2c8   :  { %v1866_v7 = vmul.f32 %v1827_v23, %v1658_v57  ;;  %v1867_v28 = vmul.f32 %v1827_v23, %v1659_v54 }
 0x2c9   :  { %v1831_v35 = vmul.f32 0.5, %v1830_v19  ;;  %2101 = vmatmul.f32.gmra.mxu0 %v1970_v33  ;;  %2166 = vmatmul.f32.gmra.mxu1 %v1971_v38 }
 0x2ca   :  { %v1903_v61 = vmul.f32 %v4352_v44, %v1866_v7  ;;  %v1904_v20 = vmul.f32 %v4354_v24, %v1867_v28  ;;  %2231 = vmatmul.f32.gmra.mxu2 %v1970_v33  ;;  %2296 = vmatmul.f32.gmra.mxu3 %v1971_v38 }
 0x2cb   :  { %v1832_v62 = vsub.f32 1.5, %v1831_v35 }
 0x2cc   :  { %v1940_v15 = vadd.f32 %v4363_v55, %v1903_v61  ;;  %v1941_v50 = vadd.f32 %v4365_v13, %v1904_v20 }
 0x2cd   :  { %v1833_v43 = vmul.f32 %v3208_v36, %v1832_v62 }
 0x2ce   :  { %v1972_v30 = vmax.f32 %v1940_v15, 0.0  ;;  %v1973_v4 = vmax.f32 %v1941_v50, 0.0 }
 0x2cf   :  { %v1837_v18 = vsel %vm1836_vm2, %v3208_v36, %v1833_v43 }
 0x2d0   :  { %v1868_v31 = vmul.f32 %v1837_v18, %v1660_v59  ;;  %v1869_v22 = vmul.f32 %v1837_v18, %v1661_v12 }
 0x2d1   :  { %2104 = vmatmul.f32.gmra.mxu0 %v1972_v30  ;;  %2169 = vmatmul.f32.gmra.mxu1 %v1973_v4 }
 0x2d2   :  { %2234 = vmatmul.f32.gmra.mxu2 %v1972_v30  ;;  %v1905_v34 = vmul.f32 %v4352_v44, %v1868_v31  ;;  %v1906_v3 = vmul.f32 %v4354_v24, %v1869_v22  ;;  %2299 = vmatmul.f32.gmra.mxu3 %v1973_v4 }
 0x2d4   :  { %v1942_v37 = vadd.f32 %v4363_v55, %v1905_v34  ;;  %v1943_v52 = vadd.f32 %v4365_v13, %v1906_v3 }
 0x2d6   :  { %v1974_v60 = vmax.f32 %v1942_v37, 0.0  ;;  %v1975_v63 = vmax.f32 %v1943_v52, 0.0 }
 0x2d9   :  { %2107 = vmatmul.f32.gmra.mxu0 %v1974_v60  ;;  %2172 = vmatmul.f32.gmra.mxu1 %v1975_v63 }
 0x2da   :  { %2237 = vmatmul.f32.gmra.mxu2 %v1974_v60  ;;  %2302 = vmatmul.f32.gmra.mxu3 %v1975_v63 }
 0x2dd   :  { %v2063_v49 = vpop.f32.mrf.mxu0  ;;  %v2128_v44 = vpop.f32.mrf.mxu1 }
 0x2de   :  { %v2064_v24 = vadd.f32 %v2063_v49, %v4634_v45 }
 0x2e0   :  { %v4639_v13 = vadd.f32 %v2128_v44, %v2064_v24 }
 0x2e2   :  { %v2372_v1 = vmul.f32 %v4639_v13, %v4639_v13 }
 0x2e4   :  { %v2193_v55 = vpop.f32.mrf.mxu2  ;;  %v2258_v11 = vpop.f32.mrf.mxu3 }
 0x2e5   :  { %v2194_v25 = vadd.f32 %v2193_v55, %v4637_v48  ;;  %v2066_v47 = vpop.f32.mrf.mxu0  ;;  %v2131_v14 = vpop.f32.mrf.mxu1 }
 0x2e6   :  { %v2067_v9 = vadd.f32 %v2066_v47, %v4634_v45 }
 0x2e7   :  { %v4642_v56 = vadd.f32 %v2258_v11, %v2194_v25 }
 0x2e8   :  { %v4651_v53 = vadd.f32 %v2131_v14, %v2067_v9 }
 0x2e9   :  { %v2308_v10 = vadd.f32 %v4642_v56, %v4639_v13  ;;  %v2373_v51 = vmul.f32 %v4642_v56, %v4642_v56 }
 0x2ea   :  { %v2374_v6 = vmul.f32 %v4651_v53, %v4651_v53 }
 0x2eb   :  { %2309 = vadd.xlane.f32.xlu1 %v2308_v10  ;;  %v2404_v26 = vadd.f32 %v2373_v51, %v2372_v1 }
 0x2ec   :  { %v2196_v41 = vpop.f32.mrf.mxu2  ;;  %v2261_v46 = vpop.f32.mrf.mxu3 }
 0x2ed   :  { %2405 = vadd.xlane.f32.xlu2 %v2404_v26  ;;  %v2197_v8 = vadd.f32 %v2196_v41, %v4637_v48 }
 0x2ee   :  { %v2069_v29 = vpop.f32.mrf.mxu0  ;;  %v2134_v2 = vpop.f32.mrf.mxu1 }
 0x2ef   :  { %v4654_v17 = vadd.f32 %v2261_v46, %v2197_v8  ;;  %v2070_v0 = vadd.f32 %v2069_v29, %v4634_v45 }
 0x2f1   :  { %v2375_v40 = vmul.f32 %v4654_v17, %v4654_v17  ;;  %v2311_v16 = vadd.f32 %v4654_v17, %v4651_v53  ;;  %v4663_v42 = vadd.f32 %v2134_v2, %v2070_v0 }
 0x2f3   :  { %v2407_v27 = vadd.f32 %v2375_v40, %v2374_v6  ;;  %v2376_v23 = vmul.f32 %v4663_v42, %v4663_v42 }
 0x2f5   :  { %2312 = vadd.xlane.f32.xlu2 %v2311_v16  ;;  %v2199_v36 = vpop.f32.mrf.mxu2  ;;  %v2264_v21 = vpop.f32.mrf.mxu3  ;;  %2408 = vadd.xlane.f32.xlu0 %v2407_v27 }
 0x2f6   :  { %v2200_v5 = vadd.f32 %v2199_v36, %v4637_v48  ;;  %v2072_v57 = vpop.f32.mrf.mxu0  ;;  %v2137_v54 = vpop.f32.mrf.mxu1 }
 0x2f7   :  { %v2073_v33 = vadd.f32 %v2072_v57, %v4634_v45 }
 0x2f8   :  { %v4666_v32 = vadd.f32 %v2264_v21, %v2200_v5 }
 0x2f9   :  { %v4675_v61 = vadd.f32 %v2137_v54, %v2073_v33 }
 0x2fa   :  { %v2377_v19 = vmul.f32 %v4666_v32, %v4666_v32  ;;  %v2314_v7 = vadd.f32 %v4666_v32, %v4663_v42 }
 0x2fb   :  { %v2378_v43 = vmul.f32 %v4675_v61, %v4675_v61 }
 0x2fc   :  { %v2410_v38 = vadd.f32 %v2377_v19, %v2376_v23 }
 0x2fd   :  { %v2202_v28 = vpop.f32.mrf.mxu2  ;;  %v2267_v35 = vpop.f32.mrf.mxu3  ;;  %2315 = vadd.xlane.f32.xlu0 %v2314_v7 }
 0x2fe   :  { %v2203_v20 = vadd.f32 %v2202_v28, %v4637_v48  ;;  %2411 = vadd.xlane.f32.xlu1 %v2410_v38  ;;  %v2075_v15 = vpop.f32.mrf.mxu0  ;;  %v2140_v50 = vpop.f32.mrf.mxu1 }
 0x2ff   :  { %v2076_v12 = vadd.f32 %v2075_v15, %v4634_v45 }
 0x300   :  { %v4678_v62 = vadd.f32 %v2267_v35, %v2203_v20 }
 0x301   :  { %v4687_v31 = vadd.f32 %v2140_v50, %v2076_v12 }
 0x302   :  { %v2379_v59 = vmul.f32 %v4678_v62, %v4678_v62  ;;  %v2317_v4 = vadd.f32 %v4678_v62, %v4675_v61 }
 0x303   :  { %v2380_v60 = vmul.f32 %v4687_v31, %v4687_v31 }
 0x304   :  { %v2413_v30 = vadd.f32 %v2379_v59, %v2378_v43 }
 0x305   :  { %v2205_v18 = vpop.f32.mrf.mxu2  ;;  %v2270_v34 = vpop.f32.mrf.mxu3 }
 0x306   :  { %2414 = vadd.xlane.f32.xlu2 %v2413_v30  ;;  %2318 = vadd.xlane.f32.xlu1 %v2317_v4  ;;  %v2206_v22 = vadd.f32 %v2205_v18, %v4637_v48  ;;  %v2078_v3 = vpop.f32.mrf.mxu0  ;;  %v2143_v52 = vpop.f32.mrf.mxu1 }
 0x307   :  { %v2079_v39 = vadd.f32 %v2078_v3, %v4634_v45 }
 0x308   :  { %v4690_v37 = vadd.f32 %v2270_v34, %v2206_v22 }
 0x309   :  { %v4699_v55 = vadd.f32 %v2143_v52, %v2079_v39 }
 0x30a   :  { %v2381_v63 = vmul.f32 %v4690_v37, %v4690_v37  ;;  %v2320_v49 = vadd.f32 %v4690_v37, %v4687_v31 }
 0x30b   :  { %v2382_v47 = vmul.f32 %v4699_v55, %v4699_v55 }
 0x30c   :  { %v2416_v44 = vadd.f32 %v2381_v63, %v2380_v60 }
 0x30d   :  { %v2208_v24 = vpop.f32.mrf.mxu2  ;;  %v2273_v11 = vpop.f32.mrf.mxu3 }
 0x30e   :  { %2321 = vadd.xlane.f32.xlu2 %v2320_v49  ;;  %v2209_v25 = vadd.f32 %v2208_v24, %v4637_v48  ;;  %2417 = vadd.xlane.f32.xlu0 %v2416_v44  ;;  %v2081_v10 = vpop.f32.mrf.mxu0  ;;  %v2146_v51 = vpop.f32.mrf.mxu1 }
 0x30f   :  { %v2082_v26 = vadd.f32 %v2081_v10, %v4634_v45 }
 0x310   :  { %v4702_v1 = vadd.f32 %v2273_v11, %v2209_v25 }
 0x311   :  { %v4712_v0 = vadd.f32 %v2146_v51, %v2082_v26 }
 0x312   :  { %v2383_v14 = vmul.f32 %v4702_v1, %v4702_v1  ;;  %v2323_v41 = vadd.f32 %v4702_v1, %v4699_v55 }
 0x313   :  { %v2384_v38 = vmul.f32 %v4712_v0, %v4712_v0 }
 0x314   :  { %v2419_v9 = vadd.f32 %v2383_v14, %v2382_v47 }
 0x315   :  { %v2211_v46 = vpop.f32.mrf.mxu2  ;;  %v2276_v29 = vpop.f32.mrf.mxu3 }
 0x316   :  { %v2212_v8 = vadd.f32 %v2211_v46, %v4637_v48  ;;  %2420 = vadd.xlane.f32.xlu2 %v2419_v9  ;;  %2324 = vadd.xlane.f32.xlu0 %v2323_v41  ;;  %v2084_v2 = vpop.f32.mrf.mxu0  ;;  %v2149_v40 = vpop.f32.mrf.mxu1 }
 0x317   :  { %v2085_v16 = vadd.f32 %v2084_v2, %v4634_v45 }
 0x318   :  { %v4714_v6 = vadd.f32 %v2276_v29, %v2212_v8 }
 0x319   :  { %v4719_v21 = vadd.f32 %v2149_v40, %v2085_v16 }
 0x31a   :  { %v2326_v27 = vadd.f32 %v4714_v6, %v4712_v0  ;;  %v2385_v54 = vmul.f32 %v4714_v6, %v4714_v6 }
 0x31b   :  { %v2386_v35 = vmul.f32 %v4719_v21, %v4719_v21 }
 0x31c   :  { %2327 = vadd.xlane.f32.xlu1 %v2326_v27  ;;  %v2422_v28 = vadd.f32 %v2385_v54, %v2384_v38 }
 0x31d   :  { %v2214_v36 = vpop.f32.mrf.mxu2  ;;  %v2279_v57 = vpop.f32.mrf.mxu3 }
 0x31e   :  { %v2215_v5 = vadd.f32 %v2214_v36, %v4637_v48  ;;  %v2087_v33 = vpop.f32.mrf.mxu0  ;;  %v2152_v19 = vpop.f32.mrf.mxu1 }
 0x31f   :  { %v2088_v7 = vadd.f32 %v2087_v33, %v4634_v45 }
 0x320   :  { %v4724_v23 = vadd.f32 %v2279_v57, %v2215_v5 }
 0x321   :  { %v4733_v43 = vadd.f32 %v2152_v19, %v2088_v7 }
 0x322   :  { %v2387_v20 = vmul.f32 %v4724_v23, %v4724_v23  ;;  %v2329_v34 = vadd.f32 %v4724_v23, %v4719_v21 }
 0x323   :  { %v2388_v3 = vmul.f32 %v4733_v43, %v4733_v43 }
 0x324   :  { %2423 = vadd.xlane.f32.xlu1 %v2422_v28  ;;  %v2425_v15 = vadd.f32 %v2387_v20, %v2386_v35 }
 0x325   :  { %v2217_v50 = vpop.f32.mrf.mxu2  ;;  %v2282_v12 = vpop.f32.mrf.mxu3 }
 0x326   :  { %v2218_v59 = vadd.f32 %v2217_v50, %v4637_v48  ;;  %2426 = vadd.xlane.f32.xlu0 %v2425_v15  ;;  %v2090_v30 = vpop.f32.mrf.mxu0  ;;  %v2155_v18 = vpop.f32.mrf.mxu1 }
 0x327   :  { %v2091_v22 = vadd.f32 %v2090_v30, %v4634_v45 }
 0x328   :  { %v4736_v4 = vadd.f32 %v2282_v12, %v2218_v59 }
 0x329   :  { %v4747_v49 = vadd.f32 %v2155_v18, %v2091_v22 }
 0x32a   :  { %v2389_v52 = vmul.f32 %v4736_v4, %v4736_v4  ;;  %v2332_v60 = vadd.f32 %v4736_v4, %v4733_v43 }
 0x32b   :  { %v2390_v47 = vmul.f32 %v4747_v49, %v4747_v49 }
 0x32c   :  { %2330 = vadd.xlane.f32.xlu1 %v2329_v34  ;;  %v2428_v39 = vadd.f32 %v2389_v52, %v2388_v3 }
 0x32d   :  { %v2220_v63 = vpop.f32.mrf.mxu2  ;;  %v2285_v24 = vpop.f32.mrf.mxu3 }
 0x32e   :  { %v2221_v44 = vadd.f32 %v2220_v63, %v4637_v48  ;;  %2429 = vadd.xlane.f32.xlu2 %v2428_v39  ;;  %2333 = vadd.xlane.f32.xlu0 %v2332_v60  ;;  %v2093_v25 = vpop.f32.mrf.mxu0  ;;  %v2158_v10 = vpop.f32.mrf.mxu1 }
 0x32f   :  { %v2094_v51 = vadd.f32 %v2093_v25, %v4634_v45 }
 0x330   :  { %v4750_v11 = vadd.f32 %v2285_v24, %v2221_v44 }
 0x331   :  { %v4759_v46 = vadd.f32 %v2158_v10, %v2094_v51 }
 0x332   :  { %v2391_v14 = vmul.f32 %v4750_v11, %v4750_v11  ;;  %v2335_v9 = vadd.f32 %v4750_v11, %v4747_v49 }
 0x333   :  { %v2392_v36 = vmul.f32 %v4759_v46, %v4759_v46 }
 0x334   :  { %v2431_v26 = vadd.f32 %v2391_v14, %v2390_v47 }
 0x335   :  { %v2223_v41 = vpop.f32.mrf.mxu2  ;;  %v2288_v29 = vpop.f32.mrf.mxu3 }
 0x336   :  { %v2224_v8 = vadd.f32 %v2223_v41, %v4637_v48  ;;  %2432 = vadd.xlane.f32.xlu1 %v2431_v26  ;;  %2336 = vadd.xlane.f32.xlu2 %v2335_v9  ;;  %v2096_v2 = vpop.f32.mrf.mxu0  ;;  %v2161_v16 = vpop.f32.mrf.mxu1 }
 0x337   :  { %v2097_v27 = vadd.f32 %v2096_v2, %v4634_v45 }
 0x338   :  { %v4762_v40 = vadd.f32 %v2288_v29, %v2224_v8 }
 0x339   :  { %v4771_v19 = vadd.f32 %v2161_v16, %v2097_v27 }
 0x33a   :  { %v2393_v5 = vmul.f32 %v4762_v40, %v4762_v40  ;;  %v2338_v54 = vadd.f32 %v4762_v40, %v4759_v46 }
 0x33b   :  { %v2394_v50 = vmul.f32 %v4771_v19, %v4771_v19 }
 0x33c   :  { %v2434_v57 = vadd.f32 %v2393_v5, %v2392_v36 }
 0x33d   :  { %v2226_v33 = vpop.f32.mrf.mxu2  ;;  %v2291_v7 = vpop.f32.mrf.mxu3 }
 0x33e   :  { %v2227_v38 = vadd.f32 %v2226_v33, %v4637_v48  ;;  %2435 = vadd.xlane.f32.xlu0 %v2434_v57  ;;  %2339 = vadd.xlane.f32.xlu1 %v2338_v54  ;;  %v2099_v28 = vpop.f32.mrf.mxu0  ;;  %v2164_v20 = vpop.f32.mrf.mxu1 }
 0x33f   :  { %v2100_v15 = vadd.f32 %v2099_v28, %v4634_v45 }
 0x340   :  { %v4774_v35 = vadd.f32 %v2291_v7, %v2227_v38 }
 0x341   :  { %v4783_v22 = vadd.f32 %v2164_v20, %v2100_v15 }
 0x342   :  { %v2395_v59 = vmul.f32 %v4774_v35, %v4774_v35  ;;  %v2341_v30 = vadd.f32 %v4774_v35, %v4771_v19 }
 0x343   :  { %v2396_v60 = vmul.f32 %v4783_v22, %v4783_v22 }
 0x344   :  { %v2437_v12 = vadd.f32 %v2395_v59, %v2394_v50 }
 0x345   :  { %v2229_v18 = vpop.f32.mrf.mxu2  ;;  %v2294_v3 = vpop.f32.mrf.mxu3 }
 0x346   :  { %v2230_v34 = vadd.f32 %v2229_v18, %v4637_v48  ;;  %2438 = vadd.xlane.f32.xlu2 %v2437_v12  ;;  %2342 = vadd.xlane.f32.xlu0 %v2341_v30  ;;  %v2102_v52 = vpop.f32.mrf.mxu0  ;;  %v2167_v44 = vpop.f32.mrf.mxu1 }
 0x347   :  { %v2103_v51 = vadd.f32 %v2102_v52, %v4634_v45 }
 0x348   :  { %v4786_v39 = vadd.f32 %v2294_v3, %v2230_v34 }
 0x349   :  { %v4798_v41 = vadd.f32 %v2167_v44, %v2103_v51 }
 0x34a   :  { %v2397_v63 = vmul.f32 %v4786_v39, %v4786_v39  ;;  %v2344_v25 = vadd.f32 %v4786_v39, %v4783_v22 }
 0x34c   :  { %v2440_v24 = vadd.f32 %v2397_v63, %v2396_v60 }
 0x34d   :  { %v2232_v10 = vpop.f32.mrf.mxu2  ;;  %v2297_v14 = vpop.f32.mrf.mxu3 }
 0x34e   :  { %v2233_v47 = vadd.f32 %v2232_v10, %v4637_v48  ;;  %2441 = vadd.xlane.f32.xlu1 %v2440_v24  ;;  %2345 = vadd.xlane.f32.xlu2 %v2344_v25  ;;  %v2105_v26 = vpop.f32.mrf.mxu0  ;;  %v2170_v2 = vpop.f32.mrf.mxu1  ;;  %v2398_v24 = vmul.f32 %v4798_v41, %v4798_v41 }
 0x34f   :  { %v2106_v8 = vadd.f32 %v2105_v26, %v4634_v45 }
 0x350   :  { %v4796_v9 = vadd.f32 %v2297_v14, %v2233_v47 }
 0x351   :  { %v4803_v27 = vadd.f32 %v2170_v2, %v2106_v8  ;;  %v3324_v8 = vmov 0  }
 0x352   :  { %v2347_v29 = vadd.f32 %v4796_v9, %v4798_v41  ;;  %v2399_v3 = vmul.f32 %v4796_v9, %v4796_v9  ;;  %3141 = vset.pattern.permute.xlu1 %v3324_v8  ;;  %3142 = vset.pattern.permute.xlu0 %v3324_v8 }
 0x353   :  { %v2400_v7 = vmul.f32 %v4803_v27, %v4803_v27 }
 0x354   :  { %v2443_v10 = vadd.f32 %v2399_v3, %v2398_v24 }
 0x355   :  { %v2235_v16 = vpop.f32.mrf.mxu2  ;;  %v2300_v5 = vpop.f32.mrf.mxu3 }
 0x356   :  { %v2236_v36 = vadd.f32 %v2235_v16, %v4637_v48  ;;  %2348 = vadd.xlane.f32.xlu1 %v2347_v29  ;;  %v2108_v54 = vpop.f32.mrf.mxu0  ;;  %v2173_v52 = vpop.f32.mrf.mxu1 }
 0x357   :  { %v2109_v50 = vadd.f32 %v2108_v54, %v4634_v45 }
 0x358   :  { %v4806_v57 = vadd.f32 %v2300_v5, %v2236_v36 }
 0x359   :  { %v4824_v44 = vadd.f32 %v2173_v52, %v2109_v50 }
 0x35a   :  { %v2350_v38 = vadd.f32 %v4806_v57, %v4803_v27  ;;  %v2401_v28 = vmul.f32 %v4806_v57, %v4806_v57 }
 0x35b   :  { %v2402_v2 = vmul.f32 %v4824_v44, %v4824_v44 }
 0x35c   :  { %2351 = vadd.xlane.f32.xlu0 %v2350_v38  ;;  %v2446_v59 = vadd.f32 %v2401_v28, %v2400_v7 }
 0x35d   :  { %v2238_v30 = vpop.f32.mrf.mxu2  ;;  %v2303_v60 = vpop.f32.mrf.mxu3 }
 0x35e   :  { %v2310_v33 = vpop.xlane.xlu1 %2309  ;;  %v2239_v34 = vadd.f32 %v2238_v30, %v4637_v48  ;;  %2447 = vadd.xlane.f32.xlu1 %v2446_v59 }
 0x35f   :  { %v4815_v20 = vmul.f32 %v2310_v33, %v3802_v58 }
 0x360   :  { %v2406_v15 = vpop.xlane.xlu2 %2405  ;;  %v4826_v45 = vadd.f32 %v2303_v60, %v2239_v34  ;;  %v2306_v34 = vld [vmem:[%s5223_s13] sm:$0x3] }
 0x361   :  { %v2452_v12 = vmul.f32 %v2406_v15, %v3802_v58  ;;  %v2468_v18 = vmul.f32 %v4815_v20, %v4815_v20  ;;  %v2516_v24 = vsub.f32 %v4639_v13, %v4815_v20  ;;  %v4863_v8 = vperm.slane %v2306_v34, 1 }
 0x362   :  { %v2353_v51 = vadd.f32 %v4826_v45, %v4824_v44  ;;  %v2403_v14 = vmul.f32 %v4826_v45, %v4826_v45 }
 0x363   :  { %v2484_v63 = vsub.f32 %v2452_v12, %v2468_v18 }
 0x364   :  { %2444 = vadd.xlane.f32.xlu0 %v2443_v10  ;;  %2354 = vadd.xlane.f32.xlu2 %v2353_v51  ;;  %v2449_v5 = vadd.f32 %v2403_v14, %v2402_v2  ;;  %v2307_v51 = vld [vmem:[%s5224_s14] sm:$0x3] }
 0x365   :  { %v2500_v25 = vmax.f32 %v2484_v63, 0.0  ;;  %v2948_v63 = vld [vmem:[#allocation2] sm:$0x1] }
 0x367   :  { %v2548_v48 = vadd.f32 1e-05, %v2500_v25  ;;  %v2517_v25 = vsub.f32 %v4642_v56, %v4815_v20  ;;  %v4866_v20 = vperm.slane %v2307_v51, 0 }
 0x368   :  { %v2313_v47 = vpop.xlane.xlu2 %2312  ;;  %v2409_v29 = vpop.xlane.xlu0 %2408 }
 0x369   :  { %3209 = vrsqrt.f32 %v2548_v48  ;;  %v4835_v26 = vmul.f32 %v2313_v47, %v3802_v58  ;;  %v2453_v36 = vmul.f32 %v2409_v29, %v3802_v58  ;;  %vm2570_vm4 = vweird.f32 %v2548_v48 }
 0x36a   :  { %v4861_v47 = vperm.slane %v2306_v34, 0 }
 0x36b   :  { %v2469_v16 = vmul.f32 %v4835_v26, %v4835_v26 }
 0x36c   :  { %2450 = vadd.xlane.f32.xlu2 %v2449_v5  ;;  %v4868_v5 = vperm.slane %v2307_v51, 1 }
 0x36d   :  { %v2485_v33 = vsub.f32 %v2453_v36, %v2469_v16 }
 0x36f   :  { %v3210_v54 = vpop.eup %3209  ;;  %v2501_v7 = vmax.f32 %v2485_v33, 0.0  ;;  %v2862_v33 = vld [vmem:[%s5225_s15] sm:$0x3]  ;;  %s3325_s15 = smov [#allocation8]  }
 0x370   :  { %v2565_v38 = vmul.f32 %v3210_v54, %v2548_v48  ;;  %v2316_v12 = vpop.xlane.xlu0 %2315  ;;  %vm2571_vm3 = vweird.f32 %v3210_v54  ;;  %s3057_s21 = sshll.u32 %s3325_s15, 4  ;;  %s3058_s21 = int_to_ptr.vmem [resolvable:$true] %s3057_s21 }
 0x371   :  { %v4842_v15 = vadd.f32 1e-05, %v2501_v7  ;;  %v2412_v59 = vpop.xlane.xlu1 %2411  ;;  %v4846_v30 = vmul.f32 %v2316_v12, %v3802_v58  ;;  %vm2572_vm5 = vmor %vm2570_vm4, %vm2571_vm3 }
 0x372   :  { %v2566_v28 = vmul.f32 %v3210_v54, %v2565_v38  ;;  %v2454_v3 = vmul.f32 %v2412_v59, %v3802_v58 }
 0x373   :  { %3211 = vrsqrt.f32 %v4842_v15  ;;  %v2470_v52 = vmul.f32 %v4846_v30, %v4846_v30  ;;  %vm2580_vm7 = vweird.f32 %v4842_v15 }
 0x374   :  { %v2567_v50 = vmul.f32 0.5, %v2566_v28 }
 0x375   :  { %v2486_v10 = vsub.f32 %v2454_v3, %v2470_v52 }
 0x376   :  { %v2568_v18 = vsub.f32 1.5, %v2567_v50 }
 0x377   :  { %v2502_v48 = vmax.f32 %v2486_v10, 0.0  ;;  %2951 = vperm.xlu1 %3141, %v2948_v63  }
 0x378   :  { %v2569_v60 = vmul.f32 %v3210_v54, %v2568_v18  ;;  %v4881_v18 = vperm.slane %v2862_v33, 0 }
 0x379   :  { %v3212_v29 = vpop.eup %3211  ;;  %v2415_v36 = vpop.xlane.xlu2 %2414 }
 0x37a   :  { %v2573_v14 = vsel %vm2572_vm5, %v3210_v54, %v2569_v60  ;;  %v2575_v13 = vmul.f32 %v3212_v29, %v4842_v15  ;;  %v2319_v56 = vpop.xlane.xlu1 %2318  ;;  %v2550_v54 = vadd.f32 1e-05, %v2502_v48  ;;  %v2455_v59 = vmul.f32 %v2415_v36, %v3802_v58 }
 0x37b   :  { %v2724_v2 = vmul.f32 %v2573_v14, %v2516_v24  ;;  %v2725_v16 = vmul.f32 %v2573_v14, %v2517_v25  ;;  %v4874_v38 = vmul.f32 %v2319_v56, %v3802_v58  ;;  %v4885_v60 = vperm.slane %v2862_v33, 1 }
 0x37c   :  { %v2576_v28 = vmul.f32 %v3212_v29, %v2575_v13  ;;  %3213 = vrsqrt.f32 %v2550_v54  ;;  %vm2581_vm6 = vweird.f32 %v3212_v29  ;;  %vm2590_vm10 = vweird.f32 %v2550_v54 }
 0x37d   :  { %v2761_v7 = vmul.f32 %v4861_v47, %v2724_v2  ;;  %v2762_v50 = vmul.f32 %v4863_v8, %v2725_v16  ;;  %v2471_v12 = vmul.f32 %v4874_v38, %v4874_v38  ;;  %vm2582_vm8 = vmor %vm2580_vm7, %vm2581_vm6 }
 0x37e   :  { %v2577_v34 = vmul.f32 0.5, %v2576_v28 }
 0x37f   :  { %v2798_v3 = vadd.f32 %v4866_v20, %v2761_v7  ;;  %v2799_v52 = vadd.f32 %v4868_v5, %v2762_v50  ;;  %v2487_v63 = vsub.f32 %v2455_v59, %v2471_v12  ;;  %v2518_v50 = vsub.f32 %v4651_v53, %v4835_v26 }
 0x380   :  { %v2578_v24 = vsub.f32 1.5, %v2577_v34  ;;  %v2519_v59 = vsub.f32 %v4654_v17, %v4835_v26 }
 0x381   :  { %v2830_v25 = vmax.f32 %v2798_v3, 0.0  ;;  %v2831_v10 = vmax.f32 %v2799_v52, 0.0  ;;  %v2503_v51 = vmax.f32 %v2487_v63, 0.0  ;;  %v2322_v48 = vpop.xlane.xlu2 %2321  ;;  %v2418_v33 = vpop.xlane.xlu0 %2417 }
 0x382   :  { %v2579_v14 = vmul.f32 %v3212_v29, %v2578_v24  ;;  %v3214_v13 = vpop.eup %3213  ;;  %v4892_v56 = vmul.f32 %v2322_v48, %v3802_v58  ;;  %v2456_v3 = vmul.f32 %v2418_v33, %v3802_v58  ;;  %v2520_v48 = vsub.f32 %v4663_v42, %v4846_v30 }
 0x383   :  { %v2868_v2 = vmul.f32 %v4881_v18, %v2830_v25  ;;  %v2869_v16 = vmul.f32 %v4885_v60, %v2831_v10  ;;  %v4889_v36 = vadd.f32 1e-05, %v2503_v51  ;;  %v2585_v7 = vmul.f32 %v3214_v13, %v2550_v54 }
 0x384   :  { %v2472_v34 = vmul.f32 %v4892_v56, %v4892_v56  ;;  %v2583_v52 = vsel %vm2582_vm8, %v3212_v29, %v2579_v14  ;;  %vm2591_vm9 = vweird.f32 %v3214_v13 }
 0x385   :  { %v2900_v28 = vadd.f32 %v2869_v16, %v2868_v2  ;;  %3215 = vrsqrt.f32 %v4889_v36  ;;  %v2586_v12 = vmul.f32 %v3214_v13, %v2585_v7  ;;  %v2726_v15 = vmul.f32 %v2583_v52, %v2518_v50  ;;  %vm2592_vm11 = vmor %vm2590_vm10, %vm2591_vm9 }
 0x386   :  { %v2727_v63 = vmul.f32 %v2583_v52, %v2519_v59  ;;  %v2488_v25 = vsub.f32 %v2456_v3, %v2472_v34  ;;  %v2521_v50 = vsub.f32 %v4666_v32, %v4846_v30  ;;  %vm2600_vm13 = vweird.f32 %v4889_v36 }
 0x387   :  { %2901 = vadd.xlane.f32.xlu0 %v2900_v28  ;;  %v2587_v24 = vmul.f32 0.5, %v2586_v12  ;;  %v2763_v53 = vmul.f32 %v4861_v47, %v2726_v15 }
 0x388   :  { %v2764_v10 = vmul.f32 %v4863_v8, %v2727_v63  ;;  %v2504_v26 = vmax.f32 %v2488_v25, 0.0 }
 0x389   :  { %v2588_v17 = vsub.f32 1.5, %v2587_v24  ;;  %v2325_v2 = vpop.xlane.xlu0 %2324  ;;  %v2800_v16 = vadd.f32 %v4866_v20, %v2763_v53  ;;  %v2421_v28 = vpop.xlane.xlu2 %2420 }
 0x38a   :  { %v2801_v29 = vadd.f32 %v4868_v5, %v2764_v10  ;;  %v4910_v7 = vadd.f32 1e-05, %v2504_v26  ;;  %v4915_v59 = vmul.f32 %v2325_v2, %v3802_v58  ;;  %v2457_v15 = vmul.f32 %v2421_v28, %v3802_v58 }
 0x38b   :  { %v3216_v51 = vpop.eup %3215  ;;  %v2589_v14 = vmul.f32 %v3214_v13, %v2588_v17  ;;  %v2832_v42 = vmax.f32 %v2800_v16, 0.0  ;;  %v2523_v28 = vsub.f32 %v4678_v62, %v4874_v38 }
 0x38c   :  { %v2595_v33 = vmul.f32 %v3216_v51, %v4889_v36  ;;  %v2833_v12 = vmax.f32 %v2801_v29, 0.0  ;;  %3217 = vrsqrt.f32 %v4910_v7  ;;  %v2473_v63 = vmul.f32 %v4915_v59, %v4915_v59 }
 0x38d   :  { %v2593_v34 = vsel %vm2592_vm11, %v3214_v13, %v2589_v14  ;;  %v2870_v32 = vmul.f32 %v4881_v18, %v2832_v42  ;;  %vm2601_vm12 = vweird.f32 %v3216_v51  ;;  %v2522_v14 = vsub.f32 %v4675_v61, %v4874_v38 }
 0x38e   :  { %v2596_v3 = vmul.f32 %v3216_v51, %v2595_v33  ;;  %v2728_v52 = vmul.f32 %v2593_v34, %v2520_v48  ;;  %v2729_v54 = vmul.f32 %v2593_v34, %v2521_v50  ;;  %v2871_v30 = vmul.f32 %v4885_v60, %v2833_v12  ;;  %vm2602_vm14 = vmor %vm2600_vm13, %vm2601_vm12 }
 0x38f   :  { %v2489_v25 = vsub.f32 %v2457_v15, %v2473_v63  ;;  %v2328_v53 = vpop.xlane.xlu1 %2327  ;;  %vm2610_vm0 = vweird.f32 %v4910_v7 }
 0x390   :  { %v2597_v24 = vmul.f32 0.5, %v2596_v3  ;;  %v2765_v10 = vmul.f32 %v4861_v47, %v2728_v52  ;;  %v2766_v13 = vmul.f32 %v4863_v8, %v2729_v54  ;;  %v2903_v26 = vadd.f32 %v2871_v30, %v2870_v32 }
 0x391   :  { %v2505_v48 = vmax.f32 %v2489_v25, 0.0  ;;  %v4936_v3 = vmul.f32 %v2328_v53, %v3802_v58 }
 0x392   :  { %v2598_v17 = vsub.f32 1.5, %v2597_v24  ;;  %v2802_v2 = vadd.f32 %v4866_v20, %v2765_v10  ;;  %v2803_v16 = vadd.f32 %v4868_v5, %v2766_v13  ;;  %v3218_v29 = vpop.eup %3217  ;;  %2904 = vadd.xlane.f32.xlu2 %v2903_v26 }
 0x393   :  { %v2605_v50 = vmul.f32 %v3218_v29, %v4910_v7  ;;  %v4933_v42 = vadd.f32 1e-05, %v2505_v48  ;;  %vm2611_vm15 = vweird.f32 %v3218_v29 }
 0x394   :  { %v2599_v33 = vmul.f32 %v3216_v51, %v2598_v17  ;;  %v2834_v12 = vmax.f32 %v2802_v2, 0.0  ;;  %v2835_v52 = vmax.f32 %v2803_v16, 0.0  ;;  %vm2612_vm1 = vmor %vm2610_vm0, %vm2611_vm15 }
 0x395   :  { %v2606_v15 = vmul.f32 %v3218_v29, %v2605_v50  ;;  %3219 = vrsqrt.f32 %v4933_v42  ;;  %vm2620_vm3 = vweird.f32 %v4933_v42 }
 0x396   :  { %v2603_v34 = vsel %vm2602_vm14, %v3216_v51, %v2599_v33  ;;  %v2872_v36 = vmul.f32 %v4881_v18, %v2834_v12  ;;  %v2873_v62 = vmul.f32 %v4885_v60, %v2835_v52  ;;  %v2474_v51 = vmul.f32 %v4936_v3, %v4936_v3 }
 0x397   :  { %v2730_v54 = vmul.f32 %v2603_v34, %v2522_v14  ;;  %v2731_v61 = vmul.f32 %v2603_v34, %v2523_v28  ;;  %v2607_v38 = vmul.f32 0.5, %v2606_v15  ;;  %v2424_v63 = vpop.xlane.xlu1 %2423  ;;  %v2524_v33 = vsub.f32 %v4687_v31, %v4892_v56 }
 0x398   :  { %v2458_v30 = vmul.f32 %v2424_v63, %v3802_v58  ;;  %v2906_v25 = vadd.f32 %v2873_v62, %v2872_v36  ;;  %v2525_v28 = vsub.f32 %v4690_v37, %v4892_v56 }
 0x399   :  { %v2767_v24 = vmul.f32 %v4861_v47, %v2730_v54  ;;  %v2768_v32 = vmul.f32 %v4863_v8, %v2731_v61  ;;  %v2608_v53 = vsub.f32 1.5, %v2607_v38  ;;  %v2427_v10 = vpop.xlane.xlu0 %2426 }
 0x39a   :  { %v2490_v26 = vsub.f32 %v2458_v30, %v2474_v51  ;;  %2907 = vadd.xlane.f32.xlu0 %v2906_v25  ;;  %v2459_v51 = vmul.f32 %v2427_v10, %v3802_v58  ;;  %v2527_v10 = vsub.f32 %v4702_v1, %v4915_v59 }
 0x39b   :  { %v2804_v13 = vadd.f32 %v4866_v20, %v2767_v24  ;;  %v2805_v17 = vadd.f32 %v4868_v5, %v2768_v32  ;;  %v3220_v48 = vpop.eup %3219  ;;  %v2609_v2 = vmul.f32 %v3218_v29, %v2608_v53 }
 0x39c   :  { %v2615_v50 = vmul.f32 %v3220_v48, %v4933_v42  ;;  %v2506_v12 = vmax.f32 %v2490_v26, 0.0  ;;  %vm2621_vm2 = vweird.f32 %v3220_v48 }
 0x39d   :  { %v2836_v16 = vmax.f32 %v2804_v13, 0.0  ;;  %v2837_v14 = vmax.f32 %v2805_v17, 0.0  ;;  %v2613_v54 = vsel %vm2612_vm1, %v3218_v29, %v2609_v2  ;;  %v2526_v2 = vsub.f32 %v4699_v55, %v4915_v59  ;;  %vm2622_vm4 = vmor %vm2620_vm3, %vm2621_vm2 }
 0x39e   :  { %v2616_v61 = vmul.f32 %v3220_v48, %v2615_v50  ;;  %v4956_v15 = vadd.f32 1e-05, %v2506_v12  ;;  %v2732_v7 = vmul.f32 %v2613_v54, %v2524_v33  ;;  %v2733_v36 = vmul.f32 %v2613_v54, %v2525_v28 }
 0x39f   :  { %v2874_v34 = vmul.f32 %v4881_v18, %v2836_v16  ;;  %v2875_v52 = vmul.f32 %v4885_v60, %v2837_v14  ;;  %v2331_v62 = vpop.xlane.xlu1 %2330 }
 0x3a0   :  { %v2617_v31 = vmul.f32 0.5, %v2616_v61  ;;  %3221 = vrsqrt.f32 %v4956_v15  ;;  %v4960_v37 = vmul.f32 %v2331_v62, %v3802_v58  ;;  %v2769_v24 = vmul.f32 %v4861_v47, %v2732_v7 }
 0x3a1   :  { %v2909_v38 = vadd.f32 %v2875_v52, %v2874_v34  ;;  %v2430_v56 = vpop.xlane.xlu2 %2429  ;;  %v2334_v63 = vpop.xlane.xlu0 %2333  ;;  %v2770_v29 = vmul.f32 %v4863_v8, %v2733_v36  ;;  %vm2630_vm6 = vweird.f32 %v4956_v15 }
 0x3a2   :  { %v2618_v32 = vsub.f32 1.5, %v2617_v31  ;;  %v2475_v30 = vmul.f32 %v4960_v37, %v4960_v37  ;;  %v4968_v25 = vmul.f32 %v2334_v63, %v3802_v58  ;;  %v2806_v53 = vadd.f32 %v4866_v20, %v2769_v24 }
 0x3a3   :  { %2910 = vadd.xlane.f32.xlu2 %v2909_v38  ;;  %v2807_v13 = vadd.f32 %v4868_v5, %v2770_v29  ;;  %v2460_v12 = vmul.f32 %v2430_v56, %v3802_v58 }
 0x3a4   :  { %v2619_v17 = vmul.f32 %v3220_v48, %v2618_v32  ;;  %v2491_v26 = vsub.f32 %v2459_v51, %v2475_v30  ;;  %v2476_v16 = vmul.f32 %v4968_v25, %v4968_v25  ;;  %v2838_v14 = vmax.f32 %v2806_v53, 0.0 }
 0x3a5   :  { %v2839_v34 = vmax.f32 %v2807_v13, 0.0 }
 0x3a6   :  { %v3222_v33 = vpop.eup %3221  ;;  %v2623_v28 = vsel %vm2622_vm4, %v3220_v48, %v2619_v17  ;;  %v2507_v50 = vmax.f32 %v2491_v26, 0.0  ;;  %v2492_v55 = vsub.f32 %v2460_v12, %v2476_v16  ;;  %v2876_v1 = vmul.f32 %v4881_v18, %v2838_v14 }
 0x3a7   :  { %v2734_v52 = vmul.f32 %v2623_v28, %v2526_v2  ;;  %v2735_v42 = vmul.f32 %v2623_v28, %v2527_v10  ;;  %v2625_v54 = vmul.f32 %v3222_v33, %v4956_v15  ;;  %v2877_v59 = vmul.f32 %v4885_v60, %v2839_v34 }
 0x3a8   :  { %v4981_v61 = vadd.f32 1e-05, %v2507_v50  ;;  %v2508_v31 = vmax.f32 %v2492_v55, 0.0  ;;  %vm2631_vm5 = vweird.f32 %v3222_v33  ;;  %v2528_v14 = vsub.f32 %v4712_v0, %v4936_v3 }
 0x3a9   :  { %v2626_v7 = vmul.f32 %v3222_v33, %v2625_v54  ;;  %v2433_v36 = vpop.xlane.xlu1 %2432  ;;  %v2337_v62 = vpop.xlane.xlu2 %2336  ;;  %v2771_v48 = vmul.f32 %v4861_v47, %v2734_v52  ;;  %v2772_v38 = vmul.f32 %v4863_v8, %v2735_v42  ;;  %v2912_v24 = vadd.f32 %v2877_v59, %v2876_v1  ;;  %vm2632_vm7 = vmor %vm2630_vm6, %vm2631_vm5 }
 0x3aa   :  { %3223 = vrsqrt.f32 %v4981_v61  ;;  %v4989_v63 = vmul.f32 %v2337_v62, %v3802_v58  ;;  %v4992_v32 = vadd.f32 1e-05, %v2508_v31  ;;  %v2461_v53 = vmul.f32 %v2433_v36, %v3802_v58 }
 0x3ab   :  { %v2627_v56 = vmul.f32 0.5, %v2626_v7  ;;  %v2808_v29 = vadd.f32 %v4866_v20, %v2771_v48  ;;  %v2809_v51 = vadd.f32 %v4868_v5, %v2772_v38  ;;  %2913 = vadd.xlane.f32.xlu0 %v2912_v24  ;;  %v2529_v12 = vsub.f32 %v4714_v6, %v4936_v3 }
 0x3ac   :  { %v2477_v13 = vmul.f32 %v4989_v63, %v4989_v63  ;;  %3225 = vrsqrt.f32 %v4992_v32  ;;  %vm2640_vm9 = vweird.f32 %v4981_v61  ;;  %vm2650_vm11 = vweird.f32 %v4992_v32 }
 0x3ad   :  { %v2628_v30 = vsub.f32 1.5, %v2627_v56  ;;  %v2840_v17 = vmax.f32 %v2808_v29, 0.0  ;;  %v2841_v26 = vmax.f32 %v2809_v51, 0.0 }
 0x3ae   :  { %v2493_v10 = vsub.f32 %v2461_v53, %v2477_v13 }
 0x3af   :  { %v2629_v2 = vmul.f32 %v3222_v33, %v2628_v30  ;;  %v2878_v28 = vmul.f32 %v4881_v18, %v2840_v17  ;;  %v2879_v50 = vmul.f32 %v4885_v60, %v2841_v26  ;;  %v2530_v17 = vsub.f32 %v4719_v21, %v4960_v37 }
 0x3b0   :  { %v3224_v16 = vpop.eup %3223  ;;  %v2509_v52 = vmax.f32 %v2493_v10, 0.0 }
 0x3b1   :  { %v2635_v34 = vmul.f32 %v3224_v16, %v4981_v61  ;;  %v2340_v42 = vpop.xlane.xlu1 %2339  ;;  %v2436_v54 = vpop.xlane.xlu0 %2435  ;;  %v2633_v55 = vsel %vm2632_vm7, %v3222_v33, %v2629_v2  ;;  %v2915_v1 = vadd.f32 %v2879_v50, %v2878_v28  ;;  %vm2641_vm8 = vweird.f32 %v3224_v16 }
 0x3b2   :  { %v5008_v15 = vmul.f32 %v2340_v42, %v3802_v58  ;;  %v2736_v59 = vmul.f32 %v2633_v55, %v2528_v14  ;;  %v5010_v7 = vadd.f32 1e-05, %v2509_v52  ;;  %v2737_v36 = vmul.f32 %v2633_v55, %v2529_v12  ;;  %v3226_v62 = vpop.eup %3225  ;;  %vm2642_vm10 = vmor %vm2640_vm9, %vm2641_vm8 }
 0x3b3   :  { %v2636_v0 = vmul.f32 %v3224_v16, %v2635_v34  ;;  %v2462_v6 = vmul.f32 %v2436_v54, %v3802_v58  ;;  %2916 = vadd.xlane.f32.xlu2 %v2915_v1  ;;  %v2645_v33 = vmul.f32 %v3226_v62, %v4992_v32  ;;  %v2531_v28 = vsub.f32 %v4724_v23, %v4960_v37 }
 0x3b4   :  { %v2478_v48 = vmul.f32 %v5008_v15, %v5008_v15  ;;  %v2773_v3 = vmul.f32 %v4861_v47, %v2736_v59  ;;  %3227 = vrsqrt.f32 %v5010_v7  ;;  %v2774_v56 = vmul.f32 %v4863_v8, %v2737_v36 }
 0x3b5   :  { %v2637_v38 = vmul.f32 0.5, %v2636_v0  ;;  %v2646_v51 = vmul.f32 %v3226_v62, %v2645_v33  ;;  %vm2651_vm12 = vweird.f32 %v3226_v62  ;;  %v2533_v32 = vsub.f32 %v4736_v4, %v4968_v25 }
 0x3b6   :  { %v2494_v31 = vsub.f32 %v2462_v6, %v2478_v48  ;;  %v2810_v24 = vadd.f32 %v4866_v20, %v2773_v3  ;;  %v2811_v53 = vadd.f32 %v4868_v5, %v2774_v56  ;;  %vm2652_vm13 = vmor %vm2650_vm11, %vm2651_vm12  ;;  %vm2660_vm14 = vweird.f32 %v5010_v7 }
 0x3b7   :  { %v2638_v29 = vsub.f32 1.5, %v2637_v38  ;;  %v2647_v2 = vmul.f32 0.5, %v2646_v51 }
 0x3b8   :  { %v2510_v30 = vmax.f32 %v2494_v31, 0.0  ;;  %v2842_v13 = vmax.f32 %v2810_v24, 0.0  ;;  %v2843_v34 = vmax.f32 %v2811_v53, 0.0 }
 0x3b9   :  { %v2639_v26 = vmul.f32 %v3224_v16, %v2638_v29  ;;  %v2439_v10 = vpop.xlane.xlu2 %2438  ;;  %v2343_v14 = vpop.xlane.xlu0 %2342  ;;  %v2648_v54 = vsub.f32 1.5, %v2647_v2 }
 0x3ba   :  { %v5026_v50 = vadd.f32 1e-05, %v2510_v30  ;;  %v5029_v12 = vmul.f32 %v2343_v14, %v3802_v58  ;;  %v3228_v52 = vpop.eup %3227  ;;  %v2880_v1 = vmul.f32 %v4881_v18, %v2842_v13  ;;  %v2463_v37 = vmul.f32 %v2439_v10, %v3802_v58 }
 0x3bb   :  { %v2643_v42 = vsel %vm2642_vm10, %v3224_v16, %v2639_v26  ;;  %v2655_v55 = vmul.f32 %v3228_v52, %v5010_v7  ;;  %v2649_v23 = vmul.f32 %v3226_v62, %v2648_v54  ;;  %v2532_v16 = vsub.f32 %v4733_v43, %v4968_v25 }
 0x3bc   :  { %v2738_v21 = vmul.f32 %v2643_v42, %v2530_v17  ;;  %v2739_v61 = vmul.f32 %v2643_v42, %v2531_v28  ;;  %3229 = vrsqrt.f32 %v5026_v50  ;;  %v2479_v59 = vmul.f32 %v5029_v12, %v5029_v12 }
 0x3bd   :  { %v2656_v0 = vmul.f32 %v3228_v52, %v2655_v55  ;;  %v2881_v36 = vmul.f32 %v4885_v60, %v2843_v34  ;;  %v2653_v48 = vsel %vm2652_vm13, %v3226_v62, %v2649_v23  ;;  %vm2661_vm15 = vweird.f32 %v3228_v52 }
 0x3be   :  { %v2495_v6 = vsub.f32 %v2463_v37, %v2479_v59  ;;  %v2775_v3 = vmul.f32 %v4861_v47, %v2738_v21  ;;  %v2776_v38 = vmul.f32 %v4863_v8, %v2739_v61  ;;  %v2740_v33 = vmul.f32 %v2653_v48, %v2532_v16  ;;  %vm2662_vm0 = vmor %vm2660_vm14, %vm2661_vm15 }
 0x3bf   :  { %v2741_v31 = vmul.f32 %v2653_v48, %v2533_v32  ;;  %v2657_v56 = vmul.f32 0.5, %v2656_v0  ;;  %v2918_v24 = vadd.f32 %v2881_v36, %v2880_v1  ;;  %v2534_v54 = vsub.f32 %v4747_v49, %v4989_v63 }
 0x3c0   :  { %v2511_v43 = vmax.f32 %v2495_v6, 0.0  ;;  %v2812_v4 = vadd.f32 %v4866_v20, %v2775_v3  ;;  %v2813_v25 = vadd.f32 %v4868_v5, %v2776_v38  ;;  %v2777_v10 = vmul.f32 %v4861_v47, %v2740_v33 }
 0x3c1   :  { %v2442_v29 = vpop.xlane.xlu1 %2441  ;;  %v2346_v51 = vpop.xlane.xlu2 %2345  ;;  %v2658_v30 = vsub.f32 1.5, %v2657_v56  ;;  %2919 = vadd.xlane.f32.xlu0 %v2918_v24  ;;  %v2778_v42 = vmul.f32 %v4863_v8, %v2741_v31  ;;  %v2535_v21 = vsub.f32 %v4750_v11, %v4989_v63  ;;  %vm2670_vm2 = vweird.f32 %v5026_v50 }
 0x3c2   :  { %v2464_v62 = vmul.f32 %v2442_v29, %v3802_v58  ;;  %v5050_v53 = vmul.f32 %v2346_v51, %v3802_v58  ;;  %v3230_v13 = vpop.eup %3229  ;;  %v5052_v17 = vadd.f32 1e-05, %v2511_v43  ;;  %v2844_v26 = vmax.f32 %v2812_v4, 0.0 }
 0x3c3   :  { %v2845_v2 = vmax.f32 %v2813_v25, 0.0  ;;  %v2659_v14 = vmul.f32 %v3228_v52, %v2658_v30  ;;  %v2665_v28 = vmul.f32 %v3230_v13, %v5026_v50  ;;  %v2814_v49 = vadd.f32 %v4866_v20, %v2777_v10 }
 0x3c4   :  { %v2480_v34 = vmul.f32 %v5050_v53, %v5050_v53  ;;  %3231 = vrsqrt.f32 %v5052_v17  ;;  %v2882_v23 = vmul.f32 %v4881_v18, %v2844_v26  ;;  %v2815_v11 = vadd.f32 %v4868_v5, %v2778_v42 }
 0x3c5   :  { %v2663_v61 = vsel %vm2662_vm0, %v3228_v52, %v2659_v14  ;;  %v2666_v55 = vmul.f32 %v3230_v13, %v2665_v28  ;;  %v2883_v16 = vmul.f32 %v4885_v60, %v2845_v2  ;;  %v2846_v36 = vmax.f32 %v2814_v49, 0.0 }
 0x3c6   :  { %v2496_v1 = vsub.f32 %v2464_v62, %v2480_v34  ;;  %v2742_v37 = vmul.f32 %v2663_v61, %v2534_v54  ;;  %v2743_v59 = vmul.f32 %v2663_v61, %v2535_v21  ;;  %v2847_v38 = vmax.f32 %v2815_v11, 0.0 }
 0x3c7   :  { %v2667_v32 = vmul.f32 0.5, %v2666_v55  ;;  %v2921_v63 = vadd.f32 %v2883_v16, %v2882_v23  ;;  %vm2671_vm1 = vweird.f32 %v3230_v13  ;;  %v2884_v31 = vmul.f32 %v4881_v18, %v2846_v36 }
 0x3c8   :  { %v2512_v0 = vmax.f32 %v2496_v1, 0.0  ;;  %v2779_v48 = vmul.f32 %v4861_v47, %v2742_v37  ;;  %v2780_v52 = vmul.f32 %v4863_v8, %v2743_v59  ;;  %v2885_v51 = vmul.f32 %v4885_v60, %v2847_v38  ;;  %vm2672_vm3 = vmor %vm2670_vm2, %vm2671_vm1 }
 0x3c9   :  { %v2349_v7 = vpop.xlane.xlu1 %2348  ;;  %v2668_v6 = vsub.f32 1.5, %v2667_v32  ;;  %2922 = vadd.xlane.f32.xlu2 %v2921_v63  ;;  %v2536_v62 = vsub.f32 %v4759_v46, %v5008_v15  ;;  %v2537_v26 = vsub.f32 %v4762_v40, %v5008_v15  ;;  %vm2680_vm5 = vweird.f32 %v5052_v17 }
 0x3ca   :  { %v5073_v3 = vadd.f32 1e-05, %v2512_v0  ;;  %v3232_v33 = vpop.eup %3231  ;;  %v2816_v56 = vadd.f32 %v4866_v20, %v2779_v48  ;;  %v2817_v24 = vadd.f32 %v4868_v5, %v2780_v52  ;;  %v2924_v2 = vadd.f32 %v2885_v51, %v2884_v31 }
 0x3cb   :  { %v2669_v43 = vmul.f32 %v3230_v13, %v2668_v6  ;;  %v2675_v29 = vmul.f32 %v3232_v33, %v5052_v17  ;;  %vm2681_vm4 = vweird.f32 %v3232_v33  ;;  %v5092_v40 = vmul.f32 %v2349_v7, %v3802_v58 }
 0x3cc   :  { %3233 = vrsqrt.f32 %v5073_v3  ;;  %v2848_v25 = vmax.f32 %v2816_v56, 0.0  ;;  %v2849_v30 = vmax.f32 %v2817_v24, 0.0  ;;  %2925 = vadd.xlane.f32.xlu1 %v2924_v2  ;;  %v2538_v49 = vsub.f32 %v4771_v19, %v5029_v12  ;;  %vm2682_vm6 = vmor %vm2680_vm5, %vm2681_vm4 }
 0x3cd   :  { %v2676_v4 = vmul.f32 %v3232_v33, %v2675_v29  ;;  %v2673_v14 = vsel %vm2672_vm3, %v3230_v13, %v2669_v43  ;;  %v2539_v32 = vsub.f32 %v4774_v35, %v5029_v12  ;;  %v2481_v7 = vmul.f32 %v5092_v40, %v5092_v40 }
 0x3ce   :  { %v2886_v50 = vmul.f32 %v4881_v18, %v2848_v25  ;;  %v2887_v42 = vmul.f32 %v4885_v60, %v2849_v30  ;;  %v2744_v21 = vmul.f32 %v2673_v14, %v2536_v62  ;;  %v2745_v61 = vmul.f32 %v2673_v14, %v2537_v26 }
 0x3cf   :  { %v2352_v10 = vpop.xlane.xlu0 %2351  ;;  %v2677_v28 = vmul.f32 0.5, %v2676_v4  ;;  %v2540_v51 = vsub.f32 %v4783_v22, %v5050_v53  ;;  %v2541_v4 = vsub.f32 %v4786_v39, %v5050_v53  ;;  %vm2690_vm8 = vweird.f32 %v5073_v3 }
 0x3d0   :  { %v5087_v34 = vmul.f32 %v2352_v10, %v3802_v58  ;;  %v2927_v23 = vadd.f32 %v2887_v42, %v2886_v50  ;;  %v2781_v59 = vmul.f32 %v4861_v47, %v2744_v21  ;;  %v2782_v16 = vmul.f32 %v4863_v8, %v2745_v61 }
 0x3d1   :  { %v2448_v54 = vpop.xlane.xlu1 %2447  ;;  %v2678_v46 = vsub.f32 1.5, %v2677_v28  ;;  %vm2992_vm3 = vcmask 130112   ;;  %vm2996_vm4 = vcmask 195712   ;;  %vm3000_vm5 = vcmask 261312  }
 0x3d2   :  { %v3234_v55 = vpop.eup %3233  ;;  %v2466_v15 = vmul.f32 %v2448_v54, %v3802_v58  ;;  %v2482_v1 = vmul.f32 %v5087_v34, %v5087_v34  ;;  %2928 = vadd.xlane.f32.xlu0 %v2927_v23  ;;  %v2818_v17 = vadd.f32 %v4866_v20, %v2781_v59  ;;  %v2819_v36 = vadd.f32 %v4868_v5, %v2782_v16 }
 0x3d3   :  { %v2685_v13 = vmul.f32 %v3234_v55, %v5073_v3  ;;  %v2679_v37 = vmul.f32 %v3232_v33, %v2678_v46  ;;  %vm2691_vm7 = vweird.f32 %v3234_v55 }
 0x3d4   :  { %v2498_v11 = vsub.f32 %v2466_v15, %v2482_v1  ;;  %v2850_v12 = vmax.f32 %v2818_v17, 0.0  ;;  %v2851_v56 = vmax.f32 %v2819_v36, 0.0  ;;  %vm2692_vm9 = vmor %vm2690_vm8, %vm2691_vm7  ;;  %vm3008_vm7 = vcmask 392512  }
 0x3d5   :  { %v2686_v0 = vmul.f32 %v3234_v55, %v2685_v13  ;;  %v2683_v63 = vsel %vm2682_vm6, %v3232_v33, %v2679_v37  ;;  %vm3004_vm6 = vcmask 326912   ;;  %vm3012_vm8 = vcmask 458112  }
 0x3d6   :  { %v2746_v48 = vmul.f32 %v2683_v63, %v2538_v49  ;;  %v2747_v52 = vmul.f32 %v2683_v63, %v2539_v32  ;;  %v2514_v38 = vmax.f32 %v2498_v11, 0.0  ;;  %v2888_v30 = vmul.f32 %v4881_v18, %v2850_v12 }
 0x3d7   :  { %v2687_v6 = vmul.f32 0.5, %v2686_v0  ;;  %v2355_v19 = vpop.xlane.xlu2 %2354  ;;  %v2445_v31 = vpop.xlane.xlu0 %2444  ;;  %v2889_v26 = vmul.f32 %v4885_v60, %v2851_v56  ;;  %v2544_v12 = vsub.f32 %v4803_v27, %v5087_v34  ;;  %v2545_v56 = vsub.f32 %v4806_v57, %v5087_v34 }
 0x3d8   :  { %v2465_v35 = vmul.f32 %v2445_v31, %v3802_v58  ;;  %v2562_v33 = vadd.f32 1e-05, %v2514_v38  ;;  %v2783_v43 = vmul.f32 %v4861_v47, %v2746_v48  ;;  %v2784_v29 = vmul.f32 %v4863_v8, %v2747_v52 }
 0x3d9   :  { %v2688_v24 = vsub.f32 1.5, %v2687_v6  ;;  %v5121_v2 = vmul.f32 %v2355_v19, %v3802_v58  ;;  %v2930_v53 = vadd.f32 %v2889_v26, %v2888_v30  ;;  %v2542_v27 = vsub.f32 %v4798_v41, %v5092_v40 }
 0x3da   :  { %v2497_v25 = vsub.f32 %v2465_v35, %v2481_v7  ;;  %3235 = vrsqrt.f32 %v2562_v33  ;;  %v2820_v22 = vadd.f32 %v4866_v20, %v2783_v43  ;;  %v2821_v14 = vadd.f32 %v4868_v5, %v2784_v29 }
 0x3db   :  { %v2689_v62 = vmul.f32 %v3234_v55, %v2688_v24  ;;  %2931 = vadd.xlane.f32.xlu2 %v2930_v53  ;;  %v2483_v61 = vmul.f32 %v5121_v2, %v5121_v2  ;;  %vm2710_vm11 = vweird.f32 %v2562_v33  ;;  %v2543_v57 = vsub.f32 %v4796_v9, %v5092_v40 }
 0x3dc   :  { %v2513_v10 = vmax.f32 %v2497_v25, 0.0  ;;  %v2852_v54 = vmax.f32 %v2820_v22, 0.0  ;;  %v2853_v21 = vmax.f32 %v2821_v14, 0.0 }
 0x3dd   :  { %v2693_v39 = vsel %vm2692_vm9, %v3234_v55, %v2689_v62  ;;  %vm3016_vm9 = vcmask 523712  }
 0x3de   :  { %v2748_v28 = vmul.f32 %v2693_v39, %v2540_v51  ;;  %v2749_v50 = vmul.f32 %v2693_v39, %v2541_v4  ;;  %v2561_v42 = vadd.f32 1e-05, %v2513_v10  ;;  %v2890_v15 = vmul.f32 %v4881_v18, %v2852_v54 }
 0x3df   :  { %v2451_v3 = vpop.xlane.xlu2 %2450  ;;  %v2891_v1 = vmul.f32 %v4885_v60, %v2853_v21 }
 0x3e0   :  { %3237 = vrsqrt.f32 %v2561_v42  ;;  %v2467_v46 = vmul.f32 %v2451_v3, %v3802_v58  ;;  %v3236_v13 = vpop.eup %3235  ;;  %v2785_v55 = vmul.f32 %v4861_v47, %v2748_v28  ;;  %v2786_v23 = vmul.f32 %v4863_v8, %v2749_v50 }
 0x3e1   :  { %v2705_v37 = vmul.f32 %v3236_v13, %v2562_v33  ;;  %v2933_v16 = vadd.f32 %v2891_v1, %v2890_v15  ;;  %vm2711_vm10 = vweird.f32 %v3236_v13  ;;  %vm2700_vm14 = vweird.f32 %v2561_v42 }
 0x3e2   :  { %v2499_v59 = vsub.f32 %v2467_v46, %v2483_v61  ;;  %v2822_v49 = vadd.f32 %v4866_v20, %v2785_v55  ;;  %v2823_v32 = vadd.f32 %v4868_v5, %v2786_v23  ;;  %vm2712_vm12 = vmor %vm2710_vm11, %vm2711_vm10  ;;  %v2546_v15 = vsub.f32 %v4824_v44, %v5121_v2 }
 0x3e3   :  { %v2706_v0 = vmul.f32 %v3236_v13, %v2705_v37  ;;  %2934 = vadd.xlane.f32.xlu0 %v2933_v16  ;;  %v2547_v23 = vsub.f32 %v4826_v45, %v5121_v2  ;;  %vm3020_vm10 = vcmask 589312   ;;  %vm3024_vm11 = vcmask 654912  }
 0x3e4   :  { %v2515_v11 = vmax.f32 %v2499_v59, 0.0  ;;  %v2854_v58 = vmax.f32 %v2822_v49, 0.0  ;;  %v2855_v63 = vmax.f32 %v2823_v32, 0.0 }
 0x3e5   :  { %v2707_v17 = vmul.f32 0.5, %v2706_v0 }
 0x3e6   :  { %v3238_v7 = vpop.eup %3237  ;;  %v2563_v36 = vadd.f32 1e-05, %v2515_v11  ;;  %v2892_v52 = vmul.f32 %v4881_v18, %v2854_v58  ;;  %v2893_v6 = vmul.f32 %v4885_v60, %v2855_v63 }
 0x3e7   :  { %v2695_v48 = vmul.f32 %v3238_v7, %v2561_v42  ;;  %v2708_v38 = vsub.f32 1.5, %v2707_v17  ;;  %vm2701_vm13 = vweird.f32 %v3238_v7 }
 0x3e8   :  { %3239 = vrsqrt.f32 %v2563_v36  ;;  %v2936_v31 = vadd.f32 %v2893_v6, %v2892_v52  ;;  %vm2702_vm15 = vmor %vm2700_vm14, %vm2701_vm13  ;;  %vm2720_vm1 = vweird.f32 %v2563_v36  ;;  %vm3032_vm13 = vcmask 786112  }
 0x3e9   :  { %v2696_v19 = vmul.f32 %v3238_v7, %v2695_v48  ;;  %v2709_v35 = vmul.f32 %v3236_v13, %v2708_v38  ;;  %vm3036_vm14 = vcmask 851712  }
 0x3ea   :  { %2937 = vadd.xlane.f32.xlu2 %v2936_v31 }
 0x3eb   :  { %v2697_v24 = vmul.f32 0.5, %v2696_v19  ;;  %v2713_v43 = vsel %vm2712_vm12, %v3236_v13, %v2709_v35  ;;  %v2987_v35 = vlaneseq  ;;  %vm3028_vm12 = vcmask 720512  }
 0x3ec   :  { %v2752_v51 = vmul.f32 %v2713_v43, %v2544_v12  ;;  %v2753_v4 = vmul.f32 %v2713_v43, %v2545_v56 }
 0x3ed   :  { %v2698_v29 = vsub.f32 1.5, %v2697_v24  ;;  %v5168_v56 = vand.u32 127, %v2987_v35 }
 0x3ee   :  { %v3240_v25 = vpop.eup %3239  ;;  %v2789_v33 = vmul.f32 %v4861_v47, %v2752_v51  ;;  %v2790_v34 = vmul.f32 %v4863_v8, %v2753_v4 }
 0x3ef   :  { %v2699_v30 = vmul.f32 %v3238_v7, %v2698_v29  ;;  %v2715_v62 = vmul.f32 %v3240_v25, %v2563_v36  ;;  %vm2721_vm0 = vweird.f32 %v3240_v25  ;;  %v2994_v43 = vadd.s32 4294967280, %v5168_v56 }
 0x3f0   :  { %v2826_v10 = vadd.f32 %v4866_v20, %v2789_v33  ;;  %v2827_v14 = vadd.f32 %v4868_v5, %v2790_v34  ;;  %vm2722_vm2 = vmor %vm2720_vm1, %vm2721_vm0  ;;  %v2998_v4 = vadd.s32 4294967272, %v5168_v56  ;;  %vm3044_vm0 = vcmask 982912  }
 0x3f1   :  { %v2716_v26 = vmul.f32 %v3240_v25, %v2715_v62  ;;  %v2703_v22 = vsel %vm2702_vm15, %v3238_v7, %v2699_v30  ;;  %v3002_v30 = vadd.s32 4294967264, %v5168_v56  ;;  %vm3040_vm15 = vcmask 917312  }
 0x3f2   :  { %v2750_v39 = vmul.f32 %v2703_v22, %v2542_v27  ;;  %v2751_v53 = vmul.f32 %v2703_v22, %v2543_v57  ;;  %v2858_v50 = vmax.f32 %v2826_v10, 0.0  ;;  %v2859_v42 = vmax.f32 %v2827_v14, 0.0 }
 0x3f3   :  { %v2717_v28 = vmul.f32 0.5, %v2716_v26  ;;  %v3006_v27 = vadd.s32 4294967256, %v5168_v56  ;;  %v3010_v10 = vadd.s32 4294967248, %v5168_v56  ;;  %vm3048_vm1 = vcmask 1048512  }
 0x3f4   :  { %v2787_v54 = vmul.f32 %v4861_v47, %v2750_v39  ;;  %v2788_v41 = vmul.f32 %v4863_v8, %v2751_v53  ;;  %v2896_v9 = vmul.f32 %v4881_v18, %v2858_v50  ;;  %v2897_v40 = vmul.f32 %v4885_v60, %v2859_v42 }
 0x3f5   :  { %v2718_v3 = vsub.f32 1.5, %v2717_v28  ;;  %v3014_v53 = vadd.s32 4294967240, %v5168_v56 }
 0x3f6   :  { %v2824_v21 = vadd.f32 %v4866_v20, %v2787_v54  ;;  %v2825_v61 = vadd.f32 %v4868_v5, %v2788_v41  ;;  %v2942_v13 = vadd.f32 %v2897_v40, %v2896_v9 }
 0x3f7   :  { %v2719_v46 = vmul.f32 %v3240_v25, %v2718_v3 }
 0x3f8   :  { %v2856_v1 = vmax.f32 %v2824_v21, 0.0  ;;  %v2857_v55 = vmax.f32 %v2825_v61, 0.0  ;;  %2943 = vadd.xlane.f32.xlu2 %v2942_v13  ;;  %v3018_v21 = vadd.s32 4294967232, %v5168_v56  ;;  %v3022_v13 = vadd.s32 4294967224, %v5168_v56 }
 0x3f9   :  { %v2723_v37 = vsel %vm2722_vm2, %v3240_v25, %v2719_v46 }
 0x3fa   :  { %v2894_v59 = vmul.f32 %v4881_v18, %v2856_v1  ;;  %v2895_v16 = vmul.f32 %v4885_v60, %v2857_v55  ;;  %v2754_v49 = vmul.f32 %v2723_v37, %v2546_v15  ;;  %v2755_v32 = vmul.f32 %v2723_v37, %v2547_v23  ;;  %v2902_v48 = vpop.xlane.xlu0 %2901 }
 0x3fb   :  { %v3026_v23 = vadd.s32 4294967216, %v5168_v56 }
 0x3fc   :  { %v2939_v0 = vadd.f32 %v2895_v16, %v2894_v59  ;;  %v2791_v11 = vmul.f32 %v4861_v47, %v2754_v49  ;;  %v2792_v44 = vmul.f32 %v4863_v8, %v2755_v32  ;;  %v3030_v16 = vadd.s32 4294967208, %v5168_v56 }
 0x3fe   :  { %2940 = vadd.xlane.f32.xlu0 %v2939_v0  ;;  %v2828_v58 = vadd.f32 %v4866_v20, %v2791_v11  ;;  %v2829_v63 = vadd.f32 %v4868_v5, %v2792_v44  ;;  %v2952_v20 = vpop.permute.xlu1 %2951  ;;  %v3034_v44 = vadd.s32 4294967200, %v5168_v56 }
 0x3ff   :  { %v5166_v5 = vperm.slane %v2952_v20, 0  ;;  %v3046_v20 = vadd.s32 4294967176, %v5168_v56 }
 0x400   :  { %v2860_v7 = vmax.f32 %v2828_v58, 0.0  ;;  %v2861_v45 = vmax.f32 %v2829_v63, 0.0 }
 0x401   :  { %v2955_v51 = vadd.f32 %v5166_v5, %v2902_v48 }
 0x402   :  { %v2898_v2 = vmul.f32 %v4881_v18, %v2860_v7  ;;  %v2899_v17 = vmul.f32 %v4885_v60, %v2861_v45  ;;  %v2990_v18 = vadd.s32 4294967288, %v5168_v56  ;;  %v3038_v45 = vadd.s32 4294967192, %v5168_v56 }
 0x403   :  { %v2989_v14 = vperm.slane %v2955_v51, %v5168_v56 }
 0x404   :  { %v2945_v36 = vadd.f32 %v2899_v17, %v2898_v2 }
 0x405   :  { %v2905_v52 = vpop.xlane.xlu2 %2904 }
 0x406   :  { %2946 = vadd.xlane.f32.xlu0 %v2945_v36  ;;  %v2956_v60 = vadd.f32 %v5166_v5, %v2905_v52 }
 0x408   :  { %v2991_v33 = vperm.slane %v2956_v60, %v2990_v18 }
 0x40a   :  { %v2993_v54 = vsel %vm2992_vm3, %v2991_v33, %v2989_v14 }
 0x40d   :  { %v2908_v6 = vpop.xlane.xlu0 %2907 }
 0x40e   :  { %v2957_v29 = vadd.f32 %v5166_v5, %v2908_v6 }
 0x410   :  { %v2995_v26 = vperm.slane %v2957_v29, %v2994_v43 }
 0x412   :  { %v2997_v9 = vsel %vm2996_vm4, %v2995_v26, %v2993_v54 }
 0x416   :  { %v2911_v38 = vpop.xlane.xlu2 %2910 }
 0x417   :  { %v2958_v25 = vadd.f32 %v5166_v5, %v2911_v38 }
 0x419   :  { %v2999_v39 = vperm.slane %v2958_v25, %v2998_v4 }
 0x41b   :  { %v3001_v46 = vsel %vm3000_vm5, %v2999_v39, %v2997_v9 }
 0x41e   :  { %v2914_v47 = vpop.xlane.xlu0 %2913 }
 0x41f   :  { %v2959_v62 = vadd.f32 %v5166_v5, %v2914_v47 }
 0x421   :  { %v3003_v42 = vperm.slane %v2959_v62, %v3002_v30 }
 0x423   :  { %v3005_v55 = vsel %vm3004_vm6, %v3003_v42, %v3001_v46 }
 0x426   :  { %v2917_v19 = vpop.xlane.xlu2 %2916 }
 0x427   :  { %v2960_v57 = vadd.f32 %v5166_v5, %v2917_v19 }
 0x429   :  { %v3007_v41 = vperm.slane %v2960_v57, %v3006_v27 }
 0x42b   :  { %v3009_v59 = vsel %vm3008_vm7, %v3007_v41, %v3005_v55 }
 0x434   :  { %v2920_v8 = vpop.xlane.xlu0 %2919 }
 0x435   :  { %v2961_v22 = vadd.f32 %v5166_v5, %v2920_v8  ;;  %v3042_v8 = vadd.s32 4294967184, %v5168_v56 }
 0x437   :  { %v3011_v40 = vperm.slane %v2961_v22, %v3010_v10 }
 0x439   :  { %v3013_v0 = vsel %vm3012_vm8, %v3011_v40, %v3009_v59 }
 0x43c   :  { %v2923_v31 = vpop.xlane.xlu2 %2922 }
 0x43d   :  { %v2962_v28 = vadd.f32 %v5166_v5, %v2923_v31 }
 0x43f   :  { %v2926_v50 = vpop.xlane.xlu1 %2925  ;;  %v3015_v15 = vperm.slane %v2962_v28, %v3014_v53 }
 0x440   :  { %v2963_v61 = vadd.f32 %v5166_v5, %v2926_v50 }
 0x441   :  { %v3017_v63 = vsel %vm3016_vm9, %v3015_v15, %v3013_v0 }
 0x442   :  { %v3019_v11 = vperm.slane %v2963_v61, %v3018_v21 }
 0x444   :  { %v3021_v52 = vsel %vm3020_vm10, %v3019_v11, %v3017_v63 }
 0x445   :  { %v2929_v12 = vpop.xlane.xlu0 %2928 }
 0x446   :  { %v2964_v1 = vadd.f32 %v5166_v5, %v2929_v12 }
 0x448   :  { %v3023_v7 = vperm.slane %v2964_v1, %v3022_v13 }
 0x44a   :  { %v3025_v38 = vsel %vm3024_vm11, %v3023_v7, %v3021_v52 }
 0x44e   :  { %v2932_v24 = vpop.xlane.xlu2 %2931 }
 0x44f   :  { %v2965_v37 = vadd.f32 %v5166_v5, %v2932_v24 }
 0x451   :  { %v3027_v17 = vperm.slane %v2965_v37, %v3026_v23 }
 0x453   :  { %v3029_v19 = vsel %vm3028_vm12, %v3027_v17, %v3025_v38 }
 0x456   :  { %v2935_v34 = vpop.xlane.xlu0 %2934 }
 0x457   :  { %v2966_v49 = vadd.f32 %v5166_v5, %v2935_v34 }
 0x459   :  { %v3031_v36 = vperm.slane %v2966_v49, %v3030_v16 }
 0x45b   :  { %v3033_v35 = vsel %vm3032_vm13, %v3031_v36, %v3029_v19 }
 0x45d   :  { %v2938_v3 = vpop.xlane.xlu2 %2937 }
 0x45e   :  { %v2967_v58 = vadd.f32 %v5166_v5, %v2938_v3 }
 0x460   :  { %v3035_v6 = vperm.slane %v2967_v58, %v3034_v44 }
 0x462   :  { %v3037_v12 = vsel %vm3036_vm14, %v3035_v6, %v3033_v35 }
 0x46b   :  { %v2944_v48 = vpop.xlane.xlu2 %2943 }
 0x46c   :  { %v2969_v31 = vadd.f32 %v5166_v5, %v2944_v48 }
 0x46e   :  { %v3043_v43 = vperm.slane %v2969_v31, %v3042_v8 }
 0x471   :  { %v2941_v32 = vpop.xlane.xlu0 %2940 }
 0x472   :  { %v2968_v2 = vadd.f32 %v5166_v5, %v2941_v32 }
 0x474   :  { %v3039_v47 = vperm.slane %v2968_v2, %v3038_v45 }
 0x476   :  { %v3041_v60 = vsel %vm3040_vm15, %v3039_v47, %v3037_v12 }
 0x477   :  { %v3045_v51 = vsel %vm3044_vm0, %v3043_v43, %v3041_v60 }
 0x479   :  { %v2947_v18 = vpop.xlane.xlu0 %2946 }
 0x47a   :  { %v2970_v24 = vadd.f32 %v5166_v5, %v2947_v18 }
 0x47c   :  { %v3047_v29 = vperm.slane %v2970_v24, %v3046_v20 }
 0x47e   :  { %v3049_v4 = vsel %vm3048_vm1, %v3047_v29, %v3045_v51 }
 0x47f   :  { %3051 = vst [vmem:[#allocation8] sm:$0x1] %v3049_v4 }
 0x480   :  { %3062 = dma.vmem_to_hbm [thread:$0]  %s3058_s21, 16, %s3060_s3, [#allocation5]  }
 0x481   :  { %3317 = dma.done.wait [#allocation5], 16  }
 0x482   :  { %3318 = vsyncadd [#allocation5], 4294967280 }
 0x483   :  { %3067 = vsyncpa [#allocation4], 1 }
 0x484   :  { %3068 = vsyncpa [#allocation7], 1 }
 0x485   :  { %3069 = vsyncpa [#allocation5], 1 }

</bundles_post_ra>
